<compile_context>
chip_gen: v6e
topology: v6e:2x2x1
jax: 0.10.0
libtpu: 0.0.40
codegen_flags: <defaults>
</compile_context>

<pallas_src>
import jax
import jax.numpy as jnp
from jax import lax
from jax.experimental import pallas as pl
from jax.experimental.pallas import tpu as pltpu

EPS = 1e-5
LANE = 128


def _round_up(x, m):
    return (x + m - 1) // m * m


def _make_kernel(WIN, QG, STRIDE, HEAD, SCR_ROWS, COP):
    """WIN = padded input width (W+2); QG = Ho*WIN flat output rows;
    HEAD = (8-aligned) offset of the conv-#2 interior inside h_scr."""
    TAIL = SCR_ROWS - HEAD - QG
    BASE2 = HEAD - WIN - 1          # conv-#2 grid origin inside the scratch

    def _rows(ref, start, size, stride):
        if stride == 1:
            return ref[pl.ds(start, size), :]
        return ref[pl.ds(start, size, stride=stride), :]

    def kernel(x_ref, amask_ref, cmask_ref, s1_ref, b1_ref, s2_ref, b2_ref,
               w1_ref, w2_ref, wd_ref, o_ref, a_scr, h_scr):
        # ---- norm_act: BatchNorm(Cin) folded to scale/shift + ReLU. The conv
        # zero-padding is applied to the *activation*, so the pad ring of the
        # (H+2, W+2) grid is forced to exactly zero via amask.
        x = x_ref[...].astype(jnp.float32)
        a = jnp.maximum(x * s1_ref[...] + b1_ref[...], 0.0) * amask_ref[...]
        a_scr[...] = a                                   # f32 scratch (strided reads)

        # ---- block[0]: 3x3 stride-s conv as 9 strided row-slice matmuls.
        acc1 = jnp.zeros((QG, COP), jnp.float32)
        for t in range(9):
            kh, kw = divmod(t, 3)
            tap = _rows(a_scr, kh * WIN + kw, QG, STRIDE).astype(jnp.bfloat16)
            acc1 = acc1 + jnp.dot(tap, w1_ref[t],
                                  preferred_element_type=jnp.float32)

        # ---- block[1..3]: BatchNorm(Cout) + ReLU (+ Dropout == id in eval).
        # cmask zeroes the spill columns (ow >= Wo) of the flat row layout so
        # the ring of the conv-#2 grid stays exactly zero.
        h1 = jnp.maximum(acc1 * s2_ref[...] + b2_ref[...], 0.0) * cmask_ref[...]

        # build the zero-ringed (Ho+2, WIN) grid for conv #2; only the small
        # head/tail ring rows are re-zeroed each step (aligned stores), not the
        # whole scratch buffer.
        h_scr[pl.ds(0, HEAD), :] = jnp.zeros((HEAD, COP), jnp.float32)
        h_scr[pl.ds(HEAD, QG), :] = h1
        h_scr[pl.ds(HEAD + QG, TAIL), :] = jnp.zeros((TAIL, COP), jnp.float32)

        # ---- downsample: 1x1 stride-s conv == strided center-tap rows @ wd.
        ctr = _rows(a_scr, WIN + 1, QG, STRIDE).astype(jnp.bfloat16)
        acc = jnp.dot(ctr, wd_ref[...], preferred_element_type=jnp.float32)

        # ---- block[4]: 3x3 stride-1 conv over the zero-ringed grid via 9
        # shifted contiguous row slices, fused with the residual add.
        for t in range(9):
            kh, kw = divmod(t, 3)
            tap = h_scr[pl.ds(BASE2 + kh * WIN + kw, QG), :].astype(jnp.bfloat16)
            acc = acc + jnp.dot(tap, w2_ref[t],
                                preferred_element_type=jnp.float32)

        o_ref[...] = acc.astype(o_ref.dtype)

    return kernel


def downsample_unit_pallas(x_nchw, params, stride):
    N, Cin, H, W = x_nchw.shape
    Cout = params["w1"].shape[-1]
    COP = _round_up(Cout, LANE)                      # lane-dense padded Cout

    Ho = (H - 1) // stride + 1
    Wo = (W - 1) // stride + 1
    HIN, WIN = H + 2, W + 2
    PIN = HIN * WIN
    QG = Ho * WIN                                    # flat output rows (incl. ow spill)
    # conv-#1 taps over-read past the padded input by a few rows -> pad flat x.
    PIN_pad = _round_up(max(PIN, 2 * WIN + 2 + stride * (QG - 1) + 1), 16)
    HEAD = _round_up(WIN + 1, 8)                     # 8-aligned h1 placement
    SCR_ROWS = _round_up(HEAD + QG + WIN + 2, 8)

    # ---- glue: NHWC, spatial zero pad, flatten (channels stay on lanes), bf16
    x = jnp.transpose(x_nchw, (0, 2, 3, 1)).astype(jnp.float32)
    xp = jnp.pad(x, ((0, 0), (1, 1), (1, 1), (0, 0))).reshape(N, PIN, Cin)
    xp = jnp.pad(xp, ((0, 0), (0, PIN_pad - PIN), (0, 0))).astype(jnp.bfloat16)

    # tiny (rows, 1) masks: pad-ring mask on the input grid, spill-column mask
    # on the flat output grid.
    amask = jnp.pad(jnp.ones((H, W), jnp.float32), ((1, 1), (1, 1)))
    amask = jnp.pad(amask.reshape(PIN, 1), ((0, PIN_pad - PIN), (0, 0)))
    cmask = jnp.zeros((Ho, WIN), jnp.float32).at[:, :Wo].set(1.0).reshape(QG, 1)

    # ---- glue: fold eval-mode BatchNorm into per-channel scale & shift
    s1 = (params["gamma1"] / jnp.sqrt(params["var1"] + EPS)).astype(jnp.float32)
    b1 = (params["beta1"] - params["mean1"] * s1).astype(jnp.float32)
    s1 = s1.reshape(1, Cin)
    b1 = b1.reshape(1, Cin)
    s2v = params["gamma2"] / jnp.sqrt(params["var2"] + EPS)
    b2v = params["beta2"] - params["mean2"] * s2v
    s2 = jnp.zeros((1, COP), jnp.float32).at[0, :Cout].set(s2v)
    b2 = jnp.zeros((1, COP), jnp.float32).at[0, :Cout].set(b2v)

    # ---- weights: tap-major, Cout zero-padded to COP, bf16 for the MXU
    w1 = jnp.zeros((9, Cin, COP), jnp.float32).at[:, :, :Cout].set(
        params["w1"].reshape(9, Cin, Cout)).astype(jnp.bfloat16)
    w2 = jnp.zeros((9, COP, COP), jnp.float32).at[:, :Cout, :Cout].set(
        params["w2"].reshape(9, Cout, Cout)).astype(jnp.bfloat16)
    wd = jnp.zeros((Cin, COP), jnp.float32).at[:, :Cout].set(
        params["wd"]).astype(jnp.bfloat16)

    kernel = _make_kernel(WIN, QG, stride, HEAD, SCR_ROWS, COP)

    # ---- VMEM budget from actual (8,128)-tiled block sizes (x2 for the
    # default double buffering) + scratch, with headroom.
    def _blk(shape, dtype):
        *lead, s, l = shape
        itm = jnp.dtype(dtype).itemsize
        rows = _round_up(s, 8 * max(1, 4 // itm))
        lanes = _round_up(l, LANE)
        n = 1
        for d in lead:
            n *= d
        return n * rows * lanes * itm

    vmem = 2 * (_blk((PIN_pad, Cin), jnp.bfloat16)
                + _blk((PIN_pad, 1), jnp.float32)
                + _blk((QG, 1), jnp.float32)
                + 2 * _blk((1, Cin), jnp.float32)
                + 2 * _blk((1, COP), jnp.float32)
                + _blk((9, Cin, COP), jnp.bfloat16)
                + _blk((9, COP, COP), jnp.bfloat16)
                + _blk((Cin, COP), jnp.bfloat16)
                + _blk((QG, COP), jnp.float32))
    vmem += _blk((PIN_pad, Cin), jnp.float32) + _blk((SCR_ROWS, COP), jnp.float32)
    vmem_limit = int(min(100 << 20, max(16 << 20, int(vmem * 1.5))))

    out_flat = pl.pallas_call(
        kernel,
        out_shape=jax.ShapeDtypeStruct((N, QG, COP), jnp.float32),
        grid=(N,),
        in_specs=[
            pl.BlockSpec((None, PIN_pad, Cin), lambda n: (n, 0, 0)),
            pl.BlockSpec((PIN_pad, 1), lambda n: (0, 0)),
            pl.BlockSpec((QG, 1), lambda n: (0, 0)),
            pl.BlockSpec((1, Cin), lambda n: (0, 0)),
            pl.BlockSpec((1, Cin), lambda n: (0, 0)),
            pl.BlockSpec((1, COP), lambda n: (0, 0)),
            pl.BlockSpec((1, COP), lambda n: (0, 0)),
            pl.BlockSpec((9, Cin, COP), lambda n: (0, 0, 0)),
            pl.BlockSpec((9, COP, COP), lambda n: (0, 0, 0)),
            pl.BlockSpec((Cin, COP), lambda n: (0, 0)),
        ],
        out_specs=pl.BlockSpec((None, QG, COP), lambda n: (n, 0, 0)),
        scratch_shapes=[pltpu.VMEM((PIN_pad, Cin), jnp.float32),
                        pltpu.VMEM((SCR_ROWS, COP), jnp.float32)],
        compiler_params=pltpu.CompilerParams(
            dimension_semantics=("parallel",),
            vmem_limit_bytes=vmem_limit),
    )(xp, amask, cmask, s1, b1, s2, b2, w1, w2, wd)

    out = out_flat.reshape(N, Ho, WIN, COP)[:, :, :Wo, :Cout]
    return jnp.transpose(out, (0, 3, 1, 2))                  # back to NCHW


def downsample_unit_reference(x_nchw, params, stride):
    """Pure-JAX reference (eval-mode semantics), NCHW in / NCHW out."""
    dn = ("NHWC", "HWIO", "NHWC")
    x = jnp.transpose(x_nchw, (0, 2, 3, 1)).astype(jnp.float32)
    Cin = x.shape[-1]
    Cout = params["w1"].shape[-1]
    s1 = params["gamma1"] / jnp.sqrt(params["var1"] + EPS)
    b1 = params["beta1"] - params["mean1"] * s1
    a = jnp.maximum(x * s1 + b1, 0.0)
    h = lax.conv_general_dilated(a, params["w1"], (stride, stride),
                                 ((1, 1), (1, 1)), dimension_numbers=dn)
    s2 = params["gamma2"] / jnp.sqrt(params["var2"] + EPS)
    b2 = params["beta2"] - params["mean2"] * s2
    h = jnp.maximum(h * s2 + b2, 0.0)
    h = lax.conv_general_dilated(h, params["w2"], (1, 1),
                                 ((1, 1), (1, 1)), dimension_numbers=dn)
    d = lax.conv_general_dilated(a, params["wd"].reshape(1, 1, Cin, Cout),
                                 (stride, stride), ((0, 0), (0, 0)),
                                 dimension_numbers=dn)
    return jnp.transpose(h + d, (0, 3, 1, 2))


if __name__ == "__main__":
    N, Cin, Cout, H, W, stride = 2, 4, 8, 16, 16, 2
    key = jax.random.PRNGKey(0)
    ks = jax.random.split(key, 12)
    x = jax.random.normal(ks[0], (N, Cin, H, W), jnp.float32)
    params = {
        "gamma1": 1.0 + 0.1 * jax.random.normal(ks[1], (Cin,), jnp.float32),
        "beta1": 0.1 * jax.random.normal(ks[2], (Cin,), jnp.float32),
        "mean1": 0.1 * jax.random.normal(ks[3], (Cin,), jnp.float32),
        "var1": jax.random.uniform(ks[4], (Cin,), jnp.float32, 0.5, 1.5),
        "w1": 0.2 * jax.random.normal(ks[5], (3, 3, Cin, Cout), jnp.float32),
        "gamma2": 1.0 + 0.1 * jax.random.normal(ks[6], (Cout,), jnp.float32),
        "beta2": 0.1 * jax.random.normal(ks[7], (Cout,), jnp.float32),
        "mean2": 0.1 * jax.random.normal(ks[8], (Cout,), jnp.float32),
        "var2": jax.random.uniform(ks[9], (Cout,), jnp.float32, 0.5, 1.5),
        "w2": 0.2 * jax.random.normal(ks[10], (3, 3, Cout, Cout), jnp.float32),
        "wd": 0.3 * jax.random.normal(ks[11], (Cin, Cout), jnp.float32),
    }

    out = downsample_unit_pallas(x, params, stride)
    out = jax.block_until_ready(out)

    ref = downsample_unit_reference(x, params, stride)
    Ho = (H - 1) // stride + 1
    Wo = (W - 1) // stride + 1
    assert out.shape == ref.shape == (N, Cout, Ho, Wo), (out.shape, ref.shape)
    err = float(jnp.max(jnp.abs(out - ref)))
    scale = float(jnp.max(jnp.abs(ref))) + 1e-6
    # bf16 matmul operands (f32 accumulation) -> tolerance loosened accordingly
    assert err <= 3e-2 * scale + 1e-2, f"max abs error too large: {err} (scale {scale})"
    print("KERNEL_OK")
</pallas_src>

<mosaic_0001>
module attributes {stable_mosaic.version = 11 : i64} {
  func.func @kernel(%arg0: i32, %arg1: memref<1x336x4xbf16, #tpu.memory_space<vmem>>, %arg2: memref<336x1xf32, #tpu.memory_space<vmem>>, %arg3: memref<144x1xf32, #tpu.memory_space<vmem>>, %arg4: memref<1x4xf32, #tpu.memory_space<vmem>>, %arg5: memref<1x4xf32, #tpu.memory_space<vmem>>, %arg6: memref<1x128xf32, #tpu.memory_space<vmem>>, %arg7: memref<1x128xf32, #tpu.memory_space<vmem>>, %arg8: memref<9x4x128xbf16, #tpu.memory_space<vmem>>, %arg9: memref<9x128x128xbf16, #tpu.memory_space<vmem>>, %arg10: memref<4x128xbf16, #tpu.memory_space<vmem>>, %arg11: memref<1x144x128xf32, #tpu.memory_space<vmem>>, %arg12: memref<336x4xf32, #tpu.memory_space<vmem>>, %arg13: memref<192x128xf32, #tpu.memory_space<vmem>>) attributes {dimension_semantics = [#tpu.dimension_semantics<parallel>], iteration_bounds = array<i64: 2>, scalar_prefetch = 0 : i64, scratch_operands = 2 : i64, tpu.core_type = #tpu.core_type<tc>, window_params = [{transform_indices = @transform_0, window_bounds = array<i64: 1, 336, 4>}, {pipeline_mode = #tpu.pipeline_mode<synchronous>, transform_indices = @transform_1, window_bounds = array<i64: 336, 1>}, {pipeline_mode = #tpu.pipeline_mode<synchronous>, transform_indices = @transform_2, window_bounds = array<i64: 144, 1>}, {pipeline_mode = #tpu.pipeline_mode<synchronous>, transform_indices = @transform_3, window_bounds = array<i64: 1, 4>}, {pipeline_mode = #tpu.pipeline_mode<synchronous>, transform_indices = @transform_4, window_bounds = array<i64: 1, 4>}, {pipeline_mode = #tpu.pipeline_mode<synchronous>, transform_indices = @transform_5, window_bounds = array<i64: 1, 128>}, {pipeline_mode = #tpu.pipeline_mode<synchronous>, transform_indices = @transform_6, window_bounds = array<i64: 1, 128>}, {pipeline_mode = #tpu.pipeline_mode<synchronous>, transform_indices = @transform_7, window_bounds = array<i64: 9, 4, 128>}, {pipeline_mode = #tpu.pipeline_mode<synchronous>, transform_indices = @transform_8, window_bounds = array<i64: 9, 128, 128>}, {pipeline_mode = #tpu.pipeline_mode<synchronous>, transform_indices = @transform_9, window_bounds = array<i64: 4, 128>}, {transform_indices = @transform_10, window_bounds = array<i64: 1, 144, 128>}]} {
    %c0 = arith.constant 0 : index
    %c0_0 = arith.constant 0 : index
    %c0_1 = arith.constant 0 : index
    %0 = vector.load %arg1[%c0, %c0_0, %c0_1] : memref<1x336x4xbf16, #tpu.memory_space<vmem>>, vector<1x336x4xbf16>
    %1 = vector.shape_cast %0 : vector<1x336x4xbf16> to vector<336x4xbf16>
    %2 = arith.extf %1 : vector<336x4xbf16> to vector<336x4xf32>
    %c0_2 = arith.constant 0 : index
    %c0_3 = arith.constant 0 : index
    %3 = vector.load %arg4[%c0_2, %c0_3] : memref<1x4xf32, #tpu.memory_space<vmem>>, vector<1x4xf32>
    %4 = vector.broadcast %3 : vector<1x4xf32> to vector<336x4xf32>
    %5 = arith.mulf %2, %4 : vector<336x4xf32>
    %c0_4 = arith.constant 0 : index
    %c0_5 = arith.constant 0 : index
    %6 = vector.load %arg5[%c0_4, %c0_5] : memref<1x4xf32, #tpu.memory_space<vmem>>, vector<1x4xf32>
    %7 = vector.broadcast %6 : vector<1x4xf32> to vector<336x4xf32>
    %8 = arith.addf %5, %7 : vector<336x4xf32>
    %cst = arith.constant 0.000000e+00 : f32
    %9 = vector.broadcast %cst : f32 to vector<336x4xf32>
    %10 = arith.maximumf %8, %9 : vector<336x4xf32>
    %c0_6 = arith.constant 0 : index
    %c0_7 = arith.constant 0 : index
    %11 = vector.load %arg2[%c0_6, %c0_7] : memref<336x1xf32, #tpu.memory_space<vmem>>, vector<336x1xf32>
    %12 = vector.broadcast %11 : vector<336x1xf32> to vector<336x4xf32>
    %13 = arith.mulf %10, %12 : vector<336x4xf32>
    %c0_8 = arith.constant 0 : index
    %c0_9 = arith.constant 0 : index
    %14 = vector.load %arg12[%c0_8, %c0_9] : memref<336x4xf32, #tpu.memory_space<vmem>>, vector<336x4xf32>
    tpu.vector_store %arg12[%c0_8, %c0_9], %13 {strides = array<i32>} : memref<336x4xf32, #tpu.memory_space<vmem>>, vector<336x4xf32>,
    %cst_10 = arith.constant 0.000000e+00 : f32
    %15 = vector.broadcast %cst_10 : f32 to vector<144x128xf32>
    %c0_11 = arith.constant 0 : index
    %c0_12 = arith.constant 0 : index
    %16 = tpu.strided_load %arg12[%c0_11, %c0_12] {strides = array<i32: 2, 1>} : memref<336x4xf32, #tpu.memory_space<vmem>>, vector<144x4xf32>
    %17 = arith.truncf %16 : vector<144x4xf32> to vector<144x4xbf16>
    %c0_13 = arith.constant 0 : index
    %c0_14 = arith.constant 0 : index
    %c0_15 = arith.constant 0 : index
    %18 = vector.load %arg8[%c0_13, %c0_14, %c0_15] : memref<9x4x128xbf16, #tpu.memory_space<vmem>>, vector<1x4x128xbf16>
    %19 = vector.shape_cast %18 : vector<1x4x128xbf16> to vector<4x128xbf16>
    %cst_16 = arith.constant dense<0.000000e+00> : vector<144x128xf32>
    %20 = tpu.matmul %17, %19, %cst_16 {dimension_numbers = #tpu.dot_dimension_numbers<[1], [0], [0], [1], [0, 0, 1, 1], [], []>} : vector<144x4xbf16>, vector<4x128xbf16>, vector<144x128xf32> -> vector<144x128xf32>
    %21 = arith.addf %15, %20 : vector<144x128xf32>
    %c1 = arith.constant 1 : index
    %c0_17 = arith.constant 0 : index
    %22 = tpu.strided_load %arg12[%c1, %c0_17] {strides = array<i32: 2, 1>} : memref<336x4xf32, #tpu.memory_space<vmem>>, vector<144x4xf32>
    %23 = arith.truncf %22 : vector<144x4xf32> to vector<144x4xbf16>
    %c1_18 = arith.constant 1 : index
    %c0_19 = arith.constant 0 : index
    %c0_20 = arith.constant 0 : index
    %24 = vector.load %arg8[%c1_18, %c0_19, %c0_20] : memref<9x4x128xbf16, #tpu.memory_space<vmem>>, vector<1x4x128xbf16>
    %25 = vector.shape_cast %24 : vector<1x4x128xbf16> to vector<4x128xbf16>
    %cst_21 = arith.constant dense<0.000000e+00> : vector<144x128xf32>
    %26 = tpu.matmul %23, %25, %cst_21 {dimension_numbers = #tpu.dot_dimension_numbers<[1], [0], [0], [1], [0, 0, 1, 1], [], []>} : vector<144x4xbf16>, vector<4x128xbf16>, vector<144x128xf32> -> vector<144x128xf32>
    %27 = arith.addf %21, %26 : vector<144x128xf32>
    %c2 = arith.constant 2 : index
    %c0_22 = arith.constant 0 : index
    %28 = tpu.strided_load %arg12[%c2, %c0_22] {strides = array<i32: 2, 1>} : memref<336x4xf32, #tpu.memory_space<vmem>>, vector<144x4xf32>
    %29 = arith.truncf %28 : vector<144x4xf32> to vector<144x4xbf16>
    %c2_23 = arith.constant 2 : index
    %c0_24 = arith.constant 0 : index
    %c0_25 = arith.constant 0 : index
    %30 = vector.load %arg8[%c2_23, %c0_24, %c0_25] : memref<9x4x128xbf16, #tpu.memory_space<vmem>>, vector<1x4x128xbf16>
    %31 = vector.shape_cast %30 : vector<1x4x128xbf16> to vector<4x128xbf16>
    %cst_26 = arith.constant dense<0.000000e+00> : vector<144x128xf32>
    %32 = tpu.matmul %29, %31, %cst_26 {dimension_numbers = #tpu.dot_dimension_numbers<[1], [0], [0], [1], [0, 0, 1, 1], [], []>} : vector<144x4xbf16>, vector<4x128xbf16>, vector<144x128xf32> -> vector<144x128xf32>
    %33 = arith.addf %27, %32 : vector<144x128xf32>
    %c18 = arith.constant 18 : index
    %c0_27 = arith.constant 0 : index
    %34 = tpu.strided_load %arg12[%c18, %c0_27] {strides = array<i32: 2, 1>} : memref<336x4xf32, #tpu.memory_space<vmem>>, vector<144x4xf32>
    %35 = arith.truncf %34 : vector<144x4xf32> to vector<144x4xbf16>
    %c3 = arith.constant 3 : index
    %c0_28 = arith.constant 0 : index
    %c0_29 = arith.constant 0 : index
    %36 = vector.load %arg8[%c3, %c0_28, %c0_29] : memref<9x4x128xbf16, #tpu.memory_space<vmem>>, vector<1x4x128xbf16>
    %37 = vector.shape_cast %36 : vector<1x4x128xbf16> to vector<4x128xbf16>
    %cst_30 = arith.constant dense<0.000000e+00> : vector<144x128xf32>
    %38 = tpu.matmul %35, %37, %cst_30 {dimension_numbers = #tpu.dot_dimension_numbers<[1], [0], [0], [1], [0, 0, 1, 1], [], []>} : vector<144x4xbf16>, vector<4x128xbf16>, vector<144x128xf32> -> vector<144x128xf32>
    %39 = arith.addf %33, %38 : vector<144x128xf32>
    %c19 = arith.constant 19 : index
    %c0_31 = arith.constant 0 : index
    %40 = tpu.strided_load %arg12[%c19, %c0_31] {strides = array<i32: 2, 1>} : memref<336x4xf32, #tpu.memory_space<vmem>>, vector<144x4xf32>
    %41 = arith.truncf %40 : vector<144x4xf32> to vector<144x4xbf16>
    %c4 = arith.constant 4 : index
    %c0_32 = arith.constant 0 : index
    %c0_33 = arith.constant 0 : index
    %42 = vector.load %arg8[%c4, %c0_32, %c0_33] : memref<9x4x128xbf16, #tpu.memory_space<vmem>>, vector<1x4x128xbf16>
    %43 = vector.shape_cast %42 : vector<1x4x128xbf16> to vector<4x128xbf16>
    %cst_34 = arith.constant dense<0.000000e+00> : vector<144x128xf32>
    %44 = tpu.matmul %41, %43, %cst_34 {dimension_numbers = #tpu.dot_dimension_numbers<[1], [0], [0], [1], [0, 0, 1, 1], [], []>} : vector<144x4xbf16>, vector<4x128xbf16>, vector<144x128xf32> -> vector<144x128xf32>
    %45 = arith.addf %39, %44 : vector<144x128xf32>
    %c20 = arith.constant 20 : index
    %c0_35 = arith.constant 0 : index
    %46 = tpu.strided_load %arg12[%c20, %c0_35] {strides = array<i32: 2, 1>} : memref<336x4xf32, #tpu.memory_space<vmem>>, vector<144x4xf32>
    %47 = arith.truncf %46 : vector<144x4xf32> to vector<144x4xbf16>
    %c5 = arith.constant 5 : index
    %c0_36 = arith.constant 0 : index
    %c0_37 = arith.constant 0 : index
    %48 = vector.load %arg8[%c5, %c0_36, %c0_37] : memref<9x4x128xbf16, #tpu.memory_space<vmem>>, vector<1x4x128xbf16>
    %49 = vector.shape_cast %48 : vector<1x4x128xbf16> to vector<4x128xbf16>
    %cst_38 = arith.constant dense<0.000000e+00> : vector<144x128xf32>
    %50 = tpu.matmul %47, %49, %cst_38 {dimension_numbers = #tpu.dot_dimension_numbers<[1], [0], [0], [1], [0, 0, 1, 1], [], []>} : vector<144x4xbf16>, vector<4x128xbf16>, vector<144x128xf32> -> vector<144x128xf32>
    %51 = arith.addf %45, %50 : vector<144x128xf32>
    %c36 = arith.constant 36 : index
    %c0_39 = arith.constant 0 : index
    %52 = tpu.strided_load %arg12[%c36, %c0_39] {strides = array<i32: 2, 1>} : memref<336x4xf32, #tpu.memory_space<vmem>>, vector<144x4xf32>
    %53 = arith.truncf %52 : vector<144x4xf32> to vector<144x4xbf16>
    %c6 = arith.constant 6 : index
    %c0_40 = arith.constant 0 : index
    %c0_41 = arith.constant 0 : index
    %54 = vector.load %arg8[%c6, %c0_40, %c0_41] : memref<9x4x128xbf16, #tpu.memory_space<vmem>>, vector<1x4x128xbf16>
    %55 = vector.shape_cast %54 : vector<1x4x128xbf16> to vector<4x128xbf16>
    %cst_42 = arith.constant dense<0.000000e+00> : vector<144x128xf32>
    %56 = tpu.matmul %53, %55, %cst_42 {dimension_numbers = #tpu.dot_dimension_numbers<[1], [0], [0], [1], [0, 0, 1, 1], [], []>} : vector<144x4xbf16>, vector<4x128xbf16>, vector<144x128xf32> -> vector<144x128xf32>
    %57 = arith.addf %51, %56 : vector<144x128xf32>
    %c37 = arith.constant 37 : index
    %c0_43 = arith.constant 0 : index
    %58 = tpu.strided_load %arg12[%c37, %c0_43] {strides = array<i32: 2, 1>} : memref<336x4xf32, #tpu.memory_space<vmem>>, vector<144x4xf32>
    %59 = arith.truncf %58 : vector<144x4xf32> to vector<144x4xbf16>
    %c7 = arith.constant 7 : index
    %c0_44 = arith.constant 0 : index
    %c0_45 = arith.constant 0 : index
    %60 = vector.load %arg8[%c7, %c0_44, %c0_45] : memref<9x4x128xbf16, #tpu.memory_space<vmem>>, vector<1x4x128xbf16>
    %61 = vector.shape_cast %60 : vector<1x4x128xbf16> to vector<4x128xbf16>
    %cst_46 = arith.constant dense<0.000000e+00> : vector<144x128xf32>
    %62 = tpu.matmul %59, %61, %cst_46 {dimension_numbers = #tpu.dot_dimension_numbers<[1], [0], [0], [1], [0, 0, 1, 1], [], []>} : vector<144x4xbf16>, vector<4x128xbf16>, vector<144x128xf32> -> vector<144x128xf32>
    %63 = arith.addf %57, %62 : vector<144x128xf32>
    %c38 = arith.constant 38 : index
    %c0_47 = arith.constant 0 : index
    %64 = tpu.strided_load %arg12[%c38, %c0_47] {strides = array<i32: 2, 1>} : memref<336x4xf32, #tpu.memory_space<vmem>>, vector<144x4xf32>
    %65 = arith.truncf %64 : vector<144x4xf32> to vector<144x4xbf16>
    %c8 = arith.constant 8 : index
    %c0_48 = arith.constant 0 : index
    %c0_49 = arith.constant 0 : index
    %66 = vector.load %arg8[%c8, %c0_48, %c0_49] : memref<9x4x128xbf16, #tpu.memory_space<vmem>>, vector<1x4x128xbf16>
    %67 = vector.shape_cast %66 : vector<1x4x128xbf16> to vector<4x128xbf16>
    %cst_50 = arith.constant dense<0.000000e+00> : vector<144x128xf32>
    %68 = tpu.matmul %65, %67, %cst_50 {dimension_numbers = #tpu.dot_dimension_numbers<[1], [0], [0], [1], [0, 0, 1, 1], [], []>} : vector<144x4xbf16>, vector<4x128xbf16>, vector<144x128xf32> -> vector<144x128xf32>
    %69 = arith.addf %63, %68 : vector<144x128xf32>
    %c0_51 = arith.constant 0 : index
    %c0_52 = arith.constant 0 : index
    %70 = vector.load %arg6[%c0_51, %c0_52] : memref<1x128xf32, #tpu.memory_space<vmem>>, vector<1x128xf32>
    %71 = vector.broadcast %70 : vector<1x128xf32> to vector<144x128xf32>
    %72 = arith.mulf %69, %71 : vector<144x128xf32>
    %c0_53 = arith.constant 0 : index
    %c0_54 = arith.constant 0 : index
    %73 = vector.load %arg7[%c0_53, %c0_54] : memref<1x128xf32, #tpu.memory_space<vmem>>, vector<1x128xf32>
    %74 = vector.broadcast %73 : vector<1x128xf32> to vector<144x128xf32>
    %75 = arith.addf %72, %74 : vector<144x128xf32>
    %cst_55 = arith.constant 0.000000e+00 : f32
    %76 = vector.broadcast %cst_55 : f32 to vector<144x128xf32>
    %77 = arith.maximumf %75, %76 : vector<144x128xf32>
    %c0_56 = arith.constant 0 : index
    %c0_57 = arith.constant 0 : index
    %78 = vector.load %arg3[%c0_56, %c0_57] : memref<144x1xf32, #tpu.memory_space<vmem>>, vector<144x1xf32>
    %79 = vector.broadcast %78 : vector<144x1xf32> to vector<144x128xf32>
    %80 = arith.mulf %77, %79 : vector<144x128xf32>
    %cst_58 = arith.constant 0.000000e+00 : f32
    %81 = vector.broadcast %cst_58 : f32 to vector<24x128xf32>
    %c0_59 = arith.constant 0 : index
    %c0_60 = arith.constant 0 : index
    %82 = vector.load %arg13[%c0_59, %c0_60] : memref<192x128xf32, #tpu.memory_space<vmem>>, vector<24x128xf32>
    tpu.vector_store %arg13[%c0_59, %c0_60], %81 {strides = array<i32>} : memref<192x128xf32, #tpu.memory_space<vmem>>, vector<24x128xf32>,
    %c24 = arith.constant 24 : index
    %c0_61 = arith.constant 0 : index
    %83 = vector.load %arg13[%c24, %c0_61] : memref<192x128xf32, #tpu.memory_space<vmem>>, vector<144x128xf32>
    tpu.vector_store %arg13[%c24, %c0_61], %80 {strides = array<i32>} : memref<192x128xf32, #tpu.memory_space<vmem>>, vector<144x128xf32>,
    %cst_62 = arith.constant 0.000000e+00 : f32
    %84 = vector.broadcast %cst_62 : f32 to vector<24x128xf32>
    %c168 = arith.constant 168 : index
    %c0_63 = arith.constant 0 : index
    %85 = vector.load %arg13[%c168, %c0_63] : memref<192x128xf32, #tpu.memory_space<vmem>>, vector<24x128xf32>
    tpu.vector_store %arg13[%c168, %c0_63], %84 {strides = array<i32>} : memref<192x128xf32, #tpu.memory_space<vmem>>, vector<24x128xf32>,
    %c19_64 = arith.constant 19 : index
    %c0_65 = arith.constant 0 : index
    %86 = tpu.strided_load %arg12[%c19_64, %c0_65] {strides = array<i32: 2, 1>} : memref<336x4xf32, #tpu.memory_space<vmem>>, vector<144x4xf32>
    %87 = arith.truncf %86 : vector<144x4xf32> to vector<144x4xbf16>
    %c0_66 = arith.constant 0 : index
    %c0_67 = arith.constant 0 : index
    %88 = vector.load %arg10[%c0_66, %c0_67] : memref<4x128xbf16, #tpu.memory_space<vmem>>, vector<4x128xbf16>
    %cst_68 = arith.constant dense<0.000000e+00> : vector<144x128xf32>
    %89 = tpu.matmul %87, %88, %cst_68 {dimension_numbers = #tpu.dot_dimension_numbers<[1], [0], [0], [1], [0, 0, 1, 1], [], []>} : vector<144x4xbf16>, vector<4x128xbf16>, vector<144x128xf32> -> vector<144x128xf32>
    %c5_69 = arith.constant 5 : index
    %c0_70 = arith.constant 0 : index
    %90 = vector.load %arg13[%c5_69, %c0_70] : memref<192x128xf32, #tpu.memory_space<vmem>>, vector<144x128xf32>
    %91 = arith.truncf %90 : vector<144x128xf32> to vector<144x128xbf16>
    %c0_71 = arith.constant 0 : index
    %c0_72 = arith.constant 0 : index
    %c0_73 = arith.constant 0 : index
    %92 = vector.load %arg9[%c0_71, %c0_72, %c0_73] : memref<9x128x128xbf16, #tpu.memory_space<vmem>>, vector<1x128x128xbf16>
    %93 = vector.shape_cast %92 : vector<1x128x128xbf16> to vector<128x128xbf16>
    %cst_74 = arith.constant dense<0.000000e+00> : vector<144x128xf32>
    %94 = tpu.matmul %91, %93, %cst_74 {dimension_numbers = #tpu.dot_dimension_numbers<[1], [0], [0], [1], [0, 0, 1, 1], [], []>} : vector<144x128xbf16>, vector<128x128xbf16>, vector<144x128xf32> -> vector<144x128xf32>
    %95 = arith.addf %89, %94 : vector<144x128xf32>
    %c6_75 = arith.constant 6 : index
    %c0_76 = arith.constant 0 : index
    %96 = vector.load %arg13[%c6_75, %c0_76] : memref<192x128xf32, #tpu.memory_space<vmem>>, vector<144x128xf32>
    %97 = arith.truncf %96 : vector<144x128xf32> to vector<144x128xbf16>
    %c1_77 = arith.constant 1 : index
    %c0_78 = arith.constant 0 : index
    %c0_79 = arith.constant 0 : index
    %98 = vector.load %arg9[%c1_77, %c0_78, %c0_79] : memref<9x128x128xbf16, #tpu.memory_space<vmem>>, vector<1x128x128xbf16>
    %99 = vector.shape_cast %98 : vector<1x128x128xbf16> to vector<128x128xbf16>
    %cst_80 = arith.constant dense<0.000000e+00> : vector<144x128xf32>
    %100 = tpu.matmul %97, %99, %cst_80 {dimension_numbers = #tpu.dot_dimension_numbers<[1], [0], [0], [1], [0, 0, 1, 1], [], []>} : vector<144x128xbf16>, vector<128x128xbf16>, vector<144x128xf32> -> vector<144x128xf32>
    %101 = arith.addf %95, %100 : vector<144x128xf32>
    %c7_81 = arith.constant 7 : index
    %c0_82 = arith.constant 0 : index
    %102 = vector.load %arg13[%c7_81, %c0_82] : memref<192x128xf32, #tpu.memory_space<vmem>>, vector<144x128xf32>
    %103 = arith.truncf %102 : vector<144x128xf32> to vector<144x128xbf16>
    %c2_83 = arith.constant 2 : index
    %c0_84 = arith.constant 0 : index
    %c0_85 = arith.constant 0 : index
    %104 = vector.load %arg9[%c2_83, %c0_84, %c0_85] : memref<9x128x128xbf16, #tpu.memory_space<vmem>>, vector<1x128x128xbf16>
    %105 = vector.shape_cast %104 : vector<1x128x128xbf16> to vector<128x128xbf16>
    %cst_86 = arith.constant dense<0.000000e+00> : vector<144x128xf32>
    %106 = tpu.matmul %103, %105, %cst_86 {dimension_numbers = #tpu.dot_dimension_numbers<[1], [0], [0], [1], [0, 0, 1, 1], [], []>} : vector<144x128xbf16>, vector<128x128xbf16>, vector<144x128xf32> -> vector<144x128xf32>
    %107 = arith.addf %101, %106 : vector<144x128xf32>
    %c23 = arith.constant 23 : index
    %c0_87 = arith.constant 0 : index
    %108 = vector.load %arg13[%c23, %c0_87] : memref<192x128xf32, #tpu.memory_space<vmem>>, vector<144x128xf32>
    %109 = arith.truncf %108 : vector<144x128xf32> to vector<144x128xbf16>
    %c3_88 = arith.constant 3 : index
    %c0_89 = arith.constant 0 : index
    %c0_90 = arith.constant 0 : index
    %110 = vector.load %arg9[%c3_88, %c0_89, %c0_90] : memref<9x128x128xbf16, #tpu.memory_space<vmem>>, vector<1x128x128xbf16>
    %111 = vector.shape_cast %110 : vector<1x128x128xbf16> to vector<128x128xbf16>
    %cst_91 = arith.constant dense<0.000000e+00> : vector<144x128xf32>
    %112 = tpu.matmul %109, %111, %cst_91 {dimension_numbers = #tpu.dot_dimension_numbers<[1], [0], [0], [1], [0, 0, 1, 1], [], []>} : vector<144x128xbf16>, vector<128x128xbf16>, vector<144x128xf32> -> vector<144x128xf32>
    %113 = arith.addf %107, %112 : vector<144x128xf32>
    %c24_92 = arith.constant 24 : index
    %c0_93 = arith.constant 0 : index
    %114 = vector.load %arg13[%c24_92, %c0_93] : memref<192x128xf32, #tpu.memory_space<vmem>>, vector<144x128xf32>
    %115 = arith.truncf %114 : vector<144x128xf32> to vector<144x128xbf16>
    %c4_94 = arith.constant 4 : index
    %c0_95 = arith.constant 0 : index
    %c0_96 = arith.constant 0 : index
    %116 = vector.load %arg9[%c4_94, %c0_95, %c0_96] : memref<9x128x128xbf16, #tpu.memory_space<vmem>>, vector<1x128x128xbf16>
    %117 = vector.shape_cast %116 : vector<1x128x128xbf16> to vector<128x128xbf16>
    %cst_97 = arith.constant dense<0.000000e+00> : vector<144x128xf32>
    %118 = tpu.matmul %115, %117, %cst_97 {dimension_numbers = #tpu.dot_dimension_numbers<[1], [0], [0], [1], [0, 0, 1, 1], [], []>} : vector<144x128xbf16>, vector<128x128xbf16>, vector<144x128xf32> -> vector<144x128xf32>
    %119 = arith.addf %113, %118 : vector<144x128xf32>
    %c25 = arith.constant 25 : index
    %c0_98 = arith.constant 0 : index
    %120 = vector.load %arg13[%c25, %c0_98] : memref<192x128xf32, #tpu.memory_space<vmem>>, vector<144x128xf32>
    %121 = arith.truncf %120 : vector<144x128xf32> to vector<144x128xbf16>
    %c5_99 = arith.constant 5 : index
    %c0_100 = arith.constant 0 : index
    %c0_101 = arith.constant 0 : index
    %122 = vector.load %arg9[%c5_99, %c0_100, %c0_101] : memref<9x128x128xbf16, #tpu.memory_space<vmem>>, vector<1x128x128xbf16>
    %123 = vector.shape_cast %122 : vector<1x128x128xbf16> to vector<128x128xbf16>
    %cst_102 = arith.constant dense<0.000000e+00> : vector<144x128xf32>
    %124 = tpu.matmul %121, %123, %cst_102 {dimension_numbers = #tpu.dot_dimension_numbers<[1], [0], [0], [1], [0, 0, 1, 1], [], []>} : vector<144x128xbf16>, vector<128x128xbf16>, vector<144x128xf32> -> vector<144x128xf32>
    %125 = arith.addf %119, %124 : vector<144x128xf32>
    %c41 = arith.constant 41 : index
    %c0_103 = arith.constant 0 : index
    %126 = vector.load %arg13[%c41, %c0_103] : memref<192x128xf32, #tpu.memory_space<vmem>>, vector<144x128xf32>
    %127 = arith.truncf %126 : vector<144x128xf32> to vector<144x128xbf16>
    %c6_104 = arith.constant 6 : index
    %c0_105 = arith.constant 0 : index
    %c0_106 = arith.constant 0 : index
    %128 = vector.load %arg9[%c6_104, %c0_105, %c0_106] : memref<9x128x128xbf16, #tpu.memory_space<vmem>>, vector<1x128x128xbf16>
    %129 = vector.shape_cast %128 : vector<1x128x128xbf16> to vector<128x128xbf16>
    %cst_107 = arith.constant dense<0.000000e+00> : vector<144x128xf32>
    %130 = tpu.matmul %127, %129, %cst_107 {dimension_numbers = #tpu.dot_dimension_numbers<[1], [0], [0], [1], [0, 0, 1, 1], [], []>} : vector<144x128xbf16>, vector<128x128xbf16>, vector<144x128xf32> -> vector<144x128xf32>
    %131 = arith.addf %125, %130 : vector<144x128xf32>
    %c42 = arith.constant 42 : index
    %c0_108 = arith.constant 0 : index
    %132 = vector.load %arg13[%c42, %c0_108] : memref<192x128xf32, #tpu.memory_space<vmem>>, vector<144x128xf32>
    %133 = arith.truncf %132 : vector<144x128xf32> to vector<144x128xbf16>
    %c7_109 = arith.constant 7 : index
    %c0_110 = arith.constant 0 : index
    %c0_111 = arith.constant 0 : index
    %134 = vector.load %arg9[%c7_109, %c0_110, %c0_111] : memref<9x128x128xbf16, #tpu.memory_space<vmem>>, vector<1x128x128xbf16>
    %135 = vector.shape_cast %134 : vector<1x128x128xbf16> to vector<128x128xbf16>
    %cst_112 = arith.constant dense<0.000000e+00> : vector<144x128xf32>
    %136 = tpu.matmul %133, %135, %cst_112 {dimension_numbers = #tpu.dot_dimension_numbers<[1], [0], [0], [1], [0, 0, 1, 1], [], []>} : vector<144x128xbf16>, vector<128x128xbf16>, vector<144x128xf32> -> vector<144x128xf32>
    %137 = arith.addf %131, %136 : vector<144x128xf32>
    %c43 = arith.constant 43 : index
    %c0_113 = arith.constant 0 : index
    %138 = vector.load %arg13[%c43, %c0_113] : memref<192x128xf32, #tpu.memory_space<vmem>>, vector<144x128xf32>
    %139 = arith.truncf %138 : vector<144x128xf32> to vector<144x128xbf16>
    %c8_114 = arith.constant 8 : index
    %c0_115 = arith.constant 0 : index
    %c0_116 = arith.constant 0 : index
    %140 = vector.load %arg9[%c8_114, %c0_115, %c0_116] : memref<9x128x128xbf16, #tpu.memory_space<vmem>>, vector<1x128x128xbf16>
    %141 = vector.shape_cast %140 : vector<1x128x128xbf16> to vector<128x128xbf16>
    %cst_117 = arith.constant dense<0.000000e+00> : vector<144x128xf32>
    %142 = tpu.matmul %139, %141, %cst_117 {dimension_numbers = #tpu.dot_dimension_numbers<[1], [0], [0], [1], [0, 0, 1, 1], [], []>} : vector<144x128xbf16>, vector<128x128xbf16>, vector<144x128xf32> -> vector<144x128xf32>
    %143 = arith.addf %137, %142 : vector<144x128xf32>
    %c0_118 = arith.constant 0 : index
    %c0_119 = arith.constant 0 : index
    %c0_120 = arith.constant 0 : index
    %144 = vector.load %arg11[%c0_118, %c0_119, %c0_120] : memref<1x144x128xf32, #tpu.memory_space<vmem>>, vector<1x144x128xf32>
    %145 = vector.shape_cast %144 : vector<1x144x128xf32> to vector<144x128xf32>
    %146 = vector.shape_cast %143 : vector<144x128xf32> to vector<1x144x128xf32>
    tpu.vector_store %arg11[%c0_118, %c0_119, %c0_120], %146 {strides = array<i32>} : memref<1x144x128xf32, #tpu.memory_space<vmem>>, vector<1x144x128xf32>,
    return
  }
  func.func @transform_0(%arg0: i32) -> (i32, i32, i32) {
    %c0_i32 = arith.constant 0 : i32
    %c0_i32_0 = arith.constant 0 : i32
    %c0_i32_1 = arith.constant 0 : i32
    return %arg0, %c0_i32, %c0_i32_0 : i32, i32, i32
  }
  func.func @transform_1(%arg0: i32) -> (i32, i32) {
    %c0_i32 = arith.constant 0 : i32
    %c0_i32_0 = arith.constant 0 : i32
    %c0_i32_1 = arith.constant 0 : i32
    return %c0_i32, %c0_i32_0 : i32, i32
  }
  func.func @transform_2(%arg0: i32) -> (i32, i32) {
    %c0_i32 = arith.constant 0 : i32
    %c0_i32_0 = arith.constant 0 : i32
    %c0_i32_1 = arith.constant 0 : i32
    return %c0_i32, %c0_i32_0 : i32, i32
  }
  func.func @transform_3(%arg0: i32) -> (i32, i32) {
    %c0_i32 = arith.constant 0 : i32
    %c0_i32_0 = arith.constant 0 : i32
    %c0_i32_1 = arith.constant 0 : i32
    return %c0_i32, %c0_i32_0 : i32, i32
  }
  func.func @transform_4(%arg0: i32) -> (i32, i32) {
    %c0_i32 = arith.constant 0 : i32
    %c0_i32_0 = arith.constant 0 : i32
    %c0_i32_1 = arith.constant 0 : i32
    return %c0_i32, %c0_i32_0 : i32, i32
  }
  func.func @transform_5(%arg0: i32) -> (i32, i32) {
    %c0_i32 = arith.constant 0 : i32
    %c0_i32_0 = arith.constant 0 : i32
    %c0_i32_1 = arith.constant 0 : i32
    return %c0_i32, %c0_i32_0 : i32, i32
  }
  func.func @transform_6(%arg0: i32) -> (i32, i32) {
    %c0_i32 = arith.constant 0 : i32
    %c0_i32_0 = arith.constant 0 : i32
    %c0_i32_1 = arith.constant 0 : i32
    return %c0_i32, %c0_i32_0 : i32, i32
  }
  func.func @transform_7(%arg0: i32) -> (i32, i32, i32) {
    %c0_i32 = arith.constant 0 : i32
    %c0_i32_0 = arith.constant 0 : i32
    %c0_i32_1 = arith.constant 0 : i32
    %c0_i32_2 = arith.constant 0 : i32
    return %c0_i32, %c0_i32_0, %c0_i32_1 : i32, i32, i32
  }
  func.func @transform_8(%arg0: i32) -> (i32, i32, i32) {
    %c0_i32 = arith.constant 0 : i32
    %c0_i32_0 = arith.constant 0 : i32
    %c0_i32_1 = arith.constant 0 : i32
    %c0_i32_2 = arith.constant 0 : i32
    return %c0_i32, %c0_i32_0, %c0_i32_1 : i32, i32, i32
  }
  func.func @transform_9(%arg0: i32) -> (i32, i32) {
    %c0_i32 = arith.constant 0 : i32
    %c0_i32_0 = arith.constant 0 : i32
    %c0_i32_1 = arith.constant 0 : i32
    return %c0_i32, %c0_i32_0 : i32, i32
  }
  func.func @transform_10(%arg0: i32) -> (i32, i32, i32) {
    %c0_i32 = arith.constant 0 : i32
    %c0_i32_0 = arith.constant 0 : i32
    %c0_i32_1 = arith.constant 0 : i32
    return %arg0, %c0_i32, %c0_i32_0 : i32, i32, i32
  }
}

</mosaic_0001>

<bundles_post_ra>
// kernel: tpu_custom_call.1
= control target key start
LH: loop header
LB: loop body
LE: loop exit
PB: predicated region body
PF: predicated region fallthrough
CT: control target
= control target key end

     0   :  { %15 = vsyncpa [#allocation5], 0  ;;  %s8985_s0 = inlined_call_operand.vmem [shape: bf16[2,336,4], index: 0, kind: input, shape index: {}]   ;;  %s8986_s1 = inlined_call_operand.vmem [shape: f32[336,1], index: 1, kind: input, shape index: {}]   ;;  %s8987_s2 = inlined_call_operand.vmem [shape: f32[144,1], index: 2, kind: input, shape index: {}]   ;;  %s8988_s3 = inlined_call_operand.vmem [shape: f32[1,4], index: 3, kind: input, shape index: {}]   ;;  %s8989_s4 = inlined_call_operand.vmem [shape: f32[1,4], index: 4, kind: input, shape index: {}]   ;;  %s8990_s5 = inlined_call_operand.vmem [shape: f32[1,128], index: 5, kind: input, shape index: {}]   ;;  %s8991_s6 = inlined_call_operand.vmem [shape: f32[1,128], index: 6, kind: input, shape index: {}]   ;;  %s8992_s7 = inlined_call_operand.vmem [shape: bf16[9,4,128], index: 7, kind: input, shape index: {}]   ;;  %s8993_s8 = inlined_call_operand.vmem [shape: bf16[9,128,128], index: 8, kind: input, shape index: {}]   ;;  %s8994_s9 = inlined_call_operand.vmem [shape: bf16[4,128], index: 9, kind: input, shape index: {}]   ;;  %s8995_s10 = inlined_call_operand.hbm [shape: f32[2,144,128], index: 10, kind: output, shape index: {}]  }
   0x1   :  { %17 = vsyncpa [#allocation5 + $0x1], 0  ;;  %s6805_s13 = smov 0   ;;  %s6807_s14 = smov 0  }
   0x2   :  { %s6809_s15 = smov 0   ;;  %s6811_s16 = smov 0  }
   0x3 LB: > { %s6826_s17 = sadd.s32 4294967295, %s6742_s16   ;;  %s5040_s18 = sadd.s32 4294967294, %s6742_s16   ;;  %s6742_s16 = sphi %s6811_s16, %s9019_s16   ;;  %s6738_s15 = sphi %s6809_s15, %s9018_s15   ;;  %s6734_s14 = sphi %s6807_s14, %s9017_s14   ;;  %s6730_s13 = sphi %s6805_s13, %s9016_s13  }
   0x4   : > { %s6830_s19 = sadd.s32 1, %s6742_s16   ;;  %s245_s20 = sadd.s32 1, %s6738_s15 }
   0x5   : > { %s242_s21 = ssub.s32 %s6742_s16, %s6830_s19  ;;  %p255_p0 = scmp.ne.s32.totalorder %s6738_s15, %s6734_s14 }
   0x6   : > { %p243_p1 = scmp.eq.s32.totalorder %s242_s21, 0  ;;  %p256_p2 = scmp.eq.s32.totalorder %s6826_s17, 1 }
   0x7   : > { %p261_p3 = scmp.ne.s32.totalorder %s6734_s14, %s6730_s13  ;;  %p262_p4 = scmp.eq.s32.totalorder %s5040_s18, 1 }
   0x8   : > { %s6841_s22 = scalar_select %p243_p1, %s6738_s15, %s245_s20  }
   0x9   : > { %p6843_p5 = por %p256_p2, %p255_p0  ;;  %p6847_p6 = por %p262_p4, %p261_p3 }
   0xa   : > { %8996 = sst [smem:[#allocation7_spill]] %s6841_s22  ;;  %p5043_p7 = scmp.ge.s32.totalorder %s6742_s16, 1 }
   0xb   : > { %p315_p8 = scmp.lt.s32.totalorder %s6742_s16, 3 }
   0xd   : > { %p316_p9 = pnand %p5043_p7, %p315_p8 }
   0xf   : > { %319 = sbr.rel (%p316_p9) target bundleno = 1226 (0x4ca), region = 60 }
  0x14   : > { %v585_v0 = vld [vmem:[%s8986_s1 + $0x10] sm:$0xff]  ;;  %v583_v1 = vld [vmem:[%s8986_s1] sm:$0xff]  ;;  %v6744_v2 = vmov 0   ;;  %v586_v3 = vld [vmem:[%s8986_s1 + $0x18] sm:$0xff]  ;;  %v6745_v7 = vmov 0.0   ;;  %vm6746_vm0 = vmmov 0  }
  0x15   : > { %6605 = vset.pattern.permute.xlu1 %v6744_v2  ;;  %6604 = vset.pattern.permute.xlu0 %v6744_v2  ;;  %v584_v4 = vld [vmem:[%s8986_s1 + $0x8] sm:$0xff]  ;;  %v603_v6 = vld [vmem:[%s8986_s1 + $0xa0] sm:$0xff]  ;;  %2843 = vst [vmem:[#allocation3] sm:$0xff] %v6745_v7  ;;  %2844 = vst [vmem:[#allocation3 + $0x8] sm:$0xff] %v6745_v7  ;;  %vm1039_vm1 = vcmask 1041408   ;;  %p353_p10 = scmp.lt.s32.totalorder %s6826_s17, 1 }
  0x16   : > { %637 = vperm.xlu1 %6605, %v585_v0   ;;  %627 = vperm.xlu0 %6604, %v583_v1   ;;  %v604_v5 = vld [vmem:[%s8986_s1 + $0xa8] sm:$0xff]  ;;  %2845 = vst [vmem:[#allocation3 + $0x10] sm:$0xff] %v6745_v7  ;;  %2864 = vst [vmem:[#allocation3 + $0xa8] sm:$0xff] %v6745_v7  ;;  %v606_v8 = vld [vmem:[%s8986_s1 + $0xb8] sm:$0xff]  ;;  %vm877_vm2 = vcmask 31744   ;;  %s350_s12 = sand.u32 1, %s6734_s14  }
  0x17   : > { %2865 = vst [vmem:[#allocation3 + $0xb0] sm:$0xff] %v6745_v7  ;;  %2866 = vst [vmem:[#allocation3 + $0xb8] sm:$0xff] %v6745_v7  ;;  %v605_v9 = vld [vmem:[%s8986_s1 + $0xb0] sm:$0xff]  ;;  %5707 = vmatprep.subr.bf16.mxu0 %v6745_v7  ;;  %6555 = vmatprep.subr.bf16.mxu1 %v6745_v7  ;;  %v588_v10 = vld [vmem:[%s8986_s1 + $0x28] sm:$0xff]  ;;  %s354_s28 = scalar_select %p353_p10, %s6826_s17, 1 }
  0x18   : > { %5709 = vmatprep.mubr.msk.bf16.mxu0 %vm6746_vm0, %v6745_v7  ;;  %5729 = vmatprep.mubr.msk.bf16.mxu1 %vm6746_vm0, %v6745_v7  ;;  %v587_v11 = vld [vmem:[%s8986_s1 + $0x20] sm:$0xff]  ;;  %v590_v12 = vld [vmem:[%s8986_s1 + $0x38] sm:$0xff]  ;;  %v589_v13 = vld [vmem:[%s8986_s1 + $0x30] sm:$0xff]  ;;  %s6557_s22 = smul.u32 144, %s350_s12 }
  0x19   : > { %v608_v14 = vld [vmem:[%s8986_s1 + $0xc8] sm:$0xff]  ;;  %v607_v15 = vld [vmem:[%s8986_s1 + $0xc0] sm:$0xff]  ;;  %v610_v17 = vld [vmem:[%s8986_s1 + $0xd8] sm:$0xff]  ;;  %s6558_s18 = smul.u32 168, %s354_s28  ;;  %s6747_s28 = smov [#allocation4]  }
  0x1a   : > { %642 = vperm.xlu1 %6605, %v586_v3   ;;  %632 = vperm.xlu0 %6604, %v584_v4   ;;  %v5047_v16 = vld [vmem:[%s8992_s7 + $0x2] sm:$0x3]  ;;  %v609_v19 = vld [vmem:[%s8986_s1 + $0xd0] sm:$0xff]  ;;  %v592_v20 = vld [vmem:[%s8986_s1 + $0x48] sm:$0xff]  ;;  %s6559_s20 = smul.u32 2304, %s6826_s17  ;;  %s8945_s17 = scalar_lea.sflag [#allocation5], %s350_s12 }
  0x1b   : > { %v1041_v18 = vsel %vm1039_vm1, %v5047_v16, 0  ;;  %v591_v21 = vld [vmem:[%s8986_s1 + $0x40] sm:$0xff]  ;;  %v594_v22 = vld [vmem:[%s8986_s1 + $0x58] sm:$0xff]  ;;  %v593_v23 = vld [vmem:[%s8986_s1 + $0x50] sm:$0xff]  ;;  %s7038_s29 = scalar_lea.vmem %s8985_s0, %s6558_s18  ;;  %s8865_s18 = scalar_lea.vmem [#allocation4], %s6557_s22 }
  0x1c   : > { %5708 = vmatpush3.bf16.msra.mxu0 %v1041_v18  ;;  %6556 = vmatpush3.bf16.msra.mxu1 %v1041_v18  ;;  %v612_v24 = vld [vmem:[%s8986_s1 + $0xe8] sm:$0xff]  ;;  %v611_v25 = vld [vmem:[%s8986_s1 + $0xe0] sm:$0xff]  ;;  %v614_v26 = vld [vmem:[%s8986_s1 + $0xf8] sm:$0xff]  ;;  %s4978_s21 = sshll.u32 %s8865_s18, 4  ;;  %s8940_s26 = scalar_lea.hbm %s8995_s10, %s6559_s20  ;;  %s8934_s21 = int_to_ptr.vmem [resolvable:$true] %s4978_s21 }
  0x1d   : > { %5783 = vmatprep.subr.bf16.mxu0 %v6745_v7  ;;  %5745 = vmatprep.subr.bf16.mxu1 %v6745_v7  ;;  %v613_v27 = vld [vmem:[%s8986_s1 + $0xf0] sm:$0xff]  ;;  %v596_v28 = vld [vmem:[%s8986_s1 + $0x68] sm:$0xff]  ;;  %v595_v29 = vld [vmem:[%s8986_s1 + $0x60] sm:$0xff]  ;;  %s6682_s27 = scalar_lea.vmem %s8934_s21, 2304  ;;  %s6686_s30 = sshll.u32 %s6747_s28, 4  ;;  %s6687_s30 = int_to_ptr.vmem [resolvable:$false] %s6686_s30 }
  0x1e   : > { %732 = vperm.xlu1 %6605, %v604_v5   ;;  %727 = vperm.xlu0 %6604, %v603_v6   ;;  %v598_v30 = vld [vmem:[%s8986_s1 + $0x78] sm:$0xff]  ;;  %v597_v31 = vld [vmem:[%s8986_s1 + $0x70] sm:$0xff]  ;;  %v616_v32 = vld [vmem:[%s8986_s1 + $0x108] sm:$0xff]  ;;  %p6683_p11 = scmp.ne.s32.totalorder %s8934_s21, %s6682_s27  ;;  %s6688_s11 = scalar_lea.vmem %s6687_s30, 4608 }
  0x1f   : > { %v615_v33 = vld [vmem:[%s8986_s1 + $0x100] sm:$0xff]  ;;  %v618_v34 = vld [vmem:[%s8986_s1 + $0x118] sm:$0xff]  ;;  %v617_v35 = vld [vmem:[%s8986_s1 + $0x110] sm:$0xff]  ;;  %p6689_p0 = scmp.lt.s32.totalorder %s8934_s21, %s6687_s30  ;;  %p6690_p1 = scmp.lt.s32.totalorder %s6688_s11, %s6682_s27 }
  0x20   : > { %v600_v36 = vld [vmem:[%s8986_s1 + $0x88] sm:$0xff]  ;;  %v599_v37 = vld [vmem:[%s8986_s1 + $0x80] sm:$0xff]  ;;  %v602_v38 = vld [vmem:[%s8986_s1 + $0x98] sm:$0xff]  ;;  %p6684_p12 = pnand %p6683_p11, %p6843_p5 }
  0x21   : > { %v601_v39 = vld [vmem:[%s8986_s1 + $0x90] sm:$0xff]  ;;  %v620_v40 = vld [vmem:[%s8986_s1 + $0x128] sm:$0xff]  ;;  %v619_v41 = vld [vmem:[%s8986_s1 + $0x120] sm:$0xff]  ;;  %p6691_p2 = por %p6690_p1, %p6689_p0 }
  0x22   : > { %742 = vperm.xlu1 %6605, %v606_v8   ;;  %737 = vperm.xlu0 %6604, %v605_v9   ;;  %v622_v42 = vld [vmem:[%s8986_s1 + $0x138] sm:$0xff]  ;;  %v621_v43 = vld [vmem:[%s8986_s1 + $0x130] sm:$0xff]  ;;  %v2717_v44 = vld [vmem:[%s8987_s2] sm:$0xff]  ;;  %p6685_p13 = pneg %p6684_p12 }
  0x23   : > { %v623_v45 = vld [vmem:[%s8986_s1 + $0x140] sm:$0xff]  ;;  %v2719_v46 = vld [vmem:[%s8987_s2 + $0x10] sm:$0xff]  ;;  %v2718_v47 = vld [vmem:[%s8987_s2 + $0x8] sm:$0xff] }
  0x24   : > { %v2721_v48 = vld [vmem:[%s8987_s2 + $0x20] sm:$0xff]  ;;  %v2720_v49 = vld [vmem:[%s8987_s2 + $0x18] sm:$0xff]  ;;  %v2723_v50 = vld [vmem:[%s8987_s2 + $0x30] sm:$0xff]  ;;  %p6692_p3 = pnand %p6691_p2, %p6685_p13 }
  0x25   : > { %v2722_v51 = vld [vmem:[%s8987_s2 + $0x28] sm:$0xff]  ;;  %v2725_v52 = vld [vmem:[%s8987_s2 + $0x40] sm:$0xff]  ;;  %v2724_v53 = vld [vmem:[%s8987_s2 + $0x38] sm:$0xff] }
  0x26   : > { %652 = vperm.xlu1 %6605, %v588_v10   ;;  %647 = vperm.xlu0 %6604, %v587_v11   ;;  %v2727_v54 = vld [vmem:[%s8987_s2 + $0x50] sm:$0xff]  ;;  %v2726_v55 = vld [vmem:[%s8987_s2 + $0x48] sm:$0xff]  ;;  %v2729_v56 = vld [vmem:[%s8987_s2 + $0x60] sm:$0xff] }
  0x27   : > { %v2728_v57 = vld [vmem:[%s8987_s2 + $0x58] sm:$0xff]  ;;  %v2731_v58 = vld [vmem:[%s8987_s2 + $0x70] sm:$0xff]  ;;  %v2730_v59 = vld [vmem:[%s8987_s2 + $0x68] sm:$0xff] }
  0x28   : > { %v5434_v60 = vld [vmem:[%s7038_s29 + $0x8] sm:$0xff]   ;;  %v5351_v61 = vld [vmem:[%s7038_s29] sm:$0xff]   ;;  %v2732_v1 = vld [vmem:[%s8987_s2 + $0x78] sm:$0xff] }
  0x29   : > { %v5356_v62 = vunpack.c.l.bf16 %v5434_v60  ;;  %v5352_v63 = vunpack.c.l.bf16 %v5351_v61  ;;  %v2733_v0 = vld [vmem:[%s8987_s2 + $0x80] sm:$0xff]  ;;  %v5357_v3 = vunpack.c.h.bf16 %v5434_v60  ;;  %v5353_v4 = vunpack.c.h.bf16 %v5351_v61  ;;  %v5443_v5 = vld [vmem:[%s7038_s29 + $0x50] sm:$0xff]   ;;  %v624_v9 = vld [vmem:[%s8986_s1 + $0x148] sm:$0xff] }
  0x2a   : > { %662 = vperm.xlu1 %6605, %v590_v12   ;;  %657 = vperm.xlu0 %6604, %v589_v13   ;;  %v7057_v2 = vld [vmem:[%s8988_s3] ss:$0 sm:$0xff]  ;;  %v2734_v10 = vld [vmem:[%s8987_s2 + $0x88] sm:$0xff]  ;;  %v5393_v12 = vunpack.c.h.bf16 %v5443_v5  ;;  %v5444_v16 = vld [vmem:[%s7038_s29 + $0x58] sm:$0xff]  }
  0x2b   : > { %v452_v6 = vmul.f32 %v5356_v62, %v7057_v2  ;;  %v450_v8 = vmul.f32 %v5352_v63, %v7057_v2  ;;  %v7071_v11 = vld [vmem:[%s8989_s4] ss:$0 sm:$0xff]  ;;  %v453_v13 = vmul.f32 %v5357_v3, %v7057_v2  ;;  %v5446_v62 = vld [vmem:[%s7038_s29 + $0x68] sm:$0xff]  }
  0x2d   : > { %v499_v18 = vadd.f32 %v7071_v11, %v450_v8 }
  0x2e   : > { %752 = vperm.xlu1 %6605, %v608_v14   ;;  %747 = vperm.xlu0 %6604, %v607_v15   ;;  %v451_v14 = vmul.f32 %v5353_v4, %v7057_v2  ;;  %v5392_v15 = vunpack.c.l.bf16 %v5443_v5  ;;  %v5405_v5 = vunpack.c.h.bf16 %v5446_v62 }
  0x32   : > { %762 = vperm.xlu1 %6605, %v610_v17   ;;  %757 = vperm.xlu0 %6604, %v609_v19   ;;  %v501_v17 = vadd.f32 %v7071_v11, %v452_v6  ;;  %v471_v19 = vmul.f32 %v5393_v12, %v7057_v2 }
  0x36   : > { %672 = vperm.xlu1 %6605, %v592_v20   ;;  %667 = vperm.xlu0 %6604, %v591_v21   ;;  %v5397_v20 = vunpack.c.h.bf16 %v5444_v16  ;;  %v502_v21 = vadd.f32 %v7071_v11, %v453_v13  ;;  %v5404_v13 = vunpack.c.l.bf16 %v5446_v62 }
  0x3a   : > { %682 = vperm.xlu1 %6605, %v594_v22   ;;  %677 = vperm.xlu0 %6604, %v593_v23   ;;  %v500_v22 = vadd.f32 %v7071_v11, %v451_v14  ;;  %v470_v23 = vmul.f32 %v5392_v15, %v7057_v2  ;;  %v5066_v14 = vld [vmem:[%s8992_s7 + $0x4] sm:$0x3] }
  0x3e   : > { %772 = vperm.xlu1 %6605, %v612_v24   ;;  %767 = vperm.xlu0 %6604, %v611_v25   ;;  %v5396_v24 = vunpack.c.l.bf16 %v5444_v16  ;;  %v543_v25 = vmax.f32 %v501_v17, 0.0 }
  0x42   : > { %782 = vperm.xlu1 %6605, %v614_v26   ;;  %777 = vperm.xlu0 %6604, %v613_v27   ;;  %v541_v26 = vmax.f32 %v499_v18, 0.0  ;;  %v5435_v27 = vld [vmem:[%s7038_s29 + $0x10] sm:$0xff]  }
  0x46   : > { %692 = vperm.xlu1 %6605, %v596_v28   ;;  %687 = vperm.xlu0 %6604, %v595_v29   ;;  %v520_v28 = vadd.f32 %v7071_v11, %v471_v19  ;;  %v473_v29 = vmul.f32 %v5397_v20, %v7057_v2  ;;  %v5437_v19 = vld [vmem:[%s7038_s29 + $0x20] sm:$0xff]  }
  0x4a   : > { %702 = vperm.xlu1 %6605, %v598_v30   ;;  %697 = vperm.xlu0 %6604, %v597_v31  }
  0x4e   : > { %792 = vperm.xlu1 %6605, %v616_v32   ;;  %787 = vperm.xlu0 %6604, %v615_v33   ;;  %v544_v32 = vmax.f32 %v502_v21, 0.0  ;;  %v542_v33 = vmax.f32 %v500_v22, 0.0 }
  0x52   : > { %802 = vperm.xlu1 %6605, %v618_v34   ;;  %797 = vperm.xlu0 %6604, %v617_v35   ;;  %v519_v34 = vadd.f32 %v7071_v11, %v470_v23  ;;  %v472_v35 = vmul.f32 %v5396_v24, %v7057_v2  ;;  %v477_v24 = vmul.f32 %v5405_v5, %v7057_v2 }
  0x56   : > { %712 = vperm.xlu1 %6605, %v600_v36   ;;  %707 = vperm.xlu0 %6604, %v599_v37  }
  0x5a   : > { %722 = vperm.xlu1 %6605, %v602_v38   ;;  %717 = vperm.xlu0 %6604, %v601_v39   ;;  %v5361_v38 = vunpack.c.h.bf16 %v5435_v27  ;;  %v5360_v39 = vunpack.c.l.bf16 %v5435_v27 }
  0x5e   : > { %812 = vperm.xlu1 %6605, %v620_v40   ;;  %807 = vperm.xlu0 %6604, %v619_v41   ;;  %v5436_v40 = vld [vmem:[%s7038_s29 + $0x18] sm:$0xff]   ;;  %v562_v41 = vmax.f32 %v520_v28, 0.0 }
  0x62   : > { %822 = vperm.xlu1 %6605, %v622_v42   ;;  %817 = vperm.xlu0 %6604, %v621_v43   ;;  %v522_v42 = vadd.f32 %v7071_v11, %v473_v29 }
  0x66   : > { %2737 = vperm.xlu1 %6605, %v2717_v44   ;;  %827 = vperm.xlu0 %6604, %v623_v45   ;;  %v561_v45 = vmax.f32 %v519_v34, 0.0  ;;  %v476_v34 = vmul.f32 %v5404_v13, %v7057_v2 }
  0x6a   : > { %2747 = vperm.xlu1 %6605, %v2719_v46   ;;  %2742 = vperm.xlu0 %6604, %v2718_v47   ;;  %v521_v46 = vadd.f32 %v7071_v11, %v472_v35  ;;  %v5365_v47 = vunpack.c.h.bf16 %v5436_v40  ;;  %v5368_v35 = vunpack.c.l.bf16 %v5437_v19 }
  0x6e   : > { %2757 = vperm.xlu1 %6605, %v2721_v48   ;;  %2752 = vperm.xlu0 %6604, %v2720_v49   ;;  %v5364_v48 = vunpack.c.l.bf16 %v5436_v40  ;;  %v5445_v49 = vld [vmem:[%s7038_s29 + $0x60] sm:$0xff]  }
  0x6f   : > { %v5400_v61 = vunpack.c.l.bf16 %v5445_v49 }
  0x70   : > { %v456_v60 = vmul.f32 %v5364_v48, %v7057_v2 }
  0x71   : > { %v474_v12 = vmul.f32 %v5400_v61, %v7057_v2 }
  0x72   : > { %2767 = vperm.xlu1 %6605, %v2723_v50   ;;  %2762 = vperm.xlu0 %6604, %v2722_v51  }
  0x76   : > { %2777 = vperm.xlu1 %6605, %v2725_v52   ;;  %2772 = vperm.xlu0 %6604, %v2724_v53   ;;  %v455_v52 = vmul.f32 %v5361_v38, %v7057_v2  ;;  %v454_v53 = vmul.f32 %v5360_v39, %v7057_v2  ;;  %v526_v38 = vadd.f32 %v7071_v11, %v477_v24 }
  0x78   : > { %v503_v3 = vadd.f32 %v7071_v11, %v454_v53 }
  0x7a   : > { %2787 = vperm.xlu1 %6605, %v2727_v54   ;;  %2782 = vperm.xlu0 %6604, %v2726_v55   ;;  %v564_v54 = vmax.f32 %v522_v42, 0.0  ;;  %v5401_v55 = vunpack.c.h.bf16 %v5445_v49  ;;  %v545_v18 = vmax.f32 %v503_v3, 0.0  ;;  %v525_v49 = vadd.f32 %v7071_v11, %v476_v34 }
  0x7c   : > { %v475_v4 = vmul.f32 %v5401_v55, %v7057_v2  ;;  %v567_v3 = vmax.f32 %v525_v49, 0.0 }
  0x7e   : > { %2797 = vperm.xlu1 %6605, %v2729_v56   ;;  %2792 = vperm.xlu0 %6604, %v2728_v57   ;;  %v524_v23 = vadd.f32 %v7071_v11, %v475_v4 }
  0x82   : > { %2807 = vperm.xlu1 %6605, %v2731_v58   ;;  %2802 = vperm.xlu0 %6604, %v2730_v59   ;;  %v563_v58 = vmax.f32 %v521_v46, 0.0  ;;  %v457_v59 = vmul.f32 %v5365_v47, %v7057_v2  ;;  %v964_v46 = vld [vmem:[%s8992_s7] sm:$0x3] }
  0x86   : > { %2817 = vperm.xlu1 %6605, %v2733_v0   ;;  %2812 = vperm.xlu0 %6604, %v2732_v1   ;;  %v504_v1 = vadd.f32 %v7071_v11, %v455_v52 }
  0x88   : > { %v546_v17 = vmax.f32 %v504_v1, 0.0 }
  0x8a   : > { %832 = vperm.xlu1 %6605, %v624_v9   ;;  %2822 = vperm.xlu0 %6604, %v2734_v10   ;;  %v506_v9 = vadd.f32 %v7071_v11, %v457_v59  ;;  %v505_v10 = vadd.f32 %v7071_v11, %v456_v60 }
  0x8c   : > { %v548_v28 = vmax.f32 %v506_v9, 0.0  ;;  %v547_v29 = vmax.f32 %v505_v10, 0.0 }
  0x91   : > { %v638_v30 = vpop.permute.xlu1 %637  ;;  %v628_v31 = vpop.permute.xlu0 %627 }
  0x92   : > { %v837_v36 = vmul.f32 %v638_v30, %v543_v25  ;;  %v835_v37 = vmul.f32 %v628_v31, %v541_v26  ;;  %v1358_v25 = vsel %vm1039_vm1, %v5066_v14, 0  ;;  %v523_v30 = vadd.f32 %v7071_v11, %v474_v12 }
  0x93   : > { %v5369_v31 = vunpack.c.h.bf16 %v5437_v19 }
  0x94   : > { %880 = vst.msk [vmem:[#allocation2 + $0x10] sm:$0xff] %vm877_vm2, %v837_v36  ;;  %878 = vst.msk [vmem:[#allocation2] sm:$0xff] %vm877_vm2, %v835_v37  ;;  %v5438_v36 = vld [vmem:[%s7038_s29 + $0x28] sm:$0xff]   ;;  %v566_v37 = vmax.f32 %v524_v23, 0.0 }
  0x95   : > { %v643_v43 = vpop.permute.xlu1 %642  ;;  %v633_v44 = vpop.permute.xlu0 %632  ;;  %v459_v42 = vmul.f32 %v5369_v31, %v7057_v2 }
  0x96   : > { %v838_v50 = vmul.f32 %v643_v43, %v544_v32  ;;  %v836_v51 = vmul.f32 %v633_v44, %v542_v33  ;;  %v5373_v43 = vunpack.c.h.bf16 %v5438_v36  ;;  %v5372_v44 = vunpack.c.l.bf16 %v5438_v36 }
  0x97   : > { %v508_v59 = vadd.f32 %v7071_v11, %v459_v42 }
  0x98   : > { %881 = vst.msk [vmem:[#allocation2 + $0x18] sm:$0xff] %vm877_vm2, %v838_v50  ;;  %879 = vst.msk [vmem:[#allocation2 + $0x8] sm:$0xff] %vm877_vm2, %v836_v51  ;;  %v458_v50 = vmul.f32 %v5368_v35, %v7057_v2  ;;  %v461_v60 = vmul.f32 %v5373_v43, %v7057_v2  ;;  %v460_v61 = vmul.f32 %v5372_v44, %v7057_v2  ;;  %v5440_v35 = vld [vmem:[%s7038_s29 + $0x38] sm:$0xff]   ;;  %v5449_v44 = vld [vmem:[%s7038_s29 + $0x80] sm:$0xff]  }
  0x99   : > { %v733_v56 = vpop.permute.xlu1 %732  ;;  %v728_v57 = vpop.permute.xlu0 %727  ;;  %v550_v10 = vmax.f32 %v508_v59, 0.0  ;;  %v5381_v42 = vunpack.c.h.bf16 %v5440_v35  ;;  %v5380_v43 = vunpack.c.l.bf16 %v5440_v35  ;;  %v5416_v59 = vunpack.c.l.bf16 %v5449_v44 }
  0x9a   : > { %v856_v63 = vmul.f32 %v733_v56, %v562_v41  ;;  %v855_v0 = vmul.f32 %v728_v57, %v561_v45  ;;  %v565_v41 = vmax.f32 %v523_v30, 0.0  ;;  %v5447_v45 = vld [vmem:[%s7038_s29 + $0x70] sm:$0xff]   ;;  %v1176_v56 = vsel %vm1039_vm1, %v964_v46, 0 }
  0x9b   : > { %v5409_v55 = vunpack.c.h.bf16 %v5447_v45  ;;  %v5408_v62 = vunpack.c.l.bf16 %v5447_v45  ;;  %v507_v4 = vadd.f32 %v7071_v11, %v458_v50  ;;  %v510_v12 = vadd.f32 %v7071_v11, %v461_v60 }
  0x9c   : > { %899 = vst.msk [vmem:[#allocation2 + $0xa8] sm:$0xff] %vm877_vm2, %v856_v63  ;;  %898 = vst.msk [vmem:[#allocation2 + $0xa0] sm:$0xff] %vm877_vm2, %v855_v0  ;;  %v5448_v63 = vld [vmem:[%s7038_s29 + $0x78] sm:$0xff]   ;;  %v509_v13 = vadd.f32 %v7071_v11, %v460_v61 }
  0x9d   : > { %v743_v6 = vpop.permute.xlu1 %742  ;;  %v738_v8 = vpop.permute.xlu0 %737  ;;  %v479_v5 = vmul.f32 %v5409_v55, %v7057_v2  ;;  %v478_v14 = vmul.f32 %v5408_v62, %v7057_v2  ;;  %v5412_v19 = vunpack.c.l.bf16 %v5448_v63 }
  0x9e   : > { %v858_v15 = vmul.f32 %v743_v6, %v564_v54  ;;  %v857_v16 = vmul.f32 %v738_v8, %v563_v58  ;;  %v568_v54 = vmax.f32 %v526_v38, 0.0  ;;  %v5413_v6 = vunpack.c.h.bf16 %v5448_v63 }
  0x9f   : > { %v966_v20 = vld [vmem:[#allocation2 + $0x1] ss:$2 sm:$0xff]  ;;  %v968_v21 = vld [vmem:[#allocation2 + $0x11] ss:$2 sm:$0xff]  ;;  %v527_v30 = vadd.f32 %v7071_v11, %v478_v14 }
  0xa0   : > { %901 = vst.msk [vmem:[#allocation2 + $0xb8] sm:$0xff] %vm877_vm2, %v858_v15  ;;  %900 = vst.msk [vmem:[#allocation2 + $0xb0] sm:$0xff] %vm877_vm2, %v857_v16  ;;  %v1001_v22 = vpack.c.bf16 %v968_v21, %v966_v20  ;;  %v5439_v15 = vld [vmem:[%s7038_s29 + $0x30] sm:$0xff]   ;;  %v481_v23 = vmul.f32 %v5413_v6, %v7057_v2 }
  0xa1   : > { %v653_v26 = vpop.permute.xlu1 %652  ;;  %v648_v27 = vpop.permute.xlu0 %647  ;;  %v5377_v24 = vunpack.c.h.bf16 %v5439_v15  ;;  %v5376_v34 = vunpack.c.l.bf16 %v5439_v15 }
  0xa2   : > { %v840_v32 = vmul.f32 %v653_v26, %v546_v17  ;;  %v839_v33 = vmul.f32 %v648_v27, %v545_v18  ;;  %5710 = vmatmul.mubr.msk.bf16.vlgmr.msra.gmra.mxu0 %vm877_vm2, %v1001_v22  ;;  %v549_v18 = vmax.f32 %v507_v4, 0.0  ;;  %v552_v27 = vmax.f32 %v510_v12, 0.0  ;;  %v5441_v12 = vld [vmem:[%s7038_s29 + $0x40] sm:$0xff]  }
  0xa3   : > { %5713 = vmatprep.mubr.msk.bf16.mxu0 %vm6746_vm0, %v6745_v7  ;;  %5784 = vmatpush3.bf16.msra.mxu0 %v1358_v25  ;;  %v986_v51 = vld [vmem:[#allocation2 + $0xa1] ss:$2 sm:$0xff]  ;;  %v530_v36 = vadd.f32 %v7071_v11, %v481_v23 }
  0xa4   : > { %883 = vst.msk [vmem:[#allocation2 + $0x28] sm:$0xff] %vm877_vm2, %v840_v32  ;;  %882 = vst.msk [vmem:[#allocation2 + $0x20] sm:$0xff] %vm877_vm2, %v839_v33  ;;  %5859 = vmatprep.subr.bf16.mxu0 %v6745_v7  ;;  %v480_v33 = vmul.f32 %v5412_v19, %v7057_v2 }
  0xa5   : > { %v663_v39 = vpop.permute.xlu1 %662  ;;  %v658_v40 = vpop.permute.xlu0 %657 }
  0xa6   : > { %v842_v47 = vmul.f32 %v663_v39, %v548_v28  ;;  %v841_v48 = vmul.f32 %v658_v40, %v547_v29  ;;  %v551_v28 = vmax.f32 %v509_v13, 0.0  ;;  %v528_v29 = vadd.f32 %v7071_v11, %v479_v5 }
  0xa7   : > { %v988_v52 = vld [vmem:[#allocation2 + $0xb1] ss:$2 sm:$0xff] }
  0xa8   : > { %885 = vst.msk [vmem:[#allocation2 + $0x38] sm:$0xff] %vm877_vm2, %v842_v47  ;;  %884 = vst.msk [vmem:[#allocation2 + $0x30] sm:$0xff] %vm877_vm2, %v841_v48  ;;  %v1006_v53 = vpack.c.bf16 %v988_v52, %v986_v51  ;;  %v570_v40 = vmax.f32 %v528_v29, 0.0  ;;  %v529_v47 = vadd.f32 %v7071_v11, %v480_v33  ;;  %v462_v48 = vmul.f32 %v5376_v34, %v7057_v2 }
  0xa9   : > { %v753_v57 = vpop.permute.xlu1 %752  ;;  %v748_v58 = vpop.permute.xlu0 %747 }
  0xaa   : > { %v860_v0 = vmul.f32 %v753_v57, %v566_v37  ;;  %v859_v1 = vmul.f32 %v748_v58, %v565_v41  ;;  %5730 = vmatmul.mubr.msk.bf16.vlgmr.msra.gmra.mxu1 %vm877_vm2, %v1006_v53  ;;  %v463_v37 = vmul.f32 %v5377_v24, %v7057_v2  ;;  %v569_v41 = vmax.f32 %v527_v30, 0.0 }
  0xab   : > { %5733 = vmatprep.mubr.msk.bf16.mxu1 %vm6746_vm0, %v6745_v7  ;;  %5746 = vmatpush3.bf16.msra.mxu1 %v1176_v56  ;;  %v970_v20 = vld [vmem:[#allocation2 + $0x21] ss:$2 sm:$0xff]  ;;  %v5417_v53 = vunpack.c.h.bf16 %v5449_v44  ;;  %v572_v56 = vmax.f32 %v530_v36, 0.0  ;;  %v465_v57 = vmul.f32 %v5381_v42, %v7057_v2  ;;  %v464_v58 = vmul.f32 %v5380_v43, %v7057_v2 }
  0xac   : > { %903 = vst.msk [vmem:[#allocation2 + $0xc8] sm:$0xff] %vm877_vm2, %v860_v0  ;;  %902 = vst.msk [vmem:[#allocation2 + $0xc0] sm:$0xff] %vm877_vm2, %v859_v1  ;;  %5821 = vmatprep.subr.bf16.mxu1 %v6745_v7  ;;  %v512_v52 = vadd.f32 %v7071_v11, %v463_v37  ;;  %v571_v62 = vmax.f32 %v529_v47, 0.0  ;;  %v511_v63 = vadd.f32 %v7071_v11, %v462_v48  ;;  %v5450_v0 = vld [vmem:[%s7038_s29 + $0x88] sm:$0xff]  }
  0xad   : > { %v763_v8 = vpop.permute.xlu1 %762  ;;  %v758_v9 = vpop.permute.xlu0 %757  ;;  %v514_v6 = vadd.f32 %v7071_v11, %v465_v57  ;;  %v5420_v15 = vunpack.c.l.bf16 %v5450_v0 }
  0xae   : > { %v862_v16 = vmul.f32 %v763_v8, %v568_v54  ;;  %v861_v17 = vmul.f32 %v758_v9, %v567_v3  ;;  %v554_v1 = vmax.f32 %v512_v52, 0.0  ;;  %v483_v3 = vmul.f32 %v5417_v53, %v7057_v2 }
  0xaf   : > { %v972_v21 = vld [vmem:[#allocation2 + $0x31] ss:$2 sm:$0xff]  ;;  %v513_v8 = vadd.f32 %v7071_v11, %v464_v58  ;;  %v482_v9 = vmul.f32 %v5416_v59, %v7057_v2  ;;  %v556_v23 = vmax.f32 %v514_v6, 0.0  ;;  %v484_v30 = vmul.f32 %v5420_v15, %v7057_v2 }
  0xb0   : > { %905 = vst.msk [vmem:[#allocation2 + $0xd8] sm:$0xff] %vm877_vm2, %v862_v16  ;;  %904 = vst.msk [vmem:[#allocation2 + $0xd0] sm:$0xff] %vm877_vm2, %v861_v17  ;;  %v1002_v22 = vpack.c.bf16 %v972_v21, %v970_v20  ;;  %v532_v19 = vadd.f32 %v7071_v11, %v483_v3  ;;  %v5385_v20 = vunpack.c.h.bf16 %v5441_v12 }
  0xb1   : > { %v673_v25 = vpop.permute.xlu1 %672  ;;  %v668_v26 = vpop.permute.xlu0 %667  ;;  %v555_v24 = vmax.f32 %v513_v8, 0.0  ;;  %v533_v43 = vadd.f32 %v7071_v11, %v484_v30 }
  0xb2   : > { %v844_v31 = vmul.f32 %v673_v25, %v550_v10  ;;  %v843_v32 = vmul.f32 %v668_v26, %v549_v18  ;;  %5714 = vmatmul.mubr.msk.bf16.gmra.mxu0 %vm877_vm2, %v1002_v22  ;;  %v5421_v10 = vunpack.c.h.bf16 %v5450_v0  ;;  %v531_v25 = vadd.f32 %v7071_v11, %v482_v9 }
  0xb3   : > { %5717 = vmatprep.mubr.msk.bf16.mxu0 %vm6746_vm0, %v6745_v7  ;;  %v990_v49 = vld [vmem:[#allocation2 + $0xc1] ss:$2 sm:$0xff]  ;;  %v467_v33 = vmul.f32 %v5385_v20, %v7057_v2  ;;  %v574_v37 = vmax.f32 %v532_v19, 0.0  ;;  %v575_v59 = vmax.f32 %v533_v43, 0.0 }
  0xb4   : > { %887 = vst.msk [vmem:[#allocation2 + $0x48] sm:$0xff] %vm877_vm2, %v844_v31  ;;  %886 = vst.msk [vmem:[#allocation2 + $0x40] sm:$0xff] %vm877_vm2, %v843_v32  ;;  %v485_v26 = vmul.f32 %v5421_v10, %v7057_v2  ;;  %v5384_v31 = vunpack.c.l.bf16 %v5441_v12  ;;  %v7195_v32 = vld [vmem:[#allocation3] sm:$0xff] }
  0xb5   : > { %v683_v38 = vpop.permute.xlu1 %682  ;;  %v678_v39 = vpop.permute.xlu0 %677 }
  0xb6   : > { %v846_v45 = vmul.f32 %v683_v38, %v552_v27  ;;  %v845_v46 = vmul.f32 %v678_v39, %v551_v28  ;;  %v5442_v27 = vld [vmem:[%s7038_s29 + $0x48] sm:$0xff]   ;;  %v573_v38 = vmax.f32 %v531_v25, 0.0  ;;  %v534_v39 = vadd.f32 %v7071_v11, %v485_v26 }
  0xb7   : > { %v992_v50 = vld [vmem:[#allocation2 + $0xd1] ss:$2 sm:$0xff]  ;;  %v5389_v34 = vunpack.c.h.bf16 %v5442_v27  ;;  %v466_v44 = vmul.f32 %v5384_v31, %v7057_v2 }
  0xb8   : > { %889 = vst.msk [vmem:[#allocation2 + $0x58] sm:$0xff] %vm877_vm2, %v846_v45  ;;  %888 = vst.msk [vmem:[#allocation2 + $0x50] sm:$0xff] %vm877_vm2, %v845_v46  ;;  %v1007_v51 = vpack.c.bf16 %v992_v50, %v990_v49  ;;  %v5451_v45 = vld [vmem:[%s7038_s29 + $0x90] sm:$0xff]   ;;  %v516_v49 = vadd.f32 %v7071_v11, %v467_v33  ;;  %v576_v53 = vmax.f32 %v534_v39, 0.0 }
  0xb9   : > { %v773_v54 = vpop.permute.xlu1 %772  ;;  %v768_v55 = vpop.permute.xlu0 %767  ;;  %v469_v50 = vmul.f32 %v5389_v34, %v7057_v2 }
  0xba   : > { %v864_v60 = vmul.f32 %v773_v54, %v570_v40  ;;  %v863_v61 = vmul.f32 %v768_v55, %v569_v41  ;;  %5734 = vmatmul.mubr.msk.bf16.gmra.mxu1 %vm877_vm2, %v1007_v51  ;;  %v5388_v40 = vunpack.c.l.bf16 %v5442_v27  ;;  %v5425_v55 = vunpack.c.h.bf16 %v5451_v45 }
  0xbb   : > { %5737 = vmatprep.mubr.msk.bf16.mxu1 %vm6746_vm0, %v6745_v7  ;;  %v553_v7 = vmax.f32 %v511_v63, 0.0  ;;  %v974_v16 = vld [vmem:[#allocation2 + $0x41] ss:$2 sm:$0xff]  ;;  %v518_v63 = vadd.f32 %v7071_v11, %v469_v50 }
  0xbc   : > { %907 = vst.msk [vmem:[#allocation2 + $0xe8] sm:$0xff] %vm877_vm2, %v864_v60  ;;  %906 = vst.msk [vmem:[#allocation2 + $0xe0] sm:$0xff] %vm877_vm2, %v863_v61  ;;  %v468_v54 = vmul.f32 %v5388_v40, %v7057_v2  ;;  %v515_v60 = vadd.f32 %v7071_v11, %v466_v44  ;;  %v5452_v61 = vld [vmem:[%s7038_s29 + $0x98] sm:$0xff]   ;;  %v5076_v50 = vld [vmem:[%s8992_s7 + $0x6] sm:$0x3] }
  0xbd   : > { %v783_v4 = vpop.permute.xlu1 %782  ;;  %v778_v5 = vpop.permute.xlu0 %777  ;;  %v5429_v6 = vunpack.c.h.bf16 %v5452_v61  ;;  %v5428_v12 = vunpack.c.l.bf16 %v5452_v61 }
  0xbe   : > { %v866_v13 = vmul.f32 %v783_v4, %v572_v56  ;;  %v865_v14 = vmul.f32 %v778_v5, %v571_v62  ;;  %v5424_v56 = vunpack.c.l.bf16 %v5451_v45  ;;  %v558_v62 = vmax.f32 %v516_v49, 0.0  ;;  %v922_v49 = vld [vmem:[#allocation2 + $0x10] ss:$2 sm:$0xff] }
  0xbf   : > { %v976_v17 = vld [vmem:[#allocation2 + $0x51] ss:$2 sm:$0xff]  ;;  %v517_v3 = vadd.f32 %v7071_v11, %v468_v54  ;;  %v487_v4 = vmul.f32 %v5425_v55, %v7057_v2  ;;  %v557_v10 = vmax.f32 %v515_v60, 0.0  ;;  %v488_v25 = vmul.f32 %v5428_v12, %v7057_v2  ;;  %v1290_v12 = vld [vmem:[#allocation2 + $0x32] ss:$2 sm:$0xff] }
  0xc0   : > { %909 = vst.msk [vmem:[#allocation2 + $0xf8] sm:$0xff] %vm877_vm2, %v866_v13  ;;  %908 = vst.msk [vmem:[#allocation2 + $0xf0] sm:$0xff] %vm877_vm2, %v865_v14  ;;  %v1003_v18 = vpack.c.bf16 %v976_v17, %v974_v16  ;;  %v486_v5 = vmul.f32 %v5424_v56, %v7057_v2  ;;  %v560_v16 = vmax.f32 %v518_v63, 0.0  ;;  %v1286_v63 = vld [vmem:[#allocation2 + $0x12] ss:$2 sm:$0xff] }
  0xc1   : > { %v693_v21 = vpop.permute.xlu1 %692  ;;  %v688_v22 = vpop.permute.xlu0 %687  ;;  %v559_v19 = vmax.f32 %v517_v3, 0.0  ;;  %v536_v20 = vadd.f32 %v7071_v11, %v487_v4  ;;  %v1284_v3 = vld [vmem:[#allocation2 + $0x2] ss:$2 sm:$0xff] }
  0xc2   : > { %v848_v28 = vmul.f32 %v693_v21, %v554_v1  ;;  %v847_v29 = vmul.f32 %v688_v22, %v553_v7  ;;  %5718 = vmatmul.mubr.msk.bf16.gmra.mxu0 %vm877_vm2, %v1003_v18  ;;  %v5453_v7 = vld [vmem:[%s7038_s29 + $0xa0] sm:$0xff]   ;;  %v535_v21 = vadd.f32 %v7071_v11, %v486_v5  ;;  %v489_v22 = vmul.f32 %v5429_v6, %v7057_v2 }
  0xc3   : > { %5721 = vmatprep.mubr.msk.bf16.mxu0 %vm6746_vm0, %v7195_v32  ;;  %v994_v46 = vld [vmem:[#allocation2 + $0xe1] ss:$2 sm:$0xff]  ;;  %v5432_v26 = vunpack.c.l.bf16 %v5453_v7  ;;  %v1319_v5 = vpack.c.bf16 %v1286_v63, %v1284_v3  ;;  %v1483_v63 = vld [vmem:[#allocation2 + $0x12] ss:$2 sm:$0xff] }
  0xc4   : > { %891 = vst.msk [vmem:[#allocation2 + $0x68] sm:$0xff] %vm877_vm2, %v848_v28  ;;  %890 = vst.msk [vmem:[#allocation2 + $0x60] sm:$0xff] %vm877_vm2, %v847_v29  ;;  %v578_v29 = vmax.f32 %v536_v20, 0.0  ;;  %v577_v30 = vmax.f32 %v535_v21, 0.0  ;;  %v538_v31 = vadd.f32 %v7071_v11, %v489_v22  ;;  %v1292_v21 = vld [vmem:[#allocation2 + $0x42] ss:$2 sm:$0xff] }
  0xc5   : > { %v703_v35 = vpop.permute.xlu1 %702  ;;  %v698_v36 = vpop.permute.xlu0 %697 }
  0xc6   : > { %v850_v41 = vmul.f32 %v703_v35, %v556_v23  ;;  %v849_v42 = vmul.f32 %v698_v36, %v555_v24  ;;  %v537_v35 = vadd.f32 %v7071_v11, %v488_v25  ;;  %v490_v36 = vmul.f32 %v5432_v26, %v7057_v2 }
  0xc7   : > { %v996_v47 = vld [vmem:[#allocation2 + $0xf1] ss:$2 sm:$0xff] }
  0xc8   : > { %893 = vst.msk [vmem:[#allocation2 + $0x78] sm:$0xff] %vm877_vm2, %v850_v41  ;;  %892 = vst.msk [vmem:[#allocation2 + $0x70] sm:$0xff] %vm877_vm2, %v849_v42  ;;  %v1008_v48 = vpack.c.bf16 %v996_v47, %v994_v46  ;;  %v580_v42 = vmax.f32 %v538_v31, 0.0  ;;  %v579_v45 = vmax.f32 %v537_v35, 0.0  ;;  %v539_v46 = vadd.f32 %v7071_v11, %v490_v36  ;;  %v942_v35 = vld [vmem:[#allocation2 + $0xb0] ss:$2 sm:$0xff] }
  0xc9   : > { %v793_v51 = vpop.permute.xlu1 %792  ;;  %v788_v52 = vpop.permute.xlu0 %787 }
  0xca   : > { %v868_v57 = vmul.f32 %v793_v51, %v574_v37  ;;  %v867_v58 = vmul.f32 %v788_v52, %v573_v38  ;;  %5738 = vmatmul.mubr.msk.bf16.gmra.mxu1 %vm877_vm2, %v1008_v48  ;;  %v920_v48 = vld [vmem:[#allocation2] ss:$2 sm:$0xff] }
  0xcb   : > { %5741 = vmatprep.mubr.msk.bf16.mxu1 %vm6746_vm0, %v7195_v32  ;;  %v978_v13 = vld [vmem:[#allocation2 + $0x61] ss:$2 sm:$0xff]  ;;  %v955_v56 = vpack.c.bf16 %v922_v49, %v920_v48  ;;  %v932_v20 = vld [vmem:[#allocation2 + $0x60] ss:$2 sm:$0xff] }
  0xcc   : > { %911 = vst.msk [vmem:[#allocation2 + $0x108] sm:$0xff] %vm877_vm2, %v868_v57  ;;  %910 = vst.msk [vmem:[#allocation2 + $0x100] sm:$0xff] %vm877_vm2, %v867_v58  ;;  %v1541_v57 = vsel %vm1039_vm1, %v5076_v50, 0  ;;  %v948_v48 = vld [vmem:[#allocation2 + $0xe0] ss:$2 sm:$0xff] }
  0xcd   : > { %v803_v0 = vpop.permute.xlu1 %802  ;;  %v798_v1 = vpop.permute.xlu0 %797  ;;  %v1308_v49 = vld [vmem:[#allocation2 + $0xc2] ss:$2 sm:$0xff] }
  0xce   : > { %v870_v8 = vmul.f32 %v803_v0, %v576_v53  ;;  %v869_v9 = vmul.f32 %v798_v1, %v575_v59  ;;  %v581_v53 = vmax.f32 %v539_v46, 0.0  ;;  %v5086_v0 = vld [vmem:[%s8992_s7 + $0x8] sm:$0x3] }
  0xcf   : > { %v980_v14 = vld [vmem:[#allocation2 + $0x71] ss:$2 sm:$0xff]  ;;  %v924_v1 = vld [vmem:[#allocation2 + $0x20] ss:$2 sm:$0xff]  ;;  %v1741_v6 = vsel %vm1039_vm1, %v5086_v0, 0 }
  0xd0   : > { %913 = vst.msk [vmem:[#allocation2 + $0x118] sm:$0xff] %vm877_vm2, %v870_v8  ;;  %912 = vst.msk [vmem:[#allocation2 + $0x110] sm:$0xff] %vm877_vm2, %v869_v9  ;;  %v1004_v15 = vpack.c.bf16 %v980_v14, %v978_v13  ;;  %v928_v13 = vld [vmem:[#allocation2 + $0x40] ss:$2 sm:$0xff] }
  0xd1   : > { %v713_v17 = vpop.permute.xlu1 %712  ;;  %v708_v18 = vpop.permute.xlu0 %707  ;;  %v1288_v14 = vld [vmem:[#allocation2 + $0x22] ss:$2 sm:$0xff] }
  0xd2   : > { %v852_v23 = vmul.f32 %v713_v17, %v558_v62  ;;  %v851_v24 = vmul.f32 %v708_v18, %v557_v10  ;;  %5722 = vmatmul.mubr.msk.bf16.gmra.mxu0 %vm877_vm2, %v1004_v15  ;;  %v926_v62 = vld [vmem:[#allocation2 + $0x30] ss:$2 sm:$0xff]  ;;  %v1320_v15 = vpack.c.bf16 %v1290_v12, %v1288_v14  ;;  %v1667_v12 = vld [vmem:[#allocation2 + $0x13] ss:$2 sm:$0xff] }
  0xd3   : > { %5725 = vmatprep.mubr.msk.bf16.mxu0 %vm6746_vm0, %v7195_v32  ;;  %v998_v37 = vld [vmem:[#allocation2 + $0x101] ss:$2 sm:$0xff]  ;;  %v956_v4 = vpack.c.bf16 %v926_v62, %v924_v1  ;;  %v930_v10 = vld [vmem:[#allocation2 + $0x50] ss:$2 sm:$0xff] }
  0xd4   : > { %895 = vst.msk [vmem:[#allocation2 + $0x88] sm:$0xff] %vm877_vm2, %v852_v23  ;;  %894 = vst.msk [vmem:[#allocation2 + $0x80] sm:$0xff] %vm877_vm2, %v851_v24  ;;  %v957_v7 = vpack.c.bf16 %v930_v10, %v928_v13  ;;  %v934_v18 = vld [vmem:[#allocation2 + $0x70] ss:$2 sm:$0xff] }
  0xd5   : > { %v723_v27 = vpop.permute.xlu1 %722  ;;  %v718_v28 = vpop.permute.xlu0 %717  ;;  %v958_v22 = vpack.c.bf16 %v934_v18, %v932_v20  ;;  %v1485_v10 = vld [vmem:[#allocation2 + $0x32] ss:$2 sm:$0xff]  ;;  %v1673_v18 = vld [vmem:[#allocation2 + $0x43] ss:$2 sm:$0xff]  ;;  %v1671_v20 = vld [vmem:[#allocation2 + $0x33] ss:$2 sm:$0xff] }
  0xd6   : > { %v854_v33 = vmul.f32 %v723_v27, %v560_v16  ;;  %v853_v34 = vmul.f32 %v718_v28, %v559_v19  ;;  %v1294_v19 = vld [vmem:[#allocation2 + $0x52] ss:$2 sm:$0xff] }
  0xd7   : > { %v1000_v38 = vld [vmem:[#allocation2 + $0x111] ss:$2 sm:$0xff]  ;;  %v1321_v23 = vpack.c.bf16 %v1294_v19, %v1292_v21  ;;  %v1316_v62 = vld [vmem:[#allocation2 + $0x102] ss:$2 sm:$0xff]  ;;  %v1487_v19 = vld [vmem:[#allocation2 + $0x52] ss:$2 sm:$0xff] }
  0xd8   : > { %897 = vst.msk [vmem:[#allocation2 + $0x98] sm:$0xff] %vm877_vm2, %v854_v33  ;;  %896 = vst.msk [vmem:[#allocation2 + $0x90] sm:$0xff] %vm877_vm2, %v853_v34  ;;  %v1009_v39 = vpack.c.bf16 %v1000_v38, %v998_v37  ;;  %v940_v38 = vld [vmem:[#allocation2 + $0xa0] ss:$2 sm:$0xff] }
  0xd9   : > { %v813_v40 = vpop.permute.xlu1 %812  ;;  %v808_v41 = vpop.permute.xlu0 %807 }
  0xda   : > { %v872_v43 = vmul.f32 %v813_v40, %v578_v29  ;;  %v871_v44 = vmul.f32 %v808_v41, %v577_v30  ;;  %5742 = vmatmul.mubr.msk.bf16.gmra.mxu1 %vm877_vm2, %v1009_v39  ;;  %v1296_v29 = vld [vmem:[#allocation2 + $0x62] ss:$2 sm:$0xff]  ;;  %v960_v39 = vpack.c.bf16 %v942_v35, %v940_v38 }
  0xdb   : > { %5747 = vmatprep.mubr.msk.bf16.mxu1 %vm6746_vm0, %v7195_v32  ;;  %v982_v54 = vld [vmem:[#allocation2 + $0x81] ss:$2 sm:$0xff]  ;;  %v1298_v27 = vld [vmem:[#allocation2 + $0x72] ss:$2 sm:$0xff]  ;;  %v1492_v35 = vld [vmem:[#allocation2 + $0xa2] ss:$2 sm:$0xff] }
  0xdc   : > { %915 = vst.msk [vmem:[#allocation2 + $0x128] sm:$0xff] %vm877_vm2, %v872_v43  ;;  %914 = vst.msk [vmem:[#allocation2 + $0x120] sm:$0xff] %vm877_vm2, %v871_v44  ;;  %v936_v28 = vld [vmem:[#allocation2 + $0x80] ss:$2 sm:$0xff]  ;;  %v1322_v31 = vpack.c.bf16 %v1298_v27, %v1296_v29  ;;  %v946_v41 = vld [vmem:[#allocation2 + $0xd0] ss:$2 sm:$0xff] }
  0xdd   : > { %v823_v2 = vpop.permute.xlu1 %822  ;;  %v818_v47 = vpop.permute.xlu0 %817  ;;  %v944_v43 = vld [vmem:[#allocation2 + $0xc0] ss:$2 sm:$0xff] }
  0xde   : > { %v874_v51 = vmul.f32 %v823_v2, %v580_v42  ;;  %v873_v52 = vmul.f32 %v818_v47, %v579_v45  ;;  %v1306_v42 = vld [vmem:[#allocation2 + $0xb2] ss:$2 sm:$0xff]  ;;  %v1304_v44 = vld [vmem:[#allocation2 + $0xa2] ss:$2 sm:$0xff]  ;;  %v961_v45 = vpack.c.bf16 %v946_v41, %v944_v43 }
  0xdf   : > { %v984_v11 = vld [vmem:[#allocation2 + $0x91] ss:$2 sm:$0xff]  ;;  %v938_v26 = vld [vmem:[#allocation2 + $0x90] ss:$2 sm:$0xff]  ;;  %v1324_v46 = vpack.c.bf16 %v1306_v42, %v1304_v44 }
  0xe0   : > { %917 = vst.msk [vmem:[#allocation2 + $0x138] sm:$0xff] %vm877_vm2, %v874_v51  ;;  %916 = vst.msk [vmem:[#allocation2 + $0x130] sm:$0xff] %vm877_vm2, %v873_v52  ;;  %v1005_v55 = vpack.c.bf16 %v984_v11, %v982_v54  ;;  %v959_v30 = vpack.c.bf16 %v938_v26, %v936_v28  ;;  %v1300_v36 = vld [vmem:[#allocation2 + $0x82] ss:$2 sm:$0xff]  ;;  %v1302_v37 = vld [vmem:[#allocation2 + $0x92] ss:$2 sm:$0xff] }
  0xe1   : > { %v7251_v58 = vpop.permute.xlu1 %2737  ;;  %v828_v59 = vpop.permute.xlu0 %827  ;;  %v1323_v40 = vpack.c.bf16 %v1302_v37, %v1300_v36  ;;  %v950_v2 = vld [vmem:[#allocation2 + $0xf0] ss:$2 sm:$0xff]  ;;  %v952_v54 = vld [vmem:[#allocation2 + $0x100] ss:$2 sm:$0xff]  ;;  %v1677_v26 = vld [vmem:[#allocation2 + $0x63] ss:$2 sm:$0xff] }
  0xe2   : > { %v875_v60 = vmul.f32 %v828_v59, %v581_v53  ;;  %5726 = vmatmul.mubr.msk.bf16.gmra.mxu0 %vm877_vm2, %v1005_v55  ;;  %5748 = vmatmul.mubr.msk.bf16.vlgmr.msra.gmra.mxu1 %vm877_vm2, %v955_v56  ;;  %v1310_v47 = vld [vmem:[#allocation2 + $0xd2] ss:$2 sm:$0xff]  ;;  %v962_v50 = vpack.c.bf16 %v950_v2, %v948_v48  ;;  %v1312_v11 = vld [vmem:[#allocation2 + $0xe2] ss:$2 sm:$0xff]  ;;  %v1675_v28 = vld [vmem:[#allocation2 + $0x53] ss:$2 sm:$0xff] }
  0xe3   : > { %5822 = vmatpush3.bf16.msra.mxu1 %v1541_v57  ;;  %5751 = vmatprep.mubr.msk.bf16.mxu1 %vm6746_vm0, %v7195_v32  ;;  %v1325_v51 = vpack.c.bf16 %v1310_v47, %v1308_v49  ;;  %v954_v52 = vld [vmem:[#allocation2 + $0x110] ss:$2 sm:$0xff]  ;;  %v1679_v36 = vld [vmem:[#allocation2 + $0x73] ss:$2 sm:$0xff]  ;;  %v1685_v42 = vld [vmem:[#allocation2 + $0xa3] ss:$2 sm:$0xff] }
  0xe4   : > { %918 = vst.msk [vmem:[#allocation2 + $0x140] sm:$0xff] %vm877_vm2, %v875_v60  ;;  %5785 = vmatprep.mubr.msk.bf16.mxu0 %vm6746_vm0, %v7195_v32  ;;  %5897 = vmatprep.subr.bf16.mxu1 %v7195_v32  ;;  %v1314_v53 = vld [vmem:[#allocation2 + $0xf2] ss:$2 sm:$0xff]  ;;  %v963_v55 = vpack.c.bf16 %v954_v52, %v952_v54  ;;  %v1484_v59 = vld [vmem:[#allocation2 + $0x22] ss:$2 sm:$0xff] }
  0xe5   : > { %v7261_v61 = vpop.permute.xlu1 %2747  ;;  %v1326_v56 = vpack.c.bf16 %v1314_v53, %v1312_v11  ;;  %v1318_v57 = vld [vmem:[#allocation2 + $0x112] ss:$2 sm:$0xff]  ;;  %v5096_v60 = vld [vmem:[%s8992_s7 + $0xa] sm:$0x3]  ;;  %v1502_v1 = vpack.c.bf16 %v1484_v59, %v1483_v63  ;;  %v1687_v47 = vld [vmem:[#allocation2 + $0xb3] ss:$2 sm:$0xff] }
  0xe6   : > { %v1327_v0 = vpack.c.bf16 %v1318_v57, %v1316_v62  ;;  %v1941_v3 = vsel %vm1039_vm1, %v5096_v60, 0  ;;  %v1489_v27 = vld [vmem:[#allocation2 + $0x72] ss:$2 sm:$0xff]  ;;  %v1691_v53 = vld [vmem:[#allocation2 + $0xd3] ss:$2 sm:$0xff] }
  0xe7   : > { %v1493_v41 = vld [vmem:[#allocation2 + $0xb2] ss:$2 sm:$0xff]  ;;  %v1501_v57 = vld [vmem:[#allocation2 + $0x122] ss:$2 sm:$0xff]  ;;  %v1697_v59 = vld [vmem:[#allocation2 + $0x103] ss:$2 sm:$0xff] }
  0xe8   : > { %v1495_v2 = vld [vmem:[#allocation2 + $0xd2] ss:$2 sm:$0xff]  ;;  %v1695_v63 = vld [vmem:[#allocation2 + $0xf3] ss:$2 sm:$0xff] }
  0xe9   : > { %v7267_v8 = vpop.permute.xlu1 %2757  ;;  %v1497_v52 = vld [vmem:[#allocation2 + $0xf2] ss:$2 sm:$0xff] }
  0xea   : > { %5752 = vmatmul.mubr.msk.bf16.gmra.mxu1 %vm877_vm2, %v956_v4  ;;  %5786 = vmatmul.mubr.msk.bf16.vlgmr.msra.gmra.mxu0 %vm877_vm2, %v1319_v5  ;;  %v1486_v4 = vld [vmem:[#allocation2 + $0x42] ss:$2 sm:$0xff]  ;;  %v1669_v5 = vld [vmem:[#allocation2 + $0x23] ss:$2 sm:$0xff]  ;;  %v1499_v62 = vld [vmem:[#allocation2 + $0x112] ss:$2 sm:$0xff] }
  0xeb   : > { %5860 = vmatpush3.bf16.msra.mxu0 %v1741_v6  ;;  %5755 = vmatprep.mubr.msk.bf16.mxu1 %vm6746_vm0, %v7195_v32  ;;  %v5106_v6 = vld [vmem:[%s8992_s7 + $0xc] sm:$0x3]  ;;  %v1503_v13 = vpack.c.bf16 %v1486_v4, %v1485_v10  ;;  %v1702_v14 = vpack.c.bf16 %v1669_v5, %v1667_v12  ;;  %v5116_v12 = vld [vmem:[%s8992_s7 + $0xe] sm:$0x3] }
  0xec   : > { %5789 = vmatprep.mubr.msk.bf16.mxu0 %vm6746_vm0, %v7195_v32  ;;  %5935 = vmatprep.subr.bf16.mxu0 %v7195_v32  ;;  %v1869_v10 = vld [vmem:[#allocation2 + $0x24] ss:$2 sm:$0xff] }
  0xed   : > { %v7276_v9 = vpop.permute.xlu1 %2767 }
  0xf1   : > { %v7278_v16 = vpop.permute.xlu1 %2777 }
  0xf2   : > { %5756 = vmatmul.mubr.msk.bf16.gmra.mxu1 %vm877_vm2, %v957_v7  ;;  %5790 = vmatmul.mubr.msk.bf16.gmra.mxu0 %vm877_vm2, %v1320_v15  ;;  %v2124_v7 = vsel %vm1039_vm1, %v5106_v6, 0  ;;  %v1488_v15 = vld [vmem:[#allocation2 + $0x62] ss:$2 sm:$0xff]  ;;  %v1701_v6 = vld [vmem:[#allocation2 + $0x123] ss:$2 sm:$0xff] }
  0xf3   : > { %5759 = vmatprep.mubr.msk.bf16.mxu1 %vm6746_vm0, %v7195_v32  ;;  %5793 = vmatprep.mubr.msk.bf16.mxu0 %vm6746_vm0, %v7195_v32  ;;  %v1504_v21 = vpack.c.bf16 %v1488_v15, %v1487_v19 }
  0xf5   : > { %v7286_v17 = vpop.permute.xlu1 %2787 }
  0xf9   : > { %v7288_v24 = vpop.permute.xlu1 %2797 }
  0xfa   : > { %5760 = vmatmul.mubr.msk.bf16.gmra.mxu1 %vm877_vm2, %v958_v22  ;;  %5794 = vmatmul.mubr.msk.bf16.gmra.mxu0 %vm877_vm2, %v1321_v23  ;;  %v1703_v22 = vpack.c.bf16 %v1673_v18, %v1671_v20  ;;  %v1490_v23 = vld [vmem:[#allocation2 + $0x82] ss:$2 sm:$0xff]  ;;  %v2324_v20 = vsel %vm1039_vm1, %v5116_v12, 0 }
  0xfb   : > { %5763 = vmatprep.mubr.msk.bf16.mxu1 %vm6746_vm0, %v7195_v32  ;;  %5797 = vmatprep.mubr.msk.bf16.mxu0 %vm6746_vm0, %v7195_v32  ;;  %v1505_v29 = vpack.c.bf16 %v1490_v23, %v1489_v27  ;;  %v1873_v23 = vld [vmem:[#allocation2 + $0x44] ss:$2 sm:$0xff] }
  0xfc   : > { %v5126_v27 = vld [vmem:[%s8992_s7 + $0x10] sm:$0x3] }
  0xfd   : > { %v7296_v25 = vpop.permute.xlu1 %2807 }
 0x101   : > { %v7298_v33 = vpop.permute.xlu1 %2817 }
 0x102   : > { %5764 = vmatmul.mubr.msk.bf16.gmra.mxu1 %vm877_vm2, %v959_v30  ;;  %5798 = vmatmul.mubr.msk.bf16.gmra.mxu0 %vm877_vm2, %v1322_v31  ;;  %v1704_v30 = vpack.c.bf16 %v1677_v26, %v1675_v28  ;;  %v1491_v31 = vld [vmem:[#allocation2 + $0x92] ss:$2 sm:$0xff] }
 0x103   : > { %5767 = vmatprep.mubr.msk.bf16.mxu1 %vm6746_vm0, %v7195_v32  ;;  %5801 = vmatprep.mubr.msk.bf16.mxu0 %vm6746_vm0, %v7195_v32  ;;  %v1506_v37 = vpack.c.bf16 %v1492_v35, %v1491_v31  ;;  %v2067_v26 = vld [vmem:[#allocation2 + $0x34] ss:$2 sm:$0xff] }
 0x105   : > { %v833_v34 = vpop.permute.xlu1 %832 }
 0x106   : > { %v1681_v34 = vld [vmem:[#allocation2 + $0x83] ss:$2 sm:$0xff] }
 0x107   : > { %v1705_v38 = vpack.c.bf16 %v1681_v34, %v1679_v36  ;;  %v2524_v36 = vsel %vm1039_vm1, %v5126_v27, 0 }
 0x10a   : > { %5768 = vmatmul.mubr.msk.bf16.gmra.mxu1 %vm877_vm2, %v960_v39  ;;  %5802 = vmatmul.mubr.msk.bf16.gmra.mxu0 %vm877_vm2, %v1323_v40  ;;  %v1494_v39 = vld [vmem:[#allocation2 + $0xc2] ss:$2 sm:$0xff]  ;;  %v1683_v40 = vld [vmem:[#allocation2 + $0x93] ss:$2 sm:$0xff] }
 0x10b   : > { %5771 = vmatprep.mubr.msk.bf16.mxu1 %vm6746_vm0, %v7195_v32  ;;  %5805 = vmatprep.mubr.msk.bf16.mxu0 %vm6746_vm0, %v7195_v32  ;;  %v1507_v43 = vpack.c.bf16 %v1494_v39, %v1493_v41  ;;  %v1706_v44 = vpack.c.bf16 %v1685_v42, %v1683_v40  ;;  %v1877_v39 = vld [vmem:[#allocation2 + $0x64] ss:$2 sm:$0xff]  ;;  %v2069_v40 = vld [vmem:[#allocation2 + $0x54] ss:$2 sm:$0xff] }
 0x10c   : > { %v1875_v42 = vld [vmem:[#allocation2 + $0x54] ss:$2 sm:$0xff] }
 0x112   : > { %5772 = vmatmul.mubr.msk.bf16.gmra.mxu1 %vm877_vm2, %v961_v45  ;;  %5806 = vmatmul.mubr.msk.bf16.gmra.mxu0 %vm877_vm2, %v1324_v46  ;;  %v1496_v45 = vld [vmem:[#allocation2 + $0xe2] ss:$2 sm:$0xff]  ;;  %v1689_v46 = vld [vmem:[#allocation2 + $0xc3] ss:$2 sm:$0xff] }
 0x113   : > { %5775 = vmatprep.mubr.msk.bf16.mxu1 %vm6746_vm0, %v7195_v32  ;;  %5809 = vmatprep.mubr.msk.bf16.mxu0 %vm6746_vm0, %v7195_v32  ;;  %v1508_v48 = vpack.c.bf16 %v1496_v45, %v1495_v2  ;;  %v1707_v49 = vpack.c.bf16 %v1689_v46, %v1687_v47  ;;  %v1904_v45 = vpack.c.bf16 %v1877_v39, %v1875_v42 }
 0x11a   : > { %5776 = vmatmul.mubr.msk.bf16.gmra.mxu1 %vm877_vm2, %v962_v50  ;;  %5810 = vmatmul.mubr.msk.bf16.gmra.mxu0 %vm877_vm2, %v1325_v51  ;;  %v1498_v50 = vld [vmem:[#allocation2 + $0x102] ss:$2 sm:$0xff]  ;;  %v1693_v51 = vld [vmem:[#allocation2 + $0xe3] ss:$2 sm:$0xff] }
 0x11b   : > { %5779 = vmatprep.mubr.msk.bf16.mxu1 %vm6746_vm0, %v7195_v32  ;;  %5813 = vmatprep.mubr.msk.bf16.mxu0 %vm6746_vm0, %v7195_v32  ;;  %v1509_v54 = vpack.c.bf16 %v1498_v50, %v1497_v52  ;;  %v1708_v11 = vpack.c.bf16 %v1693_v51, %v1691_v53  ;;  %v1879_v51 = vld [vmem:[#allocation2 + $0x74] ss:$2 sm:$0xff]  ;;  %v2070_v52 = vld [vmem:[#allocation2 + $0x64] ss:$2 sm:$0xff] }
 0x122   : > { %5780 = vmatmul.mubr.msk.bf16.gmra.mxu1 %vm877_vm2, %v963_v55  ;;  %5814 = vmatmul.mubr.msk.bf16.gmra.mxu0 %vm877_vm2, %v1326_v56 }
 0x123   : > { %5817 = vmatprep.mubr.msk.bf16.mxu0 %vm6746_vm0, %v7195_v32  ;;  %5823 = vmatprep.mubr.msk.bf16.mxu1 %vm6746_vm0, %v7195_v32 }
 0x12a   : > { %5818 = vmatmul.mubr.msk.bf16.gmra.mxu0 %vm877_vm2, %v1327_v0  ;;  %5824 = vmatmul.mubr.msk.bf16.vlgmr.msra.gmra.mxu1 %vm877_vm2, %v1502_v1  ;;  %v1510_v1 = vpack.c.bf16 %v1501_v57, %v1499_v62  ;;  %v2072_v62 = vld [vmem:[#allocation2 + $0x84] ss:$2 sm:$0xff] }
 0x12b   : > { %5898 = vmatpush3.bf16.msra.mxu1 %v1941_v3  ;;  %5827 = vmatprep.mubr.msk.bf16.mxu1 %vm6746_vm0, %v7195_v32  ;;  %v1709_v3 = vpack.c.bf16 %v1697_v59, %v1695_v63  ;;  %v1883_v59 = vld [vmem:[#allocation2 + $0x94] ss:$2 sm:$0xff] }
 0x12c   : > { %5861 = vmatprep.mubr.msk.bf16.mxu0 %vm6746_vm0, %v7195_v32  ;;  %5973 = vmatprep.subr.bf16.mxu1 %v7195_v32  ;;  %v2073_v63 = vld [vmem:[#allocation2 + $0x94] ss:$2 sm:$0xff] }
 0x132   : > { %5828 = vmatmul.mubr.msk.bf16.gmra.mxu1 %vm877_vm2, %v1503_v13  ;;  %5862 = vmatmul.mubr.msk.bf16.vlgmr.msra.gmra.mxu0 %vm877_vm2, %v1702_v14  ;;  %v1699_v14 = vld [vmem:[#allocation2 + $0x113] ss:$2 sm:$0xff] }
 0x133   : > { %5936 = vmatpush3.bf16.msra.mxu0 %v2124_v7  ;;  %5831 = vmatprep.mubr.msk.bf16.mxu1 %vm6746_vm0, %v7195_v32  ;;  %v1867_v7 = vld [vmem:[#allocation2 + $0x14] ss:$2 sm:$0xff]  ;;  %v1710_v18 = vpack.c.bf16 %v1701_v6, %v1699_v14  ;;  %v2088_v6 = vpack.c.bf16 %v2073_v63, %v2072_v62  ;;  %v1889_v14 = vld [vmem:[#allocation2 + $0xc4] ss:$2 sm:$0xff] }
 0x134   : > { %5865 = vmatprep.mubr.msk.bf16.mxu0 %vm6746_vm0, %v7195_v32  ;;  %6011 = vmatprep.subr.bf16.mxu0 %v7195_v32  ;;  %v1902_v19 = vpack.c.bf16 %v1869_v10, %v1867_v7  ;;  %v2075_v7 = vld [vmem:[#allocation2 + $0xb4] ss:$2 sm:$0xff] }
 0x13a   : > { %5832 = vmatmul.mubr.msk.bf16.gmra.mxu1 %vm877_vm2, %v1504_v21  ;;  %5866 = vmatmul.mubr.msk.bf16.gmra.mxu0 %vm877_vm2, %v1703_v22 }
 0x13b   : > { %5835 = vmatprep.mubr.msk.bf16.mxu1 %vm6746_vm0, %v7195_v32  ;;  %5869 = vmatprep.mubr.msk.bf16.mxu0 %vm6746_vm0, %v7195_v32 }
 0x142   : > { %5836 = vmatmul.mubr.msk.bf16.gmra.mxu1 %vm877_vm2, %v1505_v29  ;;  %5870 = vmatmul.mubr.msk.bf16.gmra.mxu0 %vm877_vm2, %v1704_v30  ;;  %v1871_v29 = vld [vmem:[#allocation2 + $0x34] ss:$2 sm:$0xff]  ;;  %v2066_v30 = vld [vmem:[#allocation2 + $0x24] ss:$2 sm:$0xff] }
 0x143   : > { %5839 = vmatprep.mubr.msk.bf16.mxu1 %vm6746_vm0, %v7195_v32  ;;  %5873 = vmatprep.mubr.msk.bf16.mxu0 %vm6746_vm0, %v7195_v32  ;;  %v1903_v34 = vpack.c.bf16 %v1873_v23, %v1871_v29  ;;  %v2085_v35 = vpack.c.bf16 %v2067_v26, %v2066_v30  ;;  %v1893_v29 = vld [vmem:[#allocation2 + $0xe4] ss:$2 sm:$0xff]  ;;  %v2077_v30 = vld [vmem:[#allocation2 + $0xd4] ss:$2 sm:$0xff] }
 0x14a   : > { %5840 = vmatmul.mubr.msk.bf16.gmra.mxu1 %vm877_vm2, %v1506_v37  ;;  %5874 = vmatmul.mubr.msk.bf16.gmra.mxu0 %vm877_vm2, %v1705_v38 }
 0x14b   : > { %5843 = vmatprep.mubr.msk.bf16.mxu1 %vm6746_vm0, %v7195_v32  ;;  %5877 = vmatprep.mubr.msk.bf16.mxu0 %vm6746_vm0, %v7195_v32 }
 0x152   : > { %5844 = vmatmul.mubr.msk.bf16.gmra.mxu1 %vm877_vm2, %v1507_v43  ;;  %5878 = vmatmul.mubr.msk.bf16.gmra.mxu0 %vm877_vm2, %v1706_v44  ;;  %v2068_v43 = vld [vmem:[#allocation2 + $0x44] ss:$2 sm:$0xff] }
 0x153   : > { %5847 = vmatprep.mubr.msk.bf16.mxu1 %vm6746_vm0, %v7195_v32  ;;  %5881 = vmatprep.mubr.msk.bf16.mxu0 %vm6746_vm0, %v7195_v32  ;;  %v2086_v46 = vpack.c.bf16 %v2069_v40, %v2068_v43 }
 0x15a   : > { %5848 = vmatmul.mubr.msk.bf16.gmra.mxu1 %vm877_vm2, %v1508_v48  ;;  %5882 = vmatmul.mubr.msk.bf16.gmra.mxu0 %vm877_vm2, %v1707_v49  ;;  %v1881_v48 = vld [vmem:[#allocation2 + $0x84] ss:$2 sm:$0xff]  ;;  %v2071_v49 = vld [vmem:[#allocation2 + $0x74] ss:$2 sm:$0xff] }
 0x15b   : > { %5851 = vmatprep.mubr.msk.bf16.mxu1 %vm6746_vm0, %v7195_v32  ;;  %5885 = vmatprep.mubr.msk.bf16.mxu0 %vm6746_vm0, %v7195_v32 }
 0x162   : > { %v7382_v55 = vpop.f32.mrf.mxu0  ;;  %5852 = vmatmul.mubr.msk.bf16.gmra.mxu1 %vm877_vm2, %v1509_v54  ;;  %5886 = vmatmul.mubr.msk.bf16.gmra.mxu0 %vm877_vm2, %v1708_v11  ;;  %v1905_v54 = vpack.c.bf16 %v1881_v48, %v1879_v51  ;;  %v2087_v11 = vpack.c.bf16 %v2071_v49, %v2070_v52  ;;  %v1895_v52 = vld [vmem:[#allocation2 + $0xf4] ss:$2 sm:$0xff] }
 0x163   : > { %5855 = vmatprep.mubr.msk.bf16.mxu1 %vm6746_vm0, %v7195_v32  ;;  %5889 = vmatprep.mubr.msk.bf16.mxu0 %vm6746_vm0, %v7195_v32 }
 0x164   : > { %v5711_v56 = vpop.f32.mrf.mxu0 }
 0x166   : > { %v7390_v60 = vpop.f32.mrf.mxu0 }
 0x168   : > { %v5712_v0 = vpop.f32.mrf.mxu0 }
 0x16a   : > { %v7392_v4 = vpop.f32.mrf.mxu1  ;;  %5856 = vmatmul.mubr.msk.bf16.gmra.mxu1 %vm877_vm2, %v1510_v1  ;;  %5890 = vmatmul.mubr.msk.bf16.gmra.mxu0 %vm877_vm2, %v1709_v3  ;;  %v1885_v1 = vld [vmem:[#allocation2 + $0xa4] ss:$2 sm:$0xff] }
 0x16b   : > { %5893 = vmatprep.mubr.msk.bf16.mxu0 %vm6746_vm0, %v7195_v32  ;;  %5899 = vmatprep.mubr.msk.bf16.mxu1 %vm6746_vm0, %v7195_v32 }
 0x16c   : > { %v5731_v5 = vpop.f32.mrf.mxu1 }
 0x16d   : > { %v1906_v5 = vpack.c.bf16 %v1885_v1, %v1883_v59 }
 0x16e   : > { %v7403_v13 = vpop.f32.mrf.mxu1 }
 0x170   : > { %v5732_v15 = vpop.f32.mrf.mxu1 }
 0x172   : > { %v7406_v21 = vpop.f32.mrf.mxu0  ;;  %5894 = vmatmul.mubr.msk.bf16.gmra.mxu0 %vm877_vm2, %v1710_v18  ;;  %5900 = vmatmul.mubr.msk.bf16.vlgmr.msra.gmra.mxu1 %vm877_vm2, %v1902_v19  ;;  %v1887_v18 = vld [vmem:[#allocation2 + $0xb4] ss:$2 sm:$0xff]  ;;  %v2074_v19 = vld [vmem:[#allocation2 + $0xa4] ss:$2 sm:$0xff] }
 0x173   : > { %5974 = vmatpush3.bf16.msra.mxu1 %v2324_v20  ;;  %5903 = vmatprep.mubr.msk.bf16.mxu1 %vm6746_vm0, %v7195_v32  ;;  %v2089_v23 = vpack.c.bf16 %v2075_v7, %v2074_v19  ;;  %v1899_v19 = vld [vmem:[#allocation2 + $0x114] ss:$2 sm:$0xff] }
 0x174   : > { %v5715_v22 = vpop.f32.mrf.mxu0  ;;  %5937 = vmatprep.mubr.msk.bf16.mxu0 %vm6746_vm0, %v7195_v32  ;;  %6049 = vmatprep.subr.bf16.mxu1 %v7195_v32 }
 0x175   : > { %v1907_v22 = vpack.c.bf16 %v1889_v14, %v1887_v18 }
 0x176   : > { %v7418_v28 = vpop.f32.mrf.mxu0 }
 0x178   : > { %v5716_v31 = vpop.f32.mrf.mxu0 }
 0x17a   : > { %v7421_v37 = vpop.f32.mrf.mxu1  ;;  %5904 = vmatmul.mubr.msk.bf16.gmra.mxu1 %vm877_vm2, %v1903_v34  ;;  %5938 = vmatmul.mubr.msk.bf16.vlgmr.msra.gmra.mxu0 %vm877_vm2, %v2085_v35  ;;  %v1891_v34 = vld [vmem:[#allocation2 + $0xd4] ss:$2 sm:$0xff]  ;;  %v2076_v35 = vld [vmem:[#allocation2 + $0xc4] ss:$2 sm:$0xff] }
 0x17b   : > { %6012 = vmatpush3.bf16.msra.mxu0 %v2524_v36  ;;  %5907 = vmatprep.mubr.msk.bf16.mxu1 %vm6746_vm0, %v7195_v32  ;;  %v2090_v39 = vpack.c.bf16 %v2077_v30, %v2076_v35 }
 0x17c   : > { %v5735_v38 = vpop.f32.mrf.mxu1  ;;  %5941 = vmatprep.mubr.msk.bf16.mxu0 %vm6746_vm0, %v7195_v32  ;;  %6101 = vmatprep.subr.bf16.mxu0 %v7195_v32 }
 0x17d   : > { %v1908_v38 = vpack.c.bf16 %v1893_v29, %v1891_v34 }
 0x17e   : > { %v7430_v41 = vpop.f32.mrf.mxu1 }
 0x180   : > { %v5736_v44 = vpop.f32.mrf.mxu1 }
 0x182   : > { %v7432_v2 = vpop.f32.mrf.mxu0  ;;  %5908 = vmatmul.mubr.msk.bf16.gmra.mxu1 %vm877_vm2, %v1904_v45  ;;  %5942 = vmatmul.mubr.msk.bf16.gmra.mxu0 %vm877_vm2, %v2086_v46  ;;  %v1897_v46 = vld [vmem:[#allocation2 + $0x104] ss:$2 sm:$0xff] }
 0x183   : > { %5911 = vmatprep.mubr.msk.bf16.mxu1 %vm6746_vm0, %v7195_v32  ;;  %5945 = vmatprep.mubr.msk.bf16.mxu0 %vm6746_vm0, %v7195_v32 }
 0x184   : > { %v5719_v47 = vpop.f32.mrf.mxu0 }
 0x185   : > { %v2079_v47 = vld [vmem:[#allocation2 + $0xf4] ss:$2 sm:$0xff] }
 0x186   : > { %v7440_v50 = vpop.f32.mrf.mxu0 }
 0x188   : > { %v5720_v53 = vpop.f32.mrf.mxu0 }
 0x189   : > { %v2078_v53 = vld [vmem:[#allocation2 + $0xe4] ss:$2 sm:$0xff] }
 0x18a   : > { %v7442_v56 = vpop.f32.mrf.mxu1  ;;  %5912 = vmatmul.mubr.msk.bf16.gmra.mxu1 %vm877_vm2, %v1905_v54  ;;  %5946 = vmatmul.mubr.msk.bf16.gmra.mxu0 %vm877_vm2, %v2087_v11 }
 0x18b   : > { %5915 = vmatprep.mubr.msk.bf16.mxu1 %vm6746_vm0, %v7195_v32  ;;  %5949 = vmatprep.mubr.msk.bf16.mxu0 %vm6746_vm0, %v7195_v32 }
 0x18c   : > { %v5739_v57 = vpop.f32.mrf.mxu1 }
 0x18d   : > { %v2091_v57 = vpack.c.bf16 %v2079_v47, %v2078_v53  ;;  %v6606_v53 = vld [vmem:[%s8993_s8 + $0x38] sm:$0xff]  }
 0x18e   : > { %v7450_v0 = vpop.f32.mrf.mxu1 }
 0x190   : > { %v5740_v3 = vpop.f32.mrf.mxu1 }
 0x192   : > { %v7452_v10 = vpop.f32.mrf.mxu0  ;;  %5916 = vmatmul.mubr.msk.bf16.gmra.mxu1 %vm877_vm2, %v1906_v5  ;;  %5950 = vmatmul.mubr.msk.bf16.gmra.mxu0 %vm877_vm2, %v2088_v6  ;;  %v1901_v5 = vld [vmem:[#allocation2 + $0x124] ss:$2 sm:$0xff]  ;;  %v2081_v6 = vld [vmem:[#allocation2 + $0x114] ss:$2 sm:$0xff] }
 0x193   : > { %5919 = vmatprep.mubr.msk.bf16.mxu1 %vm6746_vm0, %v7195_v32  ;;  %5953 = vmatprep.mubr.msk.bf16.mxu0 %vm6746_vm0, %v7195_v32 }
 0x194   : > { %v5723_v12 = vpop.f32.mrf.mxu0 }
 0x196   : > { %v7460_v15 = vpop.f32.mrf.mxu0 }
 0x198   : > { %v5724_v20 = vpop.f32.mrf.mxu0 }
 0x19a   : > { %v7462_v26 = vpop.f32.mrf.mxu1  ;;  %5920 = vmatmul.mubr.msk.bf16.gmra.mxu1 %vm877_vm2, %v1907_v22  ;;  %5954 = vmatmul.mubr.msk.bf16.gmra.mxu0 %vm877_vm2, %v2089_v23  ;;  %v1910_v23 = vpack.c.bf16 %v1901_v5, %v1899_v19  ;;  %v2894_v5 = vld [vmem:[%s8994_s9] sm:$0x3] }
 0x19b   : > { %5923 = vmatprep.mubr.msk.bf16.mxu1 %vm6746_vm0, %v7195_v32  ;;  %5957 = vmatprep.mubr.msk.bf16.mxu0 %vm6746_vm0, %v7195_v32 }
 0x19c   : > { %v5743_v27 = vpop.f32.mrf.mxu1 }
 0x19e   : > { %v7470_v31 = vpop.f32.mrf.mxu1 }
 0x1a0   : > { %v5744_v36 = vpop.f32.mrf.mxu1 }
 0x1a2   : > { %v7472_v40 = vpop.f32.mrf.mxu0  ;;  %v1212_v42 = vpop.f32.mrf.mxu1  ;;  %5924 = vmatmul.mubr.msk.bf16.gmra.mxu1 %vm877_vm2, %v1908_v38  ;;  %5958 = vmatmul.mubr.msk.bf16.gmra.mxu0 %vm877_vm2, %v2090_v39  ;;  %v2084_v38 = vld [vmem:[#allocation2 + $0x134] ss:$2 sm:$0xff]  ;;  %v2252_v39 = vld [vmem:[#allocation2 + $0x35] ss:$2 sm:$0xff] }
 0x1a3   : > { %v1213_v43 = vadd.f32 %v1212_v42, %v7382_v55  ;;  %5927 = vmatprep.mubr.msk.bf16.mxu1 %vm6746_vm0, %v7195_v32  ;;  %5961 = vmatprep.mubr.msk.bf16.mxu0 %vm6746_vm0, %v7195_v32  ;;  %v1909_v55 = vpack.c.bf16 %v1897_v46, %v1895_v52  ;;  %v2082_v46 = vld [vmem:[#allocation2 + $0x124] ss:$2 sm:$0xff] }
 0x1a4   : > { %v5727_v44 = vpop.f32.mrf.mxu0  ;;  %v5749_v45 = vpop.f32.mrf.mxu1 }
 0x1a6   : > { %v7481_v48 = vpop.f32.mrf.mxu0  ;;  %v1215_v49 = vpop.f32.mrf.mxu1 }
 0x1a7   : > { %v1216_v51 = vadd.f32 %v1215_v49, %v7390_v60 }
 0x1a8   : > { %v5728_v54 = vpop.f32.mrf.mxu0  ;;  %v5750_v11 = vpop.f32.mrf.mxu1 }
 0x1aa   : > { %v1220_v59 = vpop.f32.mrf.mxu1  ;;  %v1394_v62 = vpop.f32.mrf.mxu0  ;;  %5928 = vmatmul.mubr.msk.bf16.gmra.mxu1 %vm877_vm2, %v1909_v55  ;;  %5962 = vmatmul.mubr.msk.bf16.gmra.mxu0 %vm877_vm2, %v2091_v57 }
 0x1ab   : > { %v1221_v63 = vadd.f32 %v1220_v59, %v7406_v21  ;;  %v7487_v1 = vadd.f32 %v1394_v62, %v1213_v43  ;;  %5931 = vmatprep.mubr.msk.bf16.mxu1 %vm6746_vm0, %v7195_v32  ;;  %5965 = vmatprep.mubr.msk.bf16.mxu0 %vm6746_vm0, %v7195_v32  ;;  %v2080_v21 = vld [vmem:[#allocation2 + $0x104] ss:$2 sm:$0xff] }
 0x1ac   : > { %v5753_v60 = vpop.f32.mrf.mxu1  ;;  %v5787_v3 = vpop.f32.mrf.mxu0  ;;  %v2092_v27 = vpack.c.bf16 %v2081_v6, %v2080_v21  ;;  %v6607_v62 = vld [vmem:[%s8993_s8 + $0x30] sm:$0xff]  }
 0x1ad   : > { %v2452_v60 = vld [vmem:[#allocation2 + $0x36] ss:$2 sm:$0xff] }
 0x1ae   : > { %v1223_v12 = vpop.f32.mrf.mxu1  ;;  %v1397_v14 = vpop.f32.mrf.mxu0 }
 0x1af   : > { %v1224_v7 = vadd.f32 %v1223_v12, %v7418_v28  ;;  %v7494_v18 = vadd.f32 %v1397_v14, %v1216_v51  ;;  %v2093_v51 = vpack.c.bf16 %v2084_v38, %v2082_v46  ;;  %v2254_v14 = vld [vmem:[#allocation2 + $0x45] ss:$2 sm:$0xff] }
 0x1b0   : > { %v5754_v20 = vpop.f32.mrf.mxu1  ;;  %v5788_v22 = vpop.f32.mrf.mxu0  ;;  %v6609_v38 = vld [vmem:[%s8993_s8 + $0x20] sm:$0xff]  }
 0x1b2   : > { %v1228_v29 = vpop.f32.mrf.mxu1  ;;  %v1402_v30 = vpop.f32.mrf.mxu0  ;;  %5932 = vmatmul.mubr.msk.bf16.gmra.mxu1 %vm877_vm2, %v1910_v23  ;;  %5966 = vmatmul.mubr.msk.bf16.gmra.mxu0 %vm877_vm2, %v2092_v27  ;;  %v7533_v23 = vld [vmem:[#allocation3] sm:$0xff]  ;;  %v3119_v27 = vsel %vm1039_vm1, %v2894_v5, 0 }
 0x1b3   : > { %v1229_v34 = vadd.f32 %v1228_v29, %v7432_v2  ;;  %v7499_v35 = vadd.f32 %v1402_v30, %v1221_v63  ;;  %5969 = vmatprep.mubr.msk.bf16.mxu0 %vm6746_vm0, %v7195_v32  ;;  %5975 = vmatprep.mubr.msk.bf16.mxu1 %vm6746_vm0, %v7195_v32  ;;  %v2250_v2 = vld [vmem:[#allocation2 + $0x25] ss:$2 sm:$0xff]  ;;  %v2256_v63 = vld [vmem:[#allocation2 + $0x55] ss:$2 sm:$0xff] }
 0x1b4   : > { %v5757_v28 = vpop.f32.mrf.mxu1  ;;  %v5791_v36 = vpop.f32.mrf.mxu0  ;;  %v2285_v52 = vpack.c.bf16 %v2252_v39, %v2250_v2  ;;  %v2286_v20 = vpack.c.bf16 %v2256_v63, %v2254_v14  ;;  %v2260_v39 = vld [vmem:[#allocation2 + $0x75] ss:$2 sm:$0xff]  ;;  %v2258_v2 = vld [vmem:[#allocation2 + $0x65] ss:$2 sm:$0xff]  ;;  %v2458_v14 = vld [vmem:[#allocation2 + $0x66] ss:$2 sm:$0xff] }
 0x1b5   : > { %v2262_v63 = vld [vmem:[#allocation2 + $0x85] ss:$2 sm:$0xff] }
 0x1b6   : > { %v1231_v42 = vpop.f32.mrf.mxu1  ;;  %v1405_v43 = vpop.f32.mrf.mxu0 }
 0x1b7   : > { %v1232_v44 = vadd.f32 %v1231_v42, %v7440_v50  ;;  %v7506_v45 = vadd.f32 %v1405_v43, %v1224_v7  ;;  %v2450_v7 = vld [vmem:[#allocation2 + $0x26] ss:$2 sm:$0xff]  ;;  %v2456_v42 = vld [vmem:[#allocation2 + $0x56] ss:$2 sm:$0xff] }
 0x1b8   : > { %v5758_v47 = vpop.f32.mrf.mxu1  ;;  %v5792_v49 = vpop.f32.mrf.mxu0  ;;  %v2485_v22 = vpack.c.bf16 %v2452_v60, %v2450_v7  ;;  %v2264_v60 = vld [vmem:[#allocation2 + $0x95] ss:$2 sm:$0xff] }
 0x1b9   : > { %v2454_v47 = vld [vmem:[#allocation2 + $0x46] ss:$2 sm:$0xff] }
 0x1ba   : > { %v1236_v54 = vpop.f32.mrf.mxu1  ;;  %v1410_v11 = vpop.f32.mrf.mxu0  ;;  %5970 = vmatmul.mubr.msk.bf16.gmra.mxu0 %vm877_vm2, %v2093_v51  ;;  %5976 = vmatmul.mubr.msk.bf16.vlgmr.msra.gmra.mxu1 %vm877_vm2, %v2285_v52  ;;  %v2287_v52 = vpack.c.bf16 %v2260_v39, %v2258_v2  ;;  %v2462_v39 = vld [vmem:[#allocation2 + $0x86] ss:$2 sm:$0xff]  ;;  %v2266_v2 = vld [vmem:[#allocation2 + $0xa5] ss:$2 sm:$0xff] }
 0x1bb   : > { %v1237_v50 = vadd.f32 %v1236_v54, %v7452_v10  ;;  %v7514_v55 = vadd.f32 %v1410_v11, %v1229_v34  ;;  %5979 = vmatprep.mubr.msk.bf16.mxu1 %vm6746_vm0, %v7195_v32  ;;  %6013 = vmatprep.mubr.msk.bf16.mxu0 %vm6746_vm0, %v7195_v32  ;;  %v6610_v54 = vld [vmem:[%s8993_s8 + $0x18] sm:$0xff]  }
 0x1bc   : > { %v5761_v57 = vpop.f32.mrf.mxu1  ;;  %v5795_v59 = vpop.f32.mrf.mxu0  ;;  %6050 = vmatpush3.bf16.msra.mxu1 %v6606_v53  ;;  %v2486_v53 = vpack.c.bf16 %v2456_v42, %v2454_v47  ;;  %v2464_v42 = vld [vmem:[#allocation2 + $0x96] ss:$2 sm:$0xff] }
 0x1bd   : > { %6051 = vmatprep.subr.bf16.mxu1 %v7195_v32  ;;  %v6608_v32 = vld [vmem:[%s8993_s8 + $0x28] sm:$0xff]  }
 0x1be   : > { %v1239_v10 = vpop.f32.mrf.mxu1  ;;  %v1413_v3 = vpop.f32.mrf.mxu0 }
 0x1bf   : > { %v1240_v6 = vadd.f32 %v1239_v10, %v7460_v15  ;;  %v7528_v12 = vadd.f32 %v1413_v3, %v1232_v44  ;;  %v2460_v10 = vld [vmem:[#allocation2 + $0x76] ss:$2 sm:$0xff] }
 0x1c0   : > { %v5762_v19 = vpop.f32.mrf.mxu1  ;;  %v5796_v21 = vpop.f32.mrf.mxu0  ;;  %6052 = vmatpush3.bf16.msra.mxu1 %v6607_v62  ;;  %v6611_v62 = vld [vmem:[%s8993_s8 + $0x10] sm:$0xff]  }
 0x1c1   : > { %6053 = vmatprep.subr.bf16.mxu1 %v7533_v23  ;;  %v2288_v21 = vpack.c.bf16 %v2264_v60, %v2262_v63 }
 0x1c2   : > { %v1244_v15 = vpop.f32.mrf.mxu1  ;;  %v1418_v29 = vpop.f32.mrf.mxu0  ;;  %5980 = vmatmul.mubr.msk.bf16.gmra.mxu1 %vm877_vm2, %v2286_v20  ;;  %6014 = vmatmul.mubr.msk.bf16.vlgmr.msra.gmra.mxu0 %vm877_vm2, %v2485_v22  ;;  %v2487_v20 = vpack.c.bf16 %v2460_v10, %v2458_v14  ;;  %v6612_v22 = vld [vmem:[%s8993_s8 + $0x8] sm:$0xff]  }
 0x1c3   : > { %v1245_v30 = vadd.f32 %v1244_v15, %v7472_v40  ;;  %v7540_v34 = vadd.f32 %v1418_v29, %v1237_v50  ;;  %5983 = vmatprep.mubr.msk.bf16.mxu1 %vm6746_vm0, %v7533_v23  ;;  %6017 = vmatprep.mubr.msk.bf16.mxu0 %vm6746_vm0, %v7533_v23 }
 0x1c4   : > { %v5765_v28 = vpop.f32.mrf.mxu1  ;;  %v5799_v36 = vpop.f32.mrf.mxu0  ;;  %6054 = vmatpush3.bf16.msra.mxu1 %v6608_v32  ;;  %6102 = vmatpush3.bf16.msra.mxu0 %v3119_v27 }
 0x1c5   : > { %6055 = vmatprep.subr.bf16.mxu1 %v7533_v23  ;;  %6191 = vmatprep.subr.bf16.mxu0 %v7533_v23 }
 0x1c6   : > { %v1247_v40 = vpop.f32.mrf.mxu1  ;;  %v1421_v43 = vpop.f32.mrf.mxu0 }
 0x1c7   : > { %v1248_v44 = vadd.f32 %v1247_v40, %v7481_v48  ;;  %v7552_v46 = vadd.f32 %v1421_v43, %v1240_v6 }
 0x1c8   : > { %v5766_v49 = vpop.f32.mrf.mxu1  ;;  %v5800_v51 = vpop.f32.mrf.mxu0  ;;  %6056 = vmatpush3.bf16.msra.mxu1 %v6609_v38  ;;  %v2268_v38 = vld [vmem:[#allocation2 + $0xb5] ss:$2 sm:$0xff] }
 0x1c9   : > { %6057 = vmatprep.subr.bf16.mxu1 %v7533_v23  ;;  %v2289_v51 = vpack.c.bf16 %v2268_v38, %v2266_v2 }
 0x1ca   : > { %v1252_v11 = vpop.f32.mrf.mxu1  ;;  %v1426_v50 = vpop.f32.mrf.mxu0  ;;  %5984 = vmatmul.mubr.msk.bf16.gmra.mxu1 %vm877_vm2, %v2287_v52  ;;  %6018 = vmatmul.mubr.msk.bf16.gmra.mxu0 %vm877_vm2, %v2486_v53  ;;  %v2488_v52 = vpack.c.bf16 %v2464_v42, %v2462_v39  ;;  %v2274_v39 = vld [vmem:[#allocation2 + $0xe5] ss:$2 sm:$0xff]  ;;  %v2470_v42 = vld [vmem:[#allocation2 + $0xc6] ss:$2 sm:$0xff] }
 0x1cb   : > { %v7560_v48 = vadd.f32 %v1426_v50, %v1245_v30  ;;  %5987 = vmatprep.mubr.msk.bf16.mxu1 %vm6746_vm0, %v7533_v23  ;;  %6021 = vmatprep.mubr.msk.bf16.mxu0 %vm6746_vm0, %v7533_v23  ;;  %v1253_v32 = vadd.f32 %v1252_v11, %v7392_v4  ;;  %v6613_v4 = vld [vmem:[%s8993_s8] sm:$0xff]  }
 0x1cc   : > { %v5769_v57 = vpop.f32.mrf.mxu1  ;;  %v5803_v59 = vpop.f32.mrf.mxu0  ;;  %6058 = vmatpush3.bf16.msra.mxu1 %v6610_v54 }
 0x1cd   : > { %6059 = vmatprep.subr.bf16.mxu1 %v7533_v23  ;;  %v2272_v59 = vld [vmem:[#allocation2 + $0xd5] ss:$2 sm:$0xff] }
 0x1ce   : > { %v1255_v3 = vpop.f32.mrf.mxu1  ;;  %v1429_v5 = vpop.f32.mrf.mxu0 }
 0x1cf   : > { %v7570_v6 = vadd.f32 %v1429_v5, %v1248_v44  ;;  %v1256_v36 = vadd.f32 %v1255_v3, %v7403_v13  ;;  %v2270_v3 = vld [vmem:[#allocation2 + $0xc5] ss:$2 sm:$0xff]  ;;  %v2466_v5 = vld [vmem:[#allocation2 + $0xa6] ss:$2 sm:$0xff] }
 0x1d0   : > { %v5770_v7 = vpop.f32.mrf.mxu1  ;;  %v5804_v19 = vpop.f32.mrf.mxu0  ;;  %6060 = vmatpush3.bf16.msra.mxu1 %v6611_v62  ;;  %v2468_v62 = vld [vmem:[#allocation2 + $0xb6] ss:$2 sm:$0xff] }
 0x1d1   : > { %6061 = vmatprep.subr.bf16.mxu1 %v7533_v23  ;;  %v2290_v19 = vpack.c.bf16 %v2272_v59, %v2270_v3 }
 0x1d2   : > { %v1260_v27 = vpop.f32.mrf.mxu1  ;;  %v1434_v15 = vpop.f32.mrf.mxu0  ;;  %5988 = vmatmul.mubr.msk.bf16.gmra.mxu1 %vm877_vm2, %v2288_v21  ;;  %6022 = vmatmul.mubr.msk.bf16.gmra.mxu0 %vm877_vm2, %v2487_v20  ;;  %v2489_v21 = vpack.c.bf16 %v2468_v62, %v2466_v5 }
 0x1d3   : > { %v7579_v29 = vadd.f32 %v1434_v15, %v1253_v32  ;;  %5991 = vmatprep.mubr.msk.bf16.mxu1 %vm6746_vm0, %v7533_v23  ;;  %6025 = vmatprep.mubr.msk.bf16.mxu0 %vm6746_vm0, %v7533_v23  ;;  %v1261_v53 = vadd.f32 %v1260_v27, %v7421_v37 }
 0x1d4   : > { %v5773_v30 = vpop.f32.mrf.mxu1  ;;  %v5807_v28 = vpop.f32.mrf.mxu0  ;;  %6062 = vmatpush3.bf16.msra.mxu1 %v6612_v22 }
 0x1d5   : > { %6063 = vmatprep.subr.bf16.mxu1 %v7533_v23  ;;  %v2276_v28 = vld [vmem:[#allocation2 + $0xf5] ss:$2 sm:$0xff] }
 0x1d6   : > { %v1263_v40 = vpop.f32.mrf.mxu1  ;;  %v1437_v43 = vpop.f32.mrf.mxu0  ;;  %v2291_v2 = vpack.c.bf16 %v2276_v28, %v2274_v39 }
 0x1d7   : > { %v7590_v44 = vadd.f32 %v1437_v43, %v1256_v36  ;;  %v1264_v37 = vadd.f32 %v1263_v40, %v7430_v41 }
 0x1d8   : > { %v5774_v47 = vpop.f32.mrf.mxu1  ;;  %v5808_v49 = vpop.f32.mrf.mxu0  ;;  %6064 = vmatpush3.bf16.msra.mxu1 %v6613_v4 }
 0x1d9   : > { %6139 = vmatprep.subr.bf16.mxu1 %v7533_v23 }
 0x1da   : > { %v1268_v13 = vpop.f32.mrf.mxu1  ;;  %v1442_v54 = vpop.f32.mrf.mxu0  ;;  %5992 = vmatmul.mubr.msk.bf16.gmra.mxu1 %vm877_vm2, %v2289_v51  ;;  %6026 = vmatmul.mubr.msk.bf16.gmra.mxu0 %vm877_vm2, %v2488_v52 }
 0x1db   : > { %v7596_v11 = vadd.f32 %v1442_v54, %v1261_v53  ;;  %5995 = vmatprep.mubr.msk.bf16.mxu1 %vm6746_vm0, %v7533_v23  ;;  %6029 = vmatprep.mubr.msk.bf16.mxu0 %vm6746_vm0, %v7533_v23  ;;  %v1269_v20 = vadd.f32 %v1268_v13, %v7442_v56  ;;  %v2472_v56 = vld [vmem:[#allocation2 + $0xd6] ss:$2 sm:$0xff] }
 0x1dc   : > { %v5777_v50 = vpop.f32.mrf.mxu1  ;;  %v5811_v57 = vpop.f32.mrf.mxu0  ;;  %v2490_v47 = vpack.c.bf16 %v2472_v56, %v2470_v42 }
 0x1dd   : > { %v2280_v50 = vld [vmem:[#allocation2 + $0x115] ss:$2 sm:$0xff]  ;;  %v2476_v57 = vld [vmem:[#allocation2 + $0xf6] ss:$2 sm:$0xff] }
 0x1de   : > { %v1271_v63 = vpop.f32.mrf.mxu1  ;;  %v1445_v60 = vpop.f32.mrf.mxu0 }
 0x1df   : > { %v7603_v10 = vadd.f32 %v1445_v60, %v1264_v37  ;;  %v1272_v30 = vadd.f32 %v1271_v63, %v7450_v0  ;;  %v2278_v60 = vld [vmem:[#allocation2 + $0x105] ss:$2 sm:$0xff] }
 0x1e0   : > { %v5778_v14 = vpop.f32.mrf.mxu1  ;;  %v5812_v7 = vpop.f32.mrf.mxu0 }
 0x1e1   : > { %v2292_v14 = vpack.c.bf16 %v2280_v50, %v2278_v60 }
 0x1e2   : > { %v1276_v22 = vpop.f32.mrf.mxu1  ;;  %v1450_v32 = vpop.f32.mrf.mxu0  ;;  %5996 = vmatmul.mubr.msk.bf16.gmra.mxu1 %vm877_vm2, %v2290_v19  ;;  %6030 = vmatmul.mubr.msk.bf16.gmra.mxu0 %vm877_vm2, %v2489_v21 }
 0x1e3   : > { %v7608_v41 = vadd.f32 %v1450_v32, %v1269_v20  ;;  %5999 = vmatprep.mubr.msk.bf16.mxu1 %vm6746_vm0, %v7533_v23  ;;  %6033 = vmatprep.mubr.msk.bf16.mxu0 %vm6746_vm0, %v7533_v23  ;;  %v1277_v49 = vadd.f32 %v1276_v22, %v7462_v26  ;;  %v2284_v32 = vld [vmem:[#allocation2 + $0x135] ss:$2 sm:$0xff] }
 0x1e4   : > { %v5781_v27 = vpop.f32.mrf.mxu1  ;;  %v5815_v15 = vpop.f32.mrf.mxu0 }
 0x1e5   : > { %v2480_v27 = vld [vmem:[#allocation2 + $0x116] ss:$2 sm:$0xff] }
 0x1e6   : > { %v1279_v4 = vpop.f32.mrf.mxu1  ;;  %v1453_v36 = vpop.f32.mrf.mxu0 }
 0x1e7   : > { %v7615_v38 = vadd.f32 %v1453_v36, %v1272_v30  ;;  %v1280_v26 = vadd.f32 %v1279_v4, %v7470_v31  ;;  %v2282_v4 = vld [vmem:[#allocation2 + $0x125] ss:$2 sm:$0xff] }
 0x1e8   : > { %v5782_v40 = vpop.f32.mrf.mxu1  ;;  %v5816_v43 = vpop.f32.mrf.mxu0  ;;  %v2293_v42 = vpack.c.bf16 %v2284_v32, %v2282_v4  ;;  %v2867_v32 = vld [vmem:[#allocation2 + $0x13] ss:$2 sm:$0xff] }
 0x1ea   : > { %v1458_v51 = vpop.f32.mrf.mxu0  ;;  %v1577_v52 = vpop.f32.mrf.mxu1  ;;  %6000 = vmatmul.mubr.msk.bf16.gmra.mxu1 %vm877_vm2, %v2291_v2  ;;  %6034 = vmatmul.mubr.msk.bf16.gmra.mxu0 %vm877_vm2, %v2490_v47 }
 0x1eb   : > { %v7620_v0 = vadd.f32 %v1458_v51, %v1277_v49  ;;  %v1648_v53 = vadd.f32 %v1577_v52, %v7487_v1  ;;  %6003 = vmatprep.mubr.msk.bf16.mxu1 %vm6746_vm0, %v7533_v23  ;;  %6037 = vmatprep.mubr.msk.bf16.mxu0 %vm6746_vm0, %v7533_v23  ;;  %v2474_v1 = vld [vmem:[#allocation2 + $0xe6] ss:$2 sm:$0xff]  ;;  %v2896_v51 = vld [vmem:[#allocation3 + $0xd] sm:$0xff] }
 0x1ec   : > { %v5819_v13 = vpop.f32.mrf.mxu0  ;;  %v5825_v54 = vpop.f32.mrf.mxu1  ;;  %v2491_v7 = vpack.c.bf16 %v2476_v57, %v2474_v1 }
 0x1ed   : > { %v2484_v13 = vld [vmem:[#allocation2 + $0x136] ss:$2 sm:$0xff] }
 0x1ee   : > { %v1461_v37 = vpop.f32.mrf.mxu0  ;;  %v1580_v59 = vpop.f32.mrf.mxu1 }
 0x1ef   : > { %v7628_v62 = vadd.f32 %v1461_v37, %v1280_v26  ;;  %v1649_v63 = vadd.f32 %v1580_v59, %v7494_v18 }
 0x1f0   : > { %v5820_v3 = vpop.f32.mrf.mxu0  ;;  %v5826_v5 = vpop.f32.mrf.mxu1 }
 0x1f2   : > { %v1585_v19 = vpop.f32.mrf.mxu1  ;;  %v1777_v21 = vpop.f32.mrf.mxu0  ;;  %6004 = vmatmul.mubr.msk.bf16.gmra.mxu1 %vm877_vm2, %v2292_v14  ;;  %6038 = vmatmul.mubr.msk.bf16.gmra.mxu0 %vm877_vm2, %v2491_v7 }
 0x1f3   : > { %v1650_v31 = vadd.f32 %v1585_v19, %v7499_v35  ;;  %v7634_v20 = vadd.f32 %v1777_v21, %v1648_v53  ;;  %6007 = vmatprep.mubr.msk.bf16.mxu1 %vm6746_vm0, %v7533_v23  ;;  %6041 = vmatprep.mubr.msk.bf16.mxu0 %vm6746_vm0, %v7533_v23  ;;  %v2478_v35 = vld [vmem:[#allocation2 + $0x106] ss:$2 sm:$0xff]  ;;  %v2868_v19 = vld [vmem:[#allocation2 + $0x23] ss:$2 sm:$0xff] }
 0x1f4   : > { %v5829_v18 = vpop.f32.mrf.mxu1  ;;  %v5863_v22 = vpop.f32.mrf.mxu0  ;;  %v2492_v40 = vpack.c.bf16 %v2480_v27, %v2478_v35 }
 0x1f6   : > { %v1588_v15 = vpop.f32.mrf.mxu1  ;;  %v1780_v30 = vpop.f32.mrf.mxu0 }
 0x1f7   : > { %v1651_v28 = vadd.f32 %v1588_v15, %v7506_v45  ;;  %v7641_v56 = vadd.f32 %v1780_v30, %v1649_v63  ;;  %v2895_v45 = vld [vmem:[#allocation3 + $0x5] sm:$0xff]  ;;  %v2885_v30 = vpack.c.bf16 %v2868_v19, %v2867_v32 }
 0x1f8   : > { %v5830_v36 = vpop.f32.mrf.mxu1  ;;  %v5864_v39 = vpop.f32.mrf.mxu0  ;;  %v2913_v50 = vpack.c.bf16 %v2896_v51, %v2895_v45  ;;  %v2869_v45 = vld [vmem:[#allocation2 + $0x33] ss:$2 sm:$0xff]  ;;  %v6616_v51 = vld [vmem:[%s8993_s8 + $0xa8] sm:$0xff]  }
 0x1fa   : > { %v1593_v43 = vpop.f32.mrf.mxu1  ;;  %v1785_v2 = vpop.f32.mrf.mxu0  ;;  %6008 = vmatmul.mubr.msk.bf16.gmra.mxu1 %vm877_vm2, %v2293_v42  ;;  %6042 = vmatmul.mubr.msk.bf16.gmra.mxu0 %vm877_vm2, %v2492_v40  ;;  %v2870_v40 = vld [vmem:[#allocation2 + $0x43] ss:$2 sm:$0xff] }
 0x1fb   : > { %v1652_v47 = vadd.f32 %v1593_v43, %v7514_v55  ;;  %v7646_v49 = vadd.f32 %v1785_v2, %v1650_v31  ;;  %6045 = vmatprep.mubr.msk.bf16.mxu0 %vm6746_vm0, %v7533_v23  ;;  %6065 = vmatprep.mubr.msk.bf16.mxu1 %vm6746_vm0, %v7533_v23  ;;  %v2482_v55 = vld [vmem:[#allocation2 + $0x126] ss:$2 sm:$0xff] }
 0x1fc   : > { %v5833_v52 = vpop.f32.mrf.mxu1  ;;  %v5867_v53 = vpop.f32.mrf.mxu0  ;;  %v2493_v60 = vpack.c.bf16 %v2484_v13, %v2482_v55  ;;  %v2886_v13 = vpack.c.bf16 %v2870_v40, %v2869_v45 }
 0x1fe   : > { %v1596_v54 = vpop.f32.mrf.mxu1  ;;  %v1788_v26 = vpop.f32.mrf.mxu0 }
 0x1ff   : > { %v1653_v57 = vadd.f32 %v1596_v54, %v7528_v12  ;;  %v7653_v37 = vadd.f32 %v1788_v26, %v1651_v28 }
 0x200   : > { %v5834_v59 = vpop.f32.mrf.mxu1  ;;  %v5868_v63 = vpop.f32.mrf.mxu0 }
 0x201   : > { %v2872_v63 = vld [vmem:[#allocation2 + $0x63] ss:$2 sm:$0xff] }
 0x202   : > { %v1601_v1 = vpop.f32.mrf.mxu1  ;;  %v1793_v3 = vpop.f32.mrf.mxu0  ;;  %6046 = vmatmul.mubr.msk.bf16.gmra.mxu0 %vm877_vm2, %v2493_v60  ;;  %6066 = vmatmul.mubr.bf16.vlgmr.msra.gmra.mxu1 %v2913_v50 }
 0x203   : > { %v1654_v5 = vadd.f32 %v1601_v1, %v7540_v34  ;;  %v7657_v14 = vadd.f32 %v1793_v3, %v1652_v47  ;;  %6103 = vmatprep.mubr.msk.bf16.mxu0 %vm6746_vm0, %v7533_v23  ;;  %6069 = vmatprep.mubr.msk.bf16.mxu1 %vm6746_vm0, %v7533_v23  ;;  %v6614_v34 = vld [vmem:[%s8993_s8 + $0xb8] sm:$0xff]  }
 0x204   : > { %v5837_v12 = vpop.f32.mrf.mxu1  ;;  %v5871_v7 = vpop.f32.mrf.mxu0 }
 0x205   : > { %v6618_v12 = vld [vmem:[%s8993_s8 + $0x98] sm:$0xff]  }
 0x206   : > { %v1604_v21 = vpop.f32.mrf.mxu1  ;;  %v1796_v31 = vpop.f32.mrf.mxu0 }
 0x207   : > { %v1655_v18 = vadd.f32 %v1604_v21, %v7552_v46  ;;  %v7664_v22 = vadd.f32 %v1796_v31, %v1653_v57  ;;  %v6615_v46 = vld [vmem:[%s8993_s8 + $0xb0] sm:$0xff]   ;;  %v6617_v57 = vld [vmem:[%s8993_s8 + $0xa0] sm:$0xff]  }
 0x208   : > { %v5838_v27 = vpop.f32.mrf.mxu1  ;;  %v5872_v15 = vpop.f32.mrf.mxu0 }
 0x20a   : > { %v1609_v28 = vpop.f32.mrf.mxu1  ;;  %v1801_v4 = vpop.f32.mrf.mxu0  ;;  %6104 = vmatmul.mubr.msk.bf16.vlgmr.msra.gmra.mxu0 %vm877_vm2, %v2885_v30  ;;  %v2874_v30 = vld [vmem:[#allocation2 + $0x83] ss:$2 sm:$0xff] }
 0x20b   : > { %v1656_v35 = vadd.f32 %v1609_v28, %v7560_v48  ;;  %v7671_v36 = vadd.f32 %v1801_v4, %v1654_v5  ;;  %6107 = vmatprep.mubr.msk.bf16.mxu0 %vm6746_vm0, %v7533_v23  ;;  %6192 = vmatpush3.bf16.msra.mxu0 %v6614_v34  ;;  %v2871_v5 = vld [vmem:[#allocation2 + $0x53] ss:$2 sm:$0xff] }
 0x20c   : > { %v5841_v39 = vpop.f32.mrf.mxu1  ;;  %v5875_v42 = vpop.f32.mrf.mxu0  ;;  %6193 = vmatprep.subr.bf16.mxu0 %v7533_v23  ;;  %v2887_v21 = vpack.c.bf16 %v2872_v63, %v2871_v5  ;;  %v6619_v34 = vld [vmem:[%s8993_s8 + $0x90] sm:$0xff]   ;;  %v6622_v28 = vld [vmem:[%s8993_s8 + $0x78] sm:$0xff]  }
 0x20d   : > { %v2873_v39 = vld [vmem:[#allocation2 + $0x73] ss:$2 sm:$0xff]  ;;  %v6620_v42 = vld [vmem:[%s8993_s8 + $0x88] sm:$0xff]   ;;  %6140 = vmatpush3.bf16.msra.mxu1 %v6622_v28 }
 0x20e   : > { %v1612_v43 = vpop.f32.mrf.mxu1  ;;  %v1804_v2 = vpop.f32.mrf.mxu0  ;;  %6141 = vmatprep.subr.bf16.mxu1 %v7533_v23 }
 0x20f   : > { %v1657_v47 = vadd.f32 %v1612_v43, %v7570_v6  ;;  %v7680_v48 = vadd.f32 %v1804_v2, %v1655_v18  ;;  %6194 = vmatpush3.bf16.msra.mxu0 %v6615_v46  ;;  %v2888_v2 = vpack.c.bf16 %v2874_v30, %v2873_v39 }
 0x210   : > { %v5842_v52 = vpop.f32.mrf.mxu1  ;;  %v5876_v53 = vpop.f32.mrf.mxu0  ;;  %6195 = vmatprep.subr.bf16.mxu0 %v7533_v23 }
 0x211   : > { %v6621_v52 = vld [vmem:[%s8993_s8 + $0x80] sm:$0xff]  }
 0x212   : > { %v1617_v54 = vpop.f32.mrf.mxu1  ;;  %v1809_v26 = vpop.f32.mrf.mxu0  ;;  %6108 = vmatmul.mubr.msk.bf16.gmra.mxu0 %vm877_vm2, %v2886_v13 }
 0x213   : > { %v1658_v50 = vadd.f32 %v1617_v54, %v7579_v29  ;;  %v7688_v6 = vadd.f32 %v1809_v26, %v1656_v35  ;;  %6111 = vmatprep.mubr.msk.bf16.mxu0 %vm6746_vm0, %v7533_v23  ;;  %6196 = vmatpush3.bf16.msra.mxu0 %v6616_v51  ;;  %v2875_v54 = vld [vmem:[#allocation2 + $0x93] ss:$2 sm:$0xff] }
 0x214   : > { %v5845_v55 = vpop.f32.mrf.mxu1  ;;  %v5879_v59 = vpop.f32.mrf.mxu0  ;;  %6197 = vmatprep.subr.bf16.mxu0 %v7533_v23  ;;  %v6623_v26 = vld [vmem:[%s8993_s8 + $0x70] sm:$0xff]  }
 0x215   : > { %v2876_v59 = vld [vmem:[#allocation2 + $0xa3] ss:$2 sm:$0xff]  ;;  %6142 = vmatpush3.bf16.msra.mxu1 %v6623_v26 }
 0x216   : > { %v1620_v60 = vpop.f32.mrf.mxu1  ;;  %v1812_v1 = vpop.f32.mrf.mxu0  ;;  %6143 = vmatprep.subr.bf16.mxu1 %v7533_v23 }
 0x217   : > { %v1659_v3 = vadd.f32 %v1620_v60, %v7590_v44  ;;  %v7697_v29 = vadd.f32 %v1812_v1, %v1657_v47  ;;  %6198 = vmatpush3.bf16.msra.mxu0 %v6617_v57  ;;  %v2889_v1 = vpack.c.bf16 %v2876_v59, %v2875_v54  ;;  %v2882_v59 = vld [vmem:[#allocation2 + $0x103] ss:$2 sm:$0xff] }
 0x218   : > { %v5846_v7 = vpop.f32.mrf.mxu1  ;;  %v5880_v19 = vpop.f32.mrf.mxu0  ;;  %6199 = vmatprep.subr.bf16.mxu0 %v7533_v23 }
 0x21a   : > { %v1625_v31 = vpop.f32.mrf.mxu1  ;;  %v1817_v18 = vpop.f32.mrf.mxu0  ;;  %6112 = vmatmul.mubr.msk.bf16.gmra.mxu0 %vm877_vm2, %v2887_v21  ;;  %v2878_v21 = vld [vmem:[#allocation2 + $0xc3] ss:$2 sm:$0xff] }
 0x21b   : > { %v1660_v32 = vadd.f32 %v1625_v31, %v7596_v11  ;;  %v7705_v44 = vadd.f32 %v1817_v18, %v1658_v50  ;;  %6115 = vmatprep.mubr.msk.bf16.mxu0 %vm6746_vm0, %v7533_v23  ;;  %6200 = vmatpush3.bf16.msra.mxu0 %v6618_v12  ;;  %v6624_v31 = vld [vmem:[%s8993_s8 + $0x68] sm:$0xff]  }
 0x21c   : > { %v5849_v27 = vpop.f32.mrf.mxu1  ;;  %v5883_v15 = vpop.f32.mrf.mxu0  ;;  %6201 = vmatprep.subr.bf16.mxu0 %v7533_v23  ;;  %6144 = vmatpush3.bf16.msra.mxu1 %v6624_v31 }
 0x21d   : > { %v2877_v15 = vld [vmem:[#allocation2 + $0xb3] ss:$2 sm:$0xff]  ;;  %6145 = vmatprep.subr.bf16.mxu1 %v7533_v23 }
 0x21e   : > { %v1628_v11 = vpop.f32.mrf.mxu1  ;;  %v1820_v4 = vpop.f32.mrf.mxu0  ;;  %v2890_v28 = vpack.c.bf16 %v2878_v21, %v2877_v15  ;;  %v2884_v15 = vld [vmem:[#allocation2 + $0x123] ss:$2 sm:$0xff] }
 0x21f   : > { %v1661_v35 = vadd.f32 %v1628_v11, %v7603_v10  ;;  %v7717_v46 = vadd.f32 %v1820_v4, %v1659_v3  ;;  %6202 = vmatpush3.bf16.msra.mxu0 %v6619_v34 }
 0x220   : > { %v5850_v40 = vpop.f32.mrf.mxu1  ;;  %v5884_v43 = vpop.f32.mrf.mxu0  ;;  %6203 = vmatprep.subr.bf16.mxu0 %v7533_v23 }
 0x221   : > { %v2880_v40 = vld [vmem:[#allocation2 + $0xe3] ss:$2 sm:$0xff] }
 0x222   : > { %v1633_v47 = vpop.f32.mrf.mxu1  ;;  %v1825_v45 = vpop.f32.mrf.mxu0  ;;  %6116 = vmatmul.mubr.msk.bf16.gmra.mxu0 %vm877_vm2, %v2888_v2 }
 0x223   : > { %v1662_v10 = vadd.f32 %v1633_v47, %v7608_v41  ;;  %v7726_v51 = vadd.f32 %v1825_v45, %v1660_v32  ;;  %6119 = vmatprep.mubr.msk.bf16.mxu0 %vm6746_vm0, %v7533_v23  ;;  %6204 = vmatpush3.bf16.msra.mxu0 %v6620_v42 }
 0x224   : > { %v5853_v53 = vpop.f32.mrf.mxu1  ;;  %v5887_v13 = vpop.f32.mrf.mxu0  ;;  %6205 = vmatprep.subr.bf16.mxu0 %v7533_v23 }
 0x226   : > { %v1636_v41 = vpop.f32.mrf.mxu1  ;;  %v1828_v50 = vpop.f32.mrf.mxu0 }
 0x227   : > { %v1663_v57 = vadd.f32 %v1636_v41, %v7615_v38  ;;  %v7738_v55 = vadd.f32 %v1828_v50, %v1661_v35  ;;  %6206 = vmatpush3.bf16.msra.mxu0 %v6621_v52 }
 0x228   : > { %v5854_v63 = vpop.f32.mrf.mxu1  ;;  %v5888_v60 = vpop.f32.mrf.mxu0  ;;  %6295 = vmatprep.subr.bf16.mxu0 %v7533_v23 }
 0x22a   : > { %v1641_v3 = vpop.f32.mrf.mxu1  ;;  %v1833_v5 = vpop.f32.mrf.mxu0  ;;  %6120 = vmatmul.mubr.msk.bf16.gmra.mxu0 %vm877_vm2, %v2889_v1 }
 0x22b   : > { %v1664_v12 = vadd.f32 %v1641_v3, %v7620_v0  ;;  %v7744_v7 = vadd.f32 %v1833_v5, %v1662_v10  ;;  %6123 = vmatprep.mubr.msk.bf16.mxu0 %vm6746_vm0, %v7533_v23  ;;  %v2879_v10 = vld [vmem:[#allocation2 + $0xd3] ss:$2 sm:$0xff] }
 0x22c   : > { %v5857_v38 = vpop.f32.mrf.mxu1  ;;  %v5891_v19 = vpop.f32.mrf.mxu0  ;;  %v2891_v13 = vpack.c.bf16 %v2880_v40, %v2879_v10  ;;  %v2881_v5 = vld [vmem:[#allocation2 + $0xf3] ss:$2 sm:$0xff] }
 0x22d   : > { %v2892_v38 = vpack.c.bf16 %v2882_v59, %v2881_v5  ;;  %v6626_v19 = vld [vmem:[%s8993_s8 + $0x58] sm:$0xff]   ;;  %v6632_v59 = vld [vmem:[%s8993_s8 + $0x48] sm:$0xff]  }
 0x22e   : > { %v1644_v18 = vpop.f32.mrf.mxu1  ;;  %v1836_v32 = vpop.f32.mrf.mxu0  ;;  %v3442_v10 = vld [vmem:[#allocation3 + $0xf] sm:$0xff] }
 0x22f   : > { %v1665_v34 = vadd.f32 %v1644_v18, %v7628_v62  ;;  %v7752_v27 = vadd.f32 %v1836_v32, %v1663_v57 }
 0x230   : > { %v5858_v0 = vpop.f32.mrf.mxu1  ;;  %v5892_v30 = vpop.f32.mrf.mxu0 }
 0x232   : > { %v1841_v11 = vpop.f32.mrf.mxu0  ;;  %v1977_v4 = vpop.f32.mrf.mxu1  ;;  %6124 = vmatmul.mubr.msk.bf16.gmra.mxu0 %vm877_vm2, %v2890_v28 }
 0x233   : > { %v7756_v35 = vadd.f32 %v1841_v11, %v1664_v12  ;;  %v2048_v39 = vadd.f32 %v1977_v4, %v7634_v20  ;;  %6127 = vmatprep.mubr.msk.bf16.mxu0 %vm6746_vm0, %v7533_v23  ;;  %v6625_v20 = vld [vmem:[%s8993_s8 + $0x60] sm:$0xff]  }
 0x234   : > { %v5895_v62 = vpop.f32.mrf.mxu0  ;;  %v5901_v42 = vpop.f32.mrf.mxu1  ;;  %6146 = vmatpush3.bf16.msra.mxu1 %v6625_v20  ;;  %v2883_v4 = vld [vmem:[#allocation2 + $0x113] ss:$2 sm:$0xff] }
 0x235   : > { %6147 = vmatprep.subr.bf16.mxu1 %v7533_v23  ;;  %v2893_v62 = vpack.c.bf16 %v2884_v15, %v2883_v4  ;;  %v6628_v42 = vld [vmem:[%s8993_s8 + $0x50] sm:$0xff]  }
 0x236   : > { %v1844_v43 = vpop.f32.mrf.mxu0  ;;  %v1980_v2 = vpop.f32.mrf.mxu1 }
 0x237   : > { %v7761_v47 = vadd.f32 %v1844_v43, %v1665_v34  ;;  %v2049_v45 = vadd.f32 %v1980_v2, %v7641_v56 }
 0x238   : > { %v5896_v52 = vpop.f32.mrf.mxu0  ;;  %v5902_v53 = vpop.f32.mrf.mxu1  ;;  %6148 = vmatpush3.bf16.msra.mxu1 %v6626_v19 }
 0x239   : > { %6149 = vmatprep.subr.bf16.mxu1 %v7533_v23 }
 0x23a   : > { %v1985_v54 = vpop.f32.mrf.mxu1  ;;  %v2160_v26 = vpop.f32.mrf.mxu0  ;;  %6128 = vmatmul.mubr.msk.bf16.gmra.mxu0 %vm877_vm2, %v2891_v13 }
 0x23b   : > { %v2050_v41 = vadd.f32 %v1985_v54, %v7646_v49  ;;  %v7769_v50 = vadd.f32 %v2160_v26, %v2048_v39  ;;  %6131 = vmatprep.mubr.msk.bf16.mxu0 %vm6746_vm0, %v7533_v23 }
 0x23c   : > { %v5905_v56 = vpop.f32.mrf.mxu1  ;;  %v5939_v57 = vpop.f32.mrf.mxu0  ;;  %6150 = vmatpush3.bf16.msra.mxu1 %v6628_v42 }
 0x23d   : > { %6151 = vmatprep.subr.bf16.mxu1 %v7533_v23 }
 0x23e   : > { %v1988_v63 = vpop.f32.mrf.mxu1  ;;  %v2163_v60 = vpop.f32.mrf.mxu0 }
 0x23f   : > { %v2051_v1 = vadd.f32 %v1988_v63, %v7653_v37  ;;  %v7775_v3 = vadd.f32 %v2163_v60, %v2049_v45 }
 0x240   : > { %v5906_v12 = vpop.f32.mrf.mxu1  ;;  %v5940_v49 = vpop.f32.mrf.mxu0  ;;  %6152 = vmatpush3.bf16.msra.mxu1 %v6632_v59 }
 0x241   : > { %6153 = vmatprep.subr.bf16.mxu1 %v7533_v23 }
 0x242   : > { %v1993_v21 = vpop.f32.mrf.mxu1  ;;  %v2168_v31 = vpop.f32.mrf.mxu0  ;;  %6132 = vmatmul.mubr.msk.bf16.gmra.mxu0 %vm877_vm2, %v2892_v38  ;;  %v6635_v38 = vld [vmem:[%s8993_s8 + $0x40] sm:$0xff]  }
 0x243   : > { %v2052_v18 = vadd.f32 %v1993_v21, %v7657_v14  ;;  %v7782_v32 = vadd.f32 %v2168_v31, %v2050_v41  ;;  %6135 = vmatprep.mubr.msk.bf16.mxu0 %vm6746_vm0, %v7533_v23 }
 0x244   : > { %v5909_v37 = vpop.f32.mrf.mxu1  ;;  %v5943_v34 = vpop.f32.mrf.mxu0  ;;  %6154 = vmatpush3.bf16.msra.mxu1 %v6635_v38 }
 0x245   : > { %6243 = vmatprep.subr.bf16.mxu1 %v7533_v23 }
 0x246   : > { %v1996_v0 = vpop.f32.mrf.mxu1  ;;  %v2171_v30 = vpop.f32.mrf.mxu0 }
 0x247   : > { %v2053_v28 = vadd.f32 %v1996_v0, %v7664_v22  ;;  %v7788_v11 = vadd.f32 %v2171_v30, %v2051_v1  ;;  %v3441_v22 = vld [vmem:[#allocation3 + $0x7] sm:$0xff] }
 0x248   : > { %v5910_v39 = vpop.f32.mrf.mxu1  ;;  %v5944_v14 = vpop.f32.mrf.mxu0  ;;  %v3459_v54 = vpack.c.bf16 %v3442_v10, %v3441_v22 }
 0x24a   : > { %v2001_v40 = vpop.f32.mrf.mxu1  ;;  %v2176_v43 = vpop.f32.mrf.mxu0  ;;  %6136 = vmatmul.mubr.msk.bf16.gmra.mxu0 %vm877_vm2, %v2893_v62 }
 0x24b   : > { %v2054_v2 = vadd.f32 %v2001_v40, %v7671_v36  ;;  %v7795_v45 = vadd.f32 %v2176_v43, %v2052_v18  ;;  %6207 = vmatprep.mubr.msk.bf16.mxu0 %vm6746_vm0, %v7533_v23  ;;  %v6627_v36 = vld [vmem:[%s8993_s8 + $0x138] sm:$0xff]   ;;  %v6630_v18 = vld [vmem:[%s8993_s8 + $0x128] sm:$0xff]  }
 0x24c   : > { %v5913_v52 = vpop.f32.mrf.mxu1  ;;  %v5947_v53 = vpop.f32.mrf.mxu0 }
 0x24e   : > { %v2004_v13 = vpop.f32.mrf.mxu1  ;;  %v2179_v20 = vpop.f32.mrf.mxu0 }
 0x24f   : > { %v2055_v26 = vadd.f32 %v2004_v13, %v7680_v48  ;;  %v7801_v41 = vadd.f32 %v2179_v20, %v2053_v28  ;;  %v6629_v48 = vld [vmem:[%s8993_s8 + $0x130] sm:$0xff]  }
 0x250   : > { %v5914_v56 = vpop.f32.mrf.mxu1  ;;  %v5948_v57 = vpop.f32.mrf.mxu0 }
 0x252   : > { %v2009_v63 = vpop.f32.mrf.mxu1  ;;  %v2184_v60 = vpop.f32.mrf.mxu0  ;;  %6208 = vmatmul.mubr.bf16.vlgmr.msra.gmra.mxu0 %v3459_v54 }
 0x253   : > { %v2056_v1 = vadd.f32 %v2009_v63, %v7688_v6  ;;  %v7810_v5 = vadd.f32 %v2184_v60, %v2054_v2  ;;  %6211 = vmatprep.mubr.msk.bf16.mxu0 %vm6746_vm0, %v7533_v23  ;;  %6296 = vmatpush3.bf16.msra.mxu0 %v6627_v36 }
 0x254   : > { %v5917_v12 = vpop.f32.mrf.mxu1  ;;  %v5951_v49 = vpop.f32.mrf.mxu0  ;;  %6297 = vmatprep.subr.bf16.mxu0 %v7533_v23 }
 0x256   : > { %v2012_v6 = vpop.f32.mrf.mxu1  ;;  %v2187_v19 = vpop.f32.mrf.mxu0 }
 0x257   : > { %v2057_v21 = vadd.f32 %v2012_v6, %v7697_v29  ;;  %v7823_v31 = vadd.f32 %v2187_v19, %v2055_v26  ;;  %6298 = vmatpush3.bf16.msra.mxu0 %v6629_v48  ;;  %v6631_v29 = vld [vmem:[%s8993_s8 + $0x120] sm:$0xff]  }
 0x258   : > { %v5918_v37 = vpop.f32.mrf.mxu1  ;;  %v5952_v34 = vpop.f32.mrf.mxu0  ;;  %6299 = vmatprep.subr.bf16.mxu0 %v7533_v23 }
 0x25a   : > { %v2017_v15 = vpop.f32.mrf.mxu1  ;;  %v2192_v0 = vpop.f32.mrf.mxu0 }
 0x25b   : > { %v2058_v30 = vadd.f32 %v2017_v15, %v7705_v44  ;;  %v7831_v28 = vadd.f32 %v2192_v0, %v2056_v1  ;;  %6300 = vmatpush3.bf16.msra.mxu0 %v6630_v18  ;;  %v6633_v44 = vld [vmem:[%s8993_s8 + $0x118] sm:$0xff]  }
 0x25c   : > { %v5921_v4 = vpop.f32.mrf.mxu1  ;;  %v5955_v39 = vpop.f32.mrf.mxu0  ;;  %6301 = vmatprep.subr.bf16.mxu0 %v7533_v23 }
 0x25e   : > { %v2020_v14 = vpop.f32.mrf.mxu1  ;;  %v2195_v62 = vpop.f32.mrf.mxu0 }
 0x25f   : > { %v2059_v42 = vadd.f32 %v2020_v14, %v7717_v46  ;;  %v7838_v40 = vadd.f32 %v2195_v62, %v2057_v21  ;;  %6302 = vmatpush3.bf16.msra.mxu0 %v6631_v29  ;;  %v6634_v46 = vld [vmem:[%s8993_s8 + $0x110] sm:$0xff]  }
 0x260   : > { %v5922_v43 = vpop.f32.mrf.mxu1  ;;  %v5956_v2 = vpop.f32.mrf.mxu0  ;;  %6303 = vmatprep.subr.bf16.mxu0 %v7533_v23 }
 0x262   : > { %v2025_v22 = vpop.f32.mrf.mxu1  ;;  %v2200_v10 = vpop.f32.mrf.mxu0 }
 0x263   : > { %v2060_v52 = vadd.f32 %v2025_v22, %v7726_v51  ;;  %v7845_v53 = vadd.f32 %v2200_v10, %v2058_v30  ;;  %6304 = vmatpush3.bf16.msra.mxu0 %v6633_v44  ;;  %v6636_v51 = vld [vmem:[%s8993_s8 + $0x108] sm:$0xff]  }
 0x264   : > { %v5925_v13 = vpop.f32.mrf.mxu1  ;;  %v5959_v20 = vpop.f32.mrf.mxu0  ;;  %6305 = vmatprep.subr.bf16.mxu0 %v7533_v23 }
 0x266   : > { %v2028_v54 = vpop.f32.mrf.mxu1  ;;  %v2203_v26 = vpop.f32.mrf.mxu0 }
 0x267   : > { %v2061_v36 = vadd.f32 %v2028_v54, %v7738_v55  ;;  %v7852_v56 = vadd.f32 %v2203_v26, %v2059_v42  ;;  %6306 = vmatpush3.bf16.msra.mxu0 %v6634_v46  ;;  %v6637_v55 = vld [vmem:[%s8993_s8 + $0x100] sm:$0xff]  }
 0x268   : > { %v5926_v57 = vpop.f32.mrf.mxu1  ;;  %v5960_v59 = vpop.f32.mrf.mxu0  ;;  %6307 = vmatprep.subr.bf16.mxu0 %v7533_v23  ;;  %v7883_v26 = vld [vmem:[%s8990_s5] ss:$0 sm:$0xff] }
 0x26a   : > { %v2033_v63 = vpop.f32.mrf.mxu1  ;;  %v2208_v60 = vpop.f32.mrf.mxu0 }
 0x26b   : > { %v2062_v1 = vadd.f32 %v2033_v63, %v7744_v7  ;;  %v7859_v48 = vadd.f32 %v2208_v60, %v2060_v52  ;;  %6308 = vmatpush3.bf16.msra.mxu0 %v6636_v51  ;;  %v7888_v51 = vld [vmem:[%s8991_s6] ss:$0 sm:$0xff] }
 0x26c   : > { %v5929_v12 = vpop.f32.mrf.mxu1  ;;  %v5963_v49 = vpop.f32.mrf.mxu0  ;;  %6309 = vmatprep.subr.bf16.mxu0 %v7533_v23 }
 0x26e   : > { %v2036_v38 = vpop.f32.mrf.mxu1  ;;  %v2211_v6 = vpop.f32.mrf.mxu0 }
 0x26f   : > { %v2063_v19 = vadd.f32 %v2036_v38, %v7752_v27  ;;  %v7866_v21 = vadd.f32 %v2211_v6, %v2061_v36  ;;  %6310 = vmatpush3.bf16.msra.mxu0 %v6637_v55 }
 0x270   : > { %v5930_v18 = vpop.f32.mrf.mxu1  ;;  %v5964_v7 = vpop.f32.mrf.mxu0  ;;  %6399 = vmatprep.subr.bf16.mxu0 %v7533_v23 }
 0x272   : > { %v2041_v37 = vpop.f32.mrf.mxu1  ;;  %v2216_v34 = vpop.f32.mrf.mxu0 }
 0x273   : > { %v2064_v15 = vadd.f32 %v2041_v37, %v7756_v35  ;;  %v7870_v0 = vadd.f32 %v2216_v34, %v2062_v1 }
 0x274   : > { %v5933_v30 = vpop.f32.mrf.mxu1  ;;  %v5967_v29 = vpop.f32.mrf.mxu0 }
 0x276   : > { %v2044_v4 = vpop.f32.mrf.mxu1  ;;  %v2219_v39 = vpop.f32.mrf.mxu0 }
 0x277   : > { %v2065_v14 = vadd.f32 %v2044_v4, %v7761_v47  ;;  %v7873_v27 = vadd.f32 %v2219_v39, %v2063_v19  ;;  %v2743_v4 = vpop.permute.xlu0 %2742 }
 0x278   : > { %v5934_v62 = vpop.f32.mrf.mxu1  ;;  %v5968_v42 = vpop.f32.mrf.mxu0 }
 0x27a   : > { %v2224_v44 = vpop.f32.mrf.mxu0  ;;  %v2360_v43 = vpop.f32.mrf.mxu1 }
 0x27b   : > { %v7875_v2 = vadd.f32 %v2224_v44, %v2064_v15  ;;  %v2431_v20 = vadd.f32 %v2360_v43, %v7769_v50 }
 0x27c   : > { %v5971_v23 = vpop.f32.mrf.mxu0  ;;  %v5977_v22 = vpop.f32.mrf.mxu1 }
 0x27e   : > { %v2227_v10 = vpop.f32.mrf.mxu0  ;;  %v2363_v35 = vpop.f32.mrf.mxu1 }
 0x27f   : > { %v7877_v52 = vadd.f32 %v2227_v10, %v2065_v14  ;;  %v2432_v63 = vadd.f32 %v2363_v35, %v7775_v3 }
 0x280   : > { %v5972_v46 = vpop.f32.mrf.mxu0  ;;  %v5978_v13 = vpop.f32.mrf.mxu1 }
 0x282   : > { %v2368_v54 = vpop.f32.mrf.mxu1  ;;  %v2560_v47 = vpop.f32.mrf.mxu0 }
 0x283   : > { %v2631_v36 = vadd.f32 %v2560_v47, %v2431_v20  ;;  %v2433_v6 = vadd.f32 %v2368_v54, %v7782_v32 }
 0x284   : > { %v5981_v57 = vpop.f32.mrf.mxu1  ;;  %v6015_v59 = vpop.f32.mrf.mxu0 }
 0x285   : > { %v2656_v60 = vmul.f32 %v7883_v26, %v2631_v36 }
 0x286   : > { %v2371_v50 = vpop.f32.mrf.mxu1  ;;  %v2563_v1 = vpop.f32.mrf.mxu0 }
 0x287   : > { %v2681_v55 = vadd.f32 %v7888_v51, %v2656_v60  ;;  %v2632_v12 = vadd.f32 %v2563_v1, %v2432_v63  ;;  %v2434_v39 = vadd.f32 %v2371_v50, %v7788_v11  ;;  %v2753_v63 = vpop.permute.xlu0 %2752 }
 0x288   : > { %v5982_v49 = vpop.f32.mrf.mxu1  ;;  %v6016_v38 = vpop.f32.mrf.mxu0 }
 0x289   : > { %v2699_v19 = vmax.f32 %v2681_v55, 0.0  ;;  %v2657_v18 = vmul.f32 %v7883_v26, %v2632_v12 }
 0x28a   : > { %v2376_v7 = vpop.f32.mrf.mxu1  ;;  %v2568_v37 = vpop.f32.mrf.mxu0 }
 0x28b   : > { %v7896_v34 = vmul.f32 %v7251_v58, %v2699_v19  ;;  %v2682_v3 = vadd.f32 %v7888_v51, %v2657_v18  ;;  %v2633_v15 = vadd.f32 %v2568_v37, %v2433_v6  ;;  %v2435_v10 = vadd.f32 %v2376_v7, %v7795_v45 }
 0x28c   : > { %v5985_v30 = vpop.f32.mrf.mxu1  ;;  %v6019_v29 = vpop.f32.mrf.mxu0 }
 0x28d   : > { %2846 = vst [vmem:[#allocation3 + $0x18] sm:$0xff] %v7896_v34  ;;  %v2700_v14 = vmax.f32 %v2682_v3, 0.0  ;;  %v2658_v32 = vmul.f32 %v7883_v26, %v2633_v15 }
 0x28e   : > { %v2379_v62 = vpop.f32.mrf.mxu1  ;;  %v2571_v42 = vpop.f32.mrf.mxu0 }
 0x28f   : > { %v7902_v44 = vmul.f32 %v2743_v4, %v2700_v14  ;;  %v2683_v58 = vadd.f32 %v7888_v51, %v2658_v32  ;;  %v2634_v43 = vadd.f32 %v2571_v42, %v2434_v39  ;;  %v2436_v45 = vadd.f32 %v2379_v62, %v7801_v41 }
 0x290   : > { %v5986_v23 = vpop.f32.mrf.mxu1  ;;  %v6020_v22 = vpop.f32.mrf.mxu0 }
 0x291   : > { %2847 = vst [vmem:[#allocation3 + $0x20] sm:$0xff] %v7902_v44  ;;  %v2701_v35 = vmax.f32 %v2683_v58, 0.0  ;;  %v2659_v46 = vmul.f32 %v7883_v26, %v2634_v43  ;;  %v3889_v11 = vpack.c.bf16 %v7902_v44, %v7896_v34  ;;  %v7932_v43 = vld [vmem:[#allocation3] sm:$0xff]  ;;  %v2763_v23 = vpop.permute.xlu0 %2762 }
 0x292   : > { %v2384_v13 = vpop.f32.mrf.mxu1  ;;  %v2576_v20 = vpop.f32.mrf.mxu0  ;;  %v6645_v34 = vld [vmem:[%s8993_s8 + $0x1b0] sm:$0xff]  }
 0x293   : > { %v7911_v54 = vmul.f32 %v7261_v61, %v2701_v35  ;;  %v2684_v47 = vadd.f32 %v7888_v51, %v2659_v46  ;;  %v2635_v36 = vadd.f32 %v2576_v20, %v2435_v10  ;;  %v2437_v6 = vadd.f32 %v2384_v13, %v7810_v5 }
 0x294   : > { %v5989_v57 = vpop.f32.mrf.mxu1  ;;  %v6023_v59 = vpop.f32.mrf.mxu0  ;;  %v2897_v38 = vld [vmem:[#allocation3 + $0x15] sm:$0xff] }
 0x295   : > { %2848 = vst [vmem:[#allocation3 + $0x28] sm:$0xff] %v7911_v54  ;;  %v2702_v60 = vmax.f32 %v2684_v47, 0.0  ;;  %v2660_v50 = vmul.f32 %v7883_v26, %v2635_v36  ;;  %v3443_v37 = vld [vmem:[#allocation3 + $0x17] sm:$0xff] }
 0x296   : > { %v2387_v1 = vpop.f32.mrf.mxu1  ;;  %v2579_v55 = vpop.f32.mrf.mxu0 }
 0x297   : > { %v7917_v12 = vmul.f32 %v2753_v63, %v2702_v60  ;;  %v2685_v61 = vadd.f32 %v7888_v51, %v2660_v50  ;;  %v2636_v49 = vadd.f32 %v2579_v55, %v2436_v45  ;;  %v2438_v22 = vadd.f32 %v2387_v1, %v7823_v31 }
 0x298   : > { %v5990_v19 = vpop.f32.mrf.mxu1  ;;  %v6024_v18 = vpop.f32.mrf.mxu0  ;;  %v2898_v7 = vld [vmem:[#allocation3 + $0x1d] sm:$0xff] }
 0x299   : > { %v3444_v3 = vld [vmem:[#allocation3 + $0x1f] sm:$0xff]  ;;  %2849 = vst [vmem:[#allocation3 + $0x30] sm:$0xff] %v7917_v12  ;;  %v2703_v41 = vmax.f32 %v2685_v61, 0.0  ;;  %v2661_v15 = vmul.f32 %v7883_v26, %v2636_v49  ;;  %v2914_v30 = vpack.c.bf16 %v2898_v7, %v2897_v38  ;;  %v3890_v14 = vpack.c.bf16 %v7917_v12, %v7911_v54  ;;  %v6647_v54 = vld [vmem:[%s8993_s8 + $0x1a0] sm:$0xff]  }
 0x29a   : > { %v7923_v29 = vpack.c.bf16 %v3444_v3, %v3443_v37  ;;  %v2392_v4 = vpop.f32.mrf.mxu1  ;;  %v2584_v39 = vpop.f32.mrf.mxu0 }
 0x29b   : > { %v7928_v5 = vmul.f32 %v7267_v8, %v2703_v41  ;;  %v2686_v32 = vadd.f32 %v7888_v51, %v2661_v15  ;;  %v2637_v62 = vadd.f32 %v2584_v39, %v2437_v6  ;;  %6070 = vmatmul.mubr.bf16.gmra.mxu1 %v2914_v30  ;;  %v2439_v57 = vadd.f32 %v2392_v4, %v7831_v28  ;;  %v2773_v3 = vpop.permute.xlu0 %2772 }
 0x29c   : > { %6212 = vmatmul.mubr.bf16.gmra.mxu0 %v7923_v29  ;;  %v5993_v42 = vpop.f32.mrf.mxu1  ;;  %v6027_v58 = vpop.f32.mrf.mxu0  ;;  %6073 = vmatprep.mubr.msk.bf16.mxu1 %vm6746_vm0, %v7932_v43  ;;  %v2899_v36 = vld [vmem:[#allocation3 + $0x25] sm:$0xff] }
 0x29d   : > { %2850 = vst [vmem:[#allocation3 + $0x38] sm:$0xff] %v7928_v5  ;;  %v2704_v8 = vmax.f32 %v2686_v32, 0.0  ;;  %v2662_v10 = vmul.f32 %v7883_v26, %v2637_v62  ;;  %6215 = vmatprep.mubr.msk.bf16.mxu0 %vm6746_vm0, %v7932_v43  ;;  %v3445_v31 = vld [vmem:[#allocation3 + $0x27] sm:$0xff] }
 0x29e   : > { %v2395_v35 = vpop.f32.mrf.mxu1  ;;  %v2587_v46 = vpop.f32.mrf.mxu0 }
 0x29f   : > { %v7941_v13 = vmul.f32 %v2763_v23, %v2704_v8  ;;  %v2687_v20 = vadd.f32 %v7888_v51, %v2662_v10  ;;  %v2638_v47 = vadd.f32 %v2587_v46, %v2438_v22  ;;  %v2440_v41 = vadd.f32 %v2395_v35, %v7838_v40 }
 0x2a0   : > { %v5994_v59 = vpop.f32.mrf.mxu1  ;;  %v6028_v63 = vpop.f32.mrf.mxu0  ;;  %v2900_v45 = vld [vmem:[#allocation3 + $0x2d] sm:$0xff] }
 0x2a1   : > { %v3446_v60 = vld [vmem:[#allocation3 + $0x2f] sm:$0xff]  ;;  %2851 = vst [vmem:[#allocation3 + $0x40] sm:$0xff] %v7941_v13  ;;  %v2705_v50 = vmax.f32 %v2687_v20, 0.0  ;;  %v2663_v1 = vmul.f32 %v7883_v26, %v2638_v47  ;;  %v2915_v55 = vpack.c.bf16 %v2900_v45, %v2899_v36  ;;  %v3891_v6 = vpack.c.bf16 %v7941_v13, %v7928_v5  ;;  %v6650_v5 = vld [vmem:[%s8993_s8 + $0x190] sm:$0xff]  }
 0x2a2   : > { %v7947_v61 = vpack.c.bf16 %v3446_v60, %v3445_v31  ;;  %v2400_v49 = vpop.f32.mrf.mxu1  ;;  %v2592_v38 = vpop.f32.mrf.mxu0 }
 0x2a3   : > { %v7952_v28 = vmul.f32 %v7276_v9, %v2705_v50  ;;  %v2688_v19 = vadd.f32 %v7888_v51, %v2663_v1  ;;  %v2639_v18 = vadd.f32 %v2592_v38, %v2439_v57  ;;  %6074 = vmatmul.mubr.bf16.gmra.mxu1 %v2915_v55  ;;  %v2441_v58 = vadd.f32 %v2400_v49, %v7845_v53  ;;  %v2783_v50 = vpop.permute.xlu0 %2782 }
 0x2a4   : > { %6216 = vmatmul.mubr.bf16.gmra.mxu0 %v7947_v61  ;;  %v5997_v7 = vpop.f32.mrf.mxu1  ;;  %v6031_v37 = vpop.f32.mrf.mxu0  ;;  %6077 = vmatprep.mubr.msk.bf16.mxu1 %vm6746_vm0, %v7932_v43  ;;  %v2901_v42 = vld [vmem:[#allocation3 + $0x35] sm:$0xff] }
 0x2a5   : > { %2852 = vst [vmem:[#allocation3 + $0x48] sm:$0xff] %v7952_v28  ;;  %v2706_v15 = vmax.f32 %v2688_v19, 0.0  ;;  %v2664_v9 = vmul.f32 %v7883_v26, %v2639_v18  ;;  %6219 = vmatprep.mubr.msk.bf16.mxu0 %vm6746_vm0, %v7932_v43  ;;  %v3447_v40 = vld [vmem:[#allocation3 + $0x37] sm:$0xff] }
 0x2a6   : > { %v2403_v30 = vpop.f32.mrf.mxu1  ;;  %v2595_v4 = vpop.f32.mrf.mxu0 }
 0x2a7   : > { %v7963_v39 = vmul.f32 %v2773_v3, %v2706_v15  ;;  %v2689_v32 = vadd.f32 %v7888_v51, %v2664_v9  ;;  %v2640_v62 = vadd.f32 %v2595_v4, %v2440_v41  ;;  %v2442_v1 = vadd.f32 %v2403_v30, %v7852_v56 }
 0x2a8   : > { %v5998_v23 = vpop.f32.mrf.mxu1  ;;  %v6032_v22 = vpop.f32.mrf.mxu0  ;;  %v2902_v8 = vld [vmem:[#allocation3 + $0x3d] sm:$0xff] }
 0x2a9   : > { %v3448_v10 = vld [vmem:[#allocation3 + $0x3f] sm:$0xff]  ;;  %2853 = vst [vmem:[#allocation3 + $0x50] sm:$0xff] %v7963_v39  ;;  %v2707_v35 = vmax.f32 %v2689_v32, 0.0  ;;  %v2665_v46 = vmul.f32 %v7883_v26, %v2640_v62  ;;  %v2916_v20 = vpack.c.bf16 %v2902_v8, %v2901_v42  ;;  %v3892_v59 = vpack.c.bf16 %v7963_v39, %v7952_v28  ;;  %v6653_v28 = vld [vmem:[%s8993_s8 + $0x180] sm:$0xff]  }
 0x2aa   : > { %v7969_v47 = vpack.c.bf16 %v3448_v10, %v3447_v40  ;;  %v2408_v36 = vpop.f32.mrf.mxu1  ;;  %v2600_v57 = vpop.f32.mrf.mxu0 }
 0x2ab   : > { %v7974_v53 = vmul.f32 %v7278_v16, %v2707_v35  ;;  %v2690_v63 = vadd.f32 %v7888_v51, %v2665_v46  ;;  %v2641_v45 = vadd.f32 %v2600_v57, %v2441_v58  ;;  %6078 = vmatmul.mubr.bf16.gmra.mxu1 %v2916_v20  ;;  %v2443_v3 = vadd.f32 %v2408_v36, %v7859_v48  ;;  %v2793_v46 = vpop.permute.xlu0 %2792 }
 0x2ac   : > { %6220 = vmatmul.mubr.bf16.gmra.mxu0 %v7969_v47  ;;  %v6001_v31 = vpop.f32.mrf.mxu1  ;;  %v6035_v60 = vpop.f32.mrf.mxu0  ;;  %6081 = vmatprep.mubr.msk.bf16.mxu1 %vm6746_vm0, %v7932_v43  ;;  %v2903_v37 = vld [vmem:[#allocation3 + $0x45] sm:$0xff] }
 0x2ad   : > { %2854 = vst [vmem:[#allocation3 + $0x58] sm:$0xff] %v7974_v53  ;;  %v2708_v55 = vmax.f32 %v2690_v63, 0.0  ;;  %v2666_v16 = vmul.f32 %v7883_v26, %v2641_v45  ;;  %6223 = vmatprep.mubr.msk.bf16.mxu0 %vm6746_vm0, %v7932_v43  ;;  %v3449_v56 = vld [vmem:[#allocation3 + $0x47] sm:$0xff] }
 0x2ae   : > { %v2411_v49 = vpop.f32.mrf.mxu1  ;;  %v2603_v38 = vpop.f32.mrf.mxu0 }
 0x2af   : > { %v7985_v19 = vmul.f32 %v2783_v50, %v2708_v55  ;;  %v2691_v18 = vadd.f32 %v7888_v51, %v2666_v16  ;;  %v2642_v7 = vadd.f32 %v2603_v38, %v2442_v1  ;;  %v2444_v20 = vadd.f32 %v2411_v49, %v7866_v21 }
 0x2b0   : > { %v6002_v41 = vpop.f32.mrf.mxu1  ;;  %v6036_v15 = vpop.f32.mrf.mxu0  ;;  %v2904_v9 = vld [vmem:[#allocation3 + $0x4d] sm:$0xff] }
 0x2b1   : > { %v3450_v30 = vld [vmem:[#allocation3 + $0x4f] sm:$0xff]  ;;  %2855 = vst [vmem:[#allocation3 + $0x60] sm:$0xff] %v7985_v19  ;;  %v2709_v4 = vmax.f32 %v2691_v18, 0.0  ;;  %v2667_v32 = vmul.f32 %v7883_v26, %v2642_v7  ;;  %v2917_v62 = vpack.c.bf16 %v2904_v9, %v2903_v37  ;;  %v3893_v22 = vpack.c.bf16 %v7985_v19, %v7974_v53 }
 0x2b2   : > { %v7991_v42 = vpack.c.bf16 %v3450_v30, %v3449_v56  ;;  %v2416_v58 = vpop.f32.mrf.mxu1  ;;  %v2608_v23 = vpop.f32.mrf.mxu0 }
 0x2b3   : > { %v7996_v48 = vmul.f32 %v7286_v17, %v2709_v4  ;;  %v2692_v8 = vadd.f32 %v7888_v51, %v2667_v32  ;;  %v2643_v40 = vadd.f32 %v2608_v23, %v2443_v3  ;;  %6082 = vmatmul.mubr.bf16.gmra.mxu1 %v2917_v62  ;;  %v2445_v1 = vadd.f32 %v2416_v58, %v7870_v0  ;;  %v2803_v62 = vpop.permute.xlu0 %2802 }
 0x2b4   : > { %6224 = vmatmul.mubr.bf16.gmra.mxu0 %v7991_v42  ;;  %v6005_v10 = vpop.f32.mrf.mxu1  ;;  %v6039_v35 = vpop.f32.mrf.mxu0  ;;  %6085 = vmatprep.mubr.msk.bf16.mxu1 %vm6746_vm0, %v7932_v43  ;;  %v2905_v50 = vld [vmem:[#allocation3 + $0x55] sm:$0xff] }
 0x2b5   : > { %2856 = vst [vmem:[#allocation3 + $0x68] sm:$0xff] %v7996_v48  ;;  %v2710_v36 = vmax.f32 %v2692_v8, 0.0  ;;  %v2668_v17 = vmul.f32 %v7883_v26, %v2643_v40  ;;  %6227 = vmatprep.mubr.msk.bf16.mxu0 %vm6746_vm0, %v7932_v43  ;;  %v3451_v21 = vld [vmem:[#allocation3 + $0x57] sm:$0xff] }
 0x2b6   : > { %v2419_v57 = vpop.f32.mrf.mxu1  ;;  %v2611_v63 = vpop.f32.mrf.mxu0 }
 0x2b7   : > { %v8007_v45 = vmul.f32 %v2793_v46, %v2710_v36  ;;  %v2693_v31 = vadd.f32 %v7888_v51, %v2668_v17  ;;  %v2644_v60 = vadd.f32 %v2611_v63, %v2444_v20  ;;  %v2446_v58 = vadd.f32 %v2419_v57, %v7873_v27 }
 0x2b8   : > { %v6006_v55 = vpop.f32.mrf.mxu1  ;;  %v6040_v16 = vpop.f32.mrf.mxu0  ;;  %v2906_v38 = vld [vmem:[#allocation3 + $0x5d] sm:$0xff] }
 0x2b9   : > { %v3452_v49 = vld [vmem:[#allocation3 + $0x5f] sm:$0xff]  ;;  %2857 = vst [vmem:[#allocation3 + $0x70] sm:$0xff] %v8007_v45  ;;  %v2711_v18 = vmax.f32 %v2693_v31, 0.0  ;;  %v2669_v7 = vmul.f32 %v7883_v26, %v2644_v60  ;;  %v2918_v37 = vpack.c.bf16 %v2906_v38, %v2905_v50  ;;  %v3894_v9 = vpack.c.bf16 %v8007_v45, %v7996_v48 }
 0x2ba   : > { %v8013_v3 = vpack.c.bf16 %v3452_v49, %v3451_v21  ;;  %v2424_v41 = vpop.f32.mrf.mxu1  ;;  %v2616_v15 = vpop.f32.mrf.mxu0 }
 0x2bb   : > { %v8018_v0 = vmul.f32 %v7288_v24, %v2711_v18  ;;  %v2694_v56 = vadd.f32 %v7888_v51, %v2669_v7  ;;  %v2645_v30 = vadd.f32 %v2616_v15, %v2445_v1  ;;  %6086 = vmatmul.mubr.bf16.gmra.mxu1 %v2918_v37  ;;  %v2447_v36 = vadd.f32 %v2424_v41, %v7875_v2  ;;  %v2813_v41 = vpop.permute.xlu0 %2812 }
 0x2bc   : > { %6228 = vmatmul.mubr.bf16.gmra.mxu0 %v8013_v3  ;;  %v6009_v4 = vpop.f32.mrf.mxu1  ;;  %v6043_v32 = vpop.f32.mrf.mxu0  ;;  %6089 = vmatprep.mubr.msk.bf16.mxu1 %vm6746_vm0, %v7932_v43  ;;  %v2907_v20 = vld [vmem:[#allocation3 + $0x65] sm:$0xff] }
 0x2bd   : > { %2858 = vst [vmem:[#allocation3 + $0x78] sm:$0xff] %v8018_v0  ;;  %v2712_v23 = vmax.f32 %v2694_v56, 0.0  ;;  %v2670_v24 = vmul.f32 %v7883_v26, %v2645_v30  ;;  %6231 = vmatprep.mubr.msk.bf16.mxu0 %vm6746_vm0, %v7932_v43  ;;  %v3453_v27 = vld [vmem:[#allocation3 + $0x67] sm:$0xff] }
 0x2be   : > { %v2427_v8 = vpop.f32.mrf.mxu1  ;;  %v2619_v40 = vpop.f32.mrf.mxu0 }
 0x2bf   : > { %v8029_v10 = vmul.f32 %v2803_v62, %v2712_v23  ;;  %v2695_v35 = vadd.f32 %v7888_v51, %v2670_v24  ;;  %v2646_v46 = vadd.f32 %v2619_v40, %v2446_v58  ;;  %v2448_v15 = vadd.f32 %v2427_v8, %v7877_v52 }
 0x2c0   : > { %v6010_v17 = vpop.f32.mrf.mxu1  ;;  %v6044_v63 = vpop.f32.mrf.mxu0  ;;  %v2908_v31 = vld [vmem:[#allocation3 + $0x6d] sm:$0xff] }
 0x2c1   : > { %v3454_v57 = vld [vmem:[#allocation3 + $0x6f] sm:$0xff]  ;;  %2859 = vst [vmem:[#allocation3 + $0x80] sm:$0xff] %v8029_v10  ;;  %v2713_v60 = vmax.f32 %v2695_v35, 0.0  ;;  %v2671_v50 = vmul.f32 %v7883_v26, %v2646_v46  ;;  %v2919_v1 = vpack.c.bf16 %v2908_v31, %v2907_v20  ;;  %v3895_v21 = vpack.c.bf16 %v8029_v10, %v8018_v0 }
 0x2c2   : > { %v8035_v55 = vpack.c.bf16 %v3454_v57, %v3453_v27  ;;  %v2624_v16 = vpop.f32.mrf.mxu0  ;;  %v3020_v38 = vpop.f32.mrf.mxu1 }
 0x2c3   : > { %v8040_v2 = vmul.f32 %v7296_v25, %v2713_v60  ;;  %v2696_v49 = vadd.f32 %v7888_v51, %v2671_v50  ;;  %v2647_v18 = vadd.f32 %v2624_v16, %v2447_v36  ;;  %6090 = vmatmul.mubr.bf16.gmra.mxu1 %v2919_v1  ;;  %v2823_v1 = vpop.permute.xlu0 %2822 }
 0x2c4   : > { %6232 = vmatmul.mubr.bf16.gmra.mxu0 %v8035_v55  ;;  %v6047_v7 = vpop.f32.mrf.mxu0  ;;  %6093 = vmatprep.mubr.msk.bf16.mxu1 %vm6746_vm0, %v7932_v43  ;;  %v6067_v37 = vpop.f32.mrf.mxu1  ;;  %v2909_v23 = vld [vmem:[#allocation3 + $0x75] sm:$0xff] }
 0x2c5   : > { %2860 = vst [vmem:[#allocation3 + $0x88] sm:$0xff] %v8040_v2  ;;  %v2714_v56 = vmax.f32 %v2696_v49, 0.0  ;;  %v2672_v25 = vmul.f32 %v7883_v26, %v2647_v18  ;;  %6235 = vmatprep.mubr.msk.bf16.mxu0 %vm6746_vm0, %v7932_v43  ;;  %v3455_v35 = vld [vmem:[#allocation3 + $0x77] sm:$0xff] }
 0x2c6   : > { %v2627_v30 = vpop.f32.mrf.mxu0  ;;  %v3023_v4 = vpop.f32.mrf.mxu1 }
 0x2c7   : > { %v8051_v32 = vmul.f32 %v2813_v41, %v2714_v56  ;;  %v2697_v62 = vadd.f32 %v7888_v51, %v2672_v25  ;;  %v2648_v58 = vadd.f32 %v2627_v30, %v2448_v15 }
 0x2c8   : > { %v6048_v24 = vpop.f32.mrf.mxu0  ;;  %v2910_v40 = vld [vmem:[#allocation3 + $0x7d] sm:$0xff]  ;;  %v6068_v20 = vpop.f32.mrf.mxu1 }
 0x2c9   : > { %v3456_v46 = vld [vmem:[#allocation3 + $0x7f] sm:$0xff]  ;;  %2861 = vst [vmem:[#allocation3 + $0x90] sm:$0xff] %v8051_v32  ;;  %v2715_v52 = vmax.f32 %v2697_v62, 0.0  ;;  %v2673_v8 = vmul.f32 %v7883_v26, %v2648_v58  ;;  %v2920_v36 = vpack.c.bf16 %v2910_v40, %v2909_v23  ;;  %v3896_v31 = vpack.c.bf16 %v8051_v32, %v8040_v2  ;;  %v3227_v62 = vld [vmem:[#allocation3 + $0xe] sm:$0xff] }
 0x2ca   : > { %v8056_v17 = vpack.c.bf16 %v3456_v46, %v3455_v35  ;;  %v3155_v63 = vpop.f32.mrf.mxu0  ;;  %v6638_v40 = vld [vmem:[%s8993_s8 + $0xf8] sm:$0xff]   ;;  %v4302_v2 = vld [vmem:[#allocation3 + $0x31] sm:$0xff] }
 0x2cb   : > { %v8061_v27 = vmul.f32 %v7298_v33, %v2715_v52  ;;  %v2698_v57 = vadd.f32 %v7888_v51, %v2673_v8  ;;  %v8064_v60 = vadd.f32 %v3155_v63, %v3020_v38  ;;  %6094 = vmatmul.mubr.bf16.gmra.mxu1 %v2920_v36  ;;  %v6643_v46 = vld [vmem:[%s8993_s8 + $0x1b8] sm:$0xff]   ;;  %v6639_v52 = vld [vmem:[%s8993_s8 + $0xf0] sm:$0xff]  }
 0x2cc   : > { %6236 = vmatmul.mubr.bf16.gmra.mxu0 %v8056_v17  ;;  %v6105_v50 = vpop.f32.mrf.mxu0  ;;  %6097 = vmatprep.mubr.msk.bf16.mxu1 %vm6746_vm0, %v7932_v43  ;;  %v2911_v38 = vld [vmem:[#allocation3 + $0x85] sm:$0xff] }
 0x2cd   : > { %2862 = vst [vmem:[#allocation3 + $0x98] sm:$0xff] %v8061_v27  ;;  %v2716_v26 = vmax.f32 %v2698_v57, 0.0  ;;  %6239 = vmatprep.mubr.msk.bf16.mxu0 %vm6746_vm0, %v7932_v43  ;;  %v3457_v7 = vld [vmem:[#allocation3 + $0x87] sm:$0xff]  ;;  %v3229_v36 = vld [vmem:[#allocation3 + $0x1e] sm:$0xff] }
 0x2ce   : > { %v3158_v33 = vpop.f32.mrf.mxu0  ;;  %v6640_v57 = vld [vmem:[%s8993_s8 + $0xe8] sm:$0xff]   ;;  %v6654_v32 = vld [vmem:[%s8993_s8 + $0x178] sm:$0xff]  }
 0x2cf   : > { %v8072_v16 = vmul.f32 %v2823_v1, %v2716_v26  ;;  %v8074_v51 = vadd.f32 %v3158_v33, %v3023_v4  ;;  %v3226_v4 = vld [vmem:[#allocation3 + $0x6] sm:$0xff]  ;;  %v6646_v26 = vld [vmem:[%s8993_s8 + $0x1a8] sm:$0xff]   ;;  %v6641_v33 = vld [vmem:[%s8993_s8 + $0xe0] sm:$0xff]  }
 0x2d0   : > { %v6106_v49 = vpop.f32.mrf.mxu0  ;;  %v2912_v18 = vld [vmem:[#allocation3 + $0x8d] sm:$0xff]  ;;  %v3244_v23 = vpack.c.bf16 %v3227_v62, %v3226_v4  ;;  %v6644_v4 = vld [vmem:[%s8993_s8 + $0xd0] sm:$0xff]  }
 0x2d1   : > { %v3458_v37 = vld [vmem:[#allocation3 + $0x8f] sm:$0xff]  ;;  %2863 = vst [vmem:[#allocation3 + $0xa0] sm:$0xff] %v8072_v16  ;;  %v2921_v41 = vpack.c.bf16 %v2912_v18, %v2911_v38  ;;  %v3897_v56 = vpack.c.bf16 %v8072_v16, %v8061_v27  ;;  %v6655_v27 = vld [vmem:[%s8993_s8 + $0x170] sm:$0xff]  }
 0x2d2   : > { %v8077_v15 = vpack.c.bf16 %v3458_v37, %v3457_v7  ;;  %v8081_v25 = vpop.f32.mrf.mxu0  ;;  %v3231_v49 = vld [vmem:[#allocation3 + $0x2e] sm:$0xff]  ;;  %v4304_v16 = vld [vmem:[#allocation3 + $0x41] sm:$0xff] }
 0x2d3   : > { %6098 = vmatmul.mubr.bf16.gmra.mxu1 %v2921_v41  ;;  %v6642_v7 = vld [vmem:[%s8993_s8 + $0xd8] sm:$0xff]  }
 0x2d4   : > { %6240 = vmatmul.mubr.bf16.gmra.mxu0 %v8077_v15  ;;  %v6109_v30 = vpop.f32.mrf.mxu0  ;;  %6155 = vmatprep.mubr.msk.bf16.mxu1 %vm6746_vm0, %v7932_v43  ;;  %v6649_v41 = vld [vmem:[%s8993_s8 + $0x198] sm:$0xff]  }
 0x2d5   : > { %6311 = vmatprep.mubr.msk.bf16.mxu0 %vm6746_vm0, %v7932_v43  ;;  %v3243_v10 = vld [vmem:[#allocation3 + $0x8e] sm:$0xff] }
 0x2d6   : > { %v8088_v58 = vpop.f32.mrf.mxu0 }
 0x2d8   : > { %v6110_v24 = vpop.f32.mrf.mxu0 }
 0x2da   : > { %v8093_v35 = vpop.f32.mrf.mxu0 }
 0x2db   : > { %6156 = vmatmul.mubr.bf16.vlgmr.msra.gmra.mxu1 %v3244_v23  ;;  %v3233_v23 = vld [vmem:[#allocation3 + $0x3e] sm:$0xff] }
 0x2dc   : > { %6244 = vmatpush3.bf16.msra.mxu1 %v6638_v40  ;;  %6312 = vmatmul.mubr.bf16.vlgmr.msra.gmra.mxu0 %v3889_v11  ;;  %v6113_v20 = vpop.f32.mrf.mxu0  ;;  %v3228_v11 = vld [vmem:[#allocation3 + $0x16] sm:$0xff] }
 0x2dd   : > { %6159 = vmatprep.mubr.msk.bf16.mxu1 %vm6746_vm0, %v7932_v43  ;;  %6315 = vmatprep.mubr.msk.bf16.mxu0 %vm6746_vm0, %v7932_v43  ;;  %v3245_v63 = vpack.c.bf16 %v3229_v36, %v3228_v11  ;;  %v6648_v40 = vld [vmem:[%s8993_s8 + $0xc8] sm:$0xff]   ;;  %v6651_v36 = vld [vmem:[%s8993_s8 + $0xc0] sm:$0xff]  }
 0x2de   : > { %v8108_v8 = vpop.f32.mrf.mxu0  ;;  %6245 = vmatprep.subr.bf16.mxu1 %v7932_v43  ;;  %6400 = vmatpush3.bf16.msra.mxu0 %v6643_v46  ;;  %v6652_v20 = vld [vmem:[%s8993_s8 + $0x188] sm:$0xff]  }
 0x2df   : > { %6401 = vmatprep.subr.bf16.mxu0 %v7932_v43 }
 0x2e0   : > { %v6114_v44 = vpop.f32.mrf.mxu0  ;;  %6246 = vmatpush3.bf16.msra.mxu1 %v6639_v52 }
 0x2e1   : > { %6247 = vmatprep.subr.bf16.mxu1 %v7932_v43  ;;  %v3235_v44 = vld [vmem:[#allocation3 + $0x4e] sm:$0xff] }
 0x2e2   : > { %v8119_v50 = vpop.f32.mrf.mxu0  ;;  %6402 = vmatpush3.bf16.msra.mxu0 %v6645_v34 }
 0x2e3   : > { %6160 = vmatmul.mubr.bf16.gmra.mxu1 %v3245_v63  ;;  %6403 = vmatprep.subr.bf16.mxu0 %v7932_v43 }
 0x2e4   : > { %6316 = vmatmul.mubr.bf16.gmra.mxu0 %v3890_v14  ;;  %v6117_v1 = vpop.f32.mrf.mxu0  ;;  %6163 = vmatprep.mubr.msk.bf16.mxu1 %vm6746_vm0, %v7932_v43  ;;  %v3230_v14 = vld [vmem:[#allocation3 + $0x26] sm:$0xff] }
 0x2e5   : > { %6319 = vmatprep.mubr.msk.bf16.mxu0 %vm6746_vm0, %v7932_v43  ;;  %6248 = vmatpush3.bf16.msra.mxu1 %v6640_v57  ;;  %v3246_v18 = vpack.c.bf16 %v3231_v49, %v3230_v14  ;;  %v3237_v1 = vld [vmem:[#allocation3 + $0x5e] sm:$0xff]  ;;  %v3236_v49 = vld [vmem:[#allocation3 + $0x56] sm:$0xff] }
 0x2e6   : > { %v8135_v38 = vpop.f32.mrf.mxu0  ;;  %6249 = vmatprep.subr.bf16.mxu1 %v7932_v43  ;;  %6404 = vmatpush3.bf16.msra.mxu0 %v6646_v26 }
 0x2e7   : > { %6405 = vmatprep.subr.bf16.mxu0 %v7932_v43 }
 0x2e8   : > { %v6118_v12 = vpop.f32.mrf.mxu0 }
 0x2e9   : > { %6250 = vmatpush3.bf16.msra.mxu1 %v6641_v33 }
 0x2ea   : > { %v8145_v37 = vpop.f32.mrf.mxu0  ;;  %6251 = vmatprep.subr.bf16.mxu1 %v7932_v43  ;;  %6406 = vmatpush3.bf16.msra.mxu0 %v6647_v54  ;;  %v3249_v54 = vpack.c.bf16 %v3237_v1, %v3236_v49  ;;  %v6665_v1 = vld [vmem:[%s8993_s8 + $0x218] sm:$0xff]  }
 0x2eb   : > { %6164 = vmatmul.mubr.bf16.gmra.mxu1 %v3246_v18  ;;  %6407 = vmatprep.subr.bf16.mxu0 %v7932_v43  ;;  %v3238_v18 = vld [vmem:[#allocation3 + $0x66] sm:$0xff] }
 0x2ec   : > { %6320 = vmatmul.mubr.bf16.gmra.mxu0 %v3891_v6  ;;  %v6121_v30 = vpop.f32.mrf.mxu0  ;;  %6167 = vmatprep.mubr.msk.bf16.mxu1 %vm6746_vm0, %v7932_v43  ;;  %v3232_v6 = vld [vmem:[#allocation3 + $0x36] sm:$0xff]  ;;  %v4308_v49 = vld [vmem:[#allocation3 + $0x61] sm:$0xff] }
 0x2ed   : > { %6323 = vmatprep.mubr.msk.bf16.mxu0 %vm6746_vm0, %v7932_v43  ;;  %6252 = vmatpush3.bf16.msra.mxu1 %v6642_v7  ;;  %v3247_v24 = vpack.c.bf16 %v3233_v23, %v3232_v6 }
 0x2ee   : > { %v8162_v62 = vpop.f32.mrf.mxu0  ;;  %6253 = vmatprep.subr.bf16.mxu1 %v7932_v43  ;;  %6408 = vmatpush3.bf16.msra.mxu0 %v6649_v41 }
 0x2ef   : > { %6409 = vmatprep.subr.bf16.mxu0 %v7932_v43 }
 0x2f0   : > { %v6122_v13 = vpop.f32.mrf.mxu0 }
 0x2f1   : > { %6254 = vmatpush3.bf16.msra.mxu1 %v6644_v4  ;;  %v3240_v4 = vld [vmem:[#allocation3 + $0x76] sm:$0xff]  ;;  %v3242_v13 = vld [vmem:[#allocation3 + $0x86] sm:$0xff] }
 0x2f2   : > { %v8172_v46 = vpop.f32.mrf.mxu0  ;;  %6255 = vmatprep.subr.bf16.mxu1 %v7932_v43  ;;  %6410 = vmatpush3.bf16.msra.mxu0 %v6650_v5 }
 0x2f3   : > { %6168 = vmatmul.mubr.bf16.gmra.mxu1 %v3247_v24  ;;  %6411 = vmatprep.subr.bf16.mxu0 %v7932_v43  ;;  %v3252_v24 = vpack.c.bf16 %v3243_v10, %v3242_v13  ;;  %v4316_v13 = vld [vmem:[#allocation3 + $0xa1] sm:$0xff] }
 0x2f4   : > { %6324 = vmatmul.mubr.bf16.gmra.mxu0 %v3892_v59  ;;  %v6125_v52 = vpop.f32.mrf.mxu0  ;;  %6171 = vmatprep.mubr.msk.bf16.mxu1 %vm6746_vm0, %v7932_v43  ;;  %v3234_v59 = vld [vmem:[#allocation3 + $0x46] sm:$0xff] }
 0x2f5   : > { %6327 = vmatprep.mubr.msk.bf16.mxu0 %vm6746_vm0, %v7932_v43  ;;  %6256 = vmatpush3.bf16.msra.mxu1 %v6648_v40  ;;  %v3248_v11 = vpack.c.bf16 %v3235_v44, %v3234_v59  ;;  %v6656_v52 = vld [vmem:[%s8993_s8 + $0x168] sm:$0xff]   ;;  %v4305_v59 = vld [vmem:[#allocation3 + $0x49] sm:$0xff] }
 0x2f6   : > { %v8189_v34 = vpop.f32.mrf.mxu0  ;;  %6257 = vmatprep.subr.bf16.mxu1 %v7932_v43  ;;  %6412 = vmatpush3.bf16.msra.mxu0 %v6652_v20  ;;  %v6659_v20 = vld [vmem:[%s8993_s8 + $0x238] sm:$0xff]   ;;  %v6662_v44 = vld [vmem:[%s8993_s8 + $0x228] sm:$0xff]  }
 0x2f7   : > { %6413 = vmatprep.subr.bf16.mxu0 %v7932_v43 }
 0x2f8   : > { %v6126_v39 = vpop.f32.mrf.mxu0 }
 0x2f9   : > { %6258 = vmatpush3.bf16.msra.mxu1 %v6651_v36  ;;  %v4306_v39 = vld [vmem:[#allocation3 + $0x51] sm:$0xff] }
 0x2fa   : > { %v8196_v63 = vpop.f32.mrf.mxu0  ;;  %6414 = vmatpush3.bf16.msra.mxu0 %v6653_v28  ;;  %6347 = vmatprep.subr.bf16.mxu1 %v7932_v43  ;;  %v6657_v28 = vld [vmem:[%s8993_s8 + $0x160] sm:$0xff]  }
 0x2fb   : > { %6172 = vmatmul.mubr.bf16.gmra.mxu1 %v3248_v11  ;;  %6503 = vmatprep.subr.bf16.mxu0 %v7932_v43  ;;  %v6658_v11 = vld [vmem:[%s8993_s8 + $0x158] sm:$0xff]  }
 0x2fc   : > { %6328 = vmatmul.mubr.bf16.gmra.mxu0 %v3893_v22  ;;  %v6129_v57 = vpop.f32.mrf.mxu0  ;;  %6175 = vmatprep.mubr.msk.bf16.mxu1 %vm6746_vm0, %v7932_v43  ;;  %v3239_v22 = vld [vmem:[#allocation3 + $0x6e] sm:$0xff] }
 0x2fd   : > { %6331 = vmatprep.mubr.msk.bf16.mxu0 %vm6746_vm0, %v7932_v43  ;;  %v3250_v7 = vpack.c.bf16 %v3239_v22, %v3238_v18  ;;  %v8298_v57 = vpack.c.bf16 %v4306_v39, %v4305_v59  ;;  %v6667_v18 = vld [vmem:[%s8993_s8 + $0x140] sm:$0xff]  }
 0x2fe   : > { %v8207_v26 = vpop.f32.mrf.mxu0 }
 0x300   : > { %v6130_v33 = vpop.f32.mrf.mxu0 }
 0x301   : > { %v6660_v33 = vld [vmem:[%s8993_s8 + $0x150] sm:$0xff]  }
 0x302   : > { %v8209_v12 = vpop.f32.mrf.mxu0 }
 0x303   : > { %6176 = vmatmul.mubr.bf16.gmra.mxu1 %v3249_v54  ;;  %v4307_v54 = vld [vmem:[#allocation3 + $0x59] sm:$0xff] }
 0x304   : > { %6332 = vmatmul.mubr.bf16.gmra.mxu0 %v3894_v9  ;;  %v6133_v53 = vpop.f32.mrf.mxu0  ;;  %6179 = vmatprep.mubr.msk.bf16.mxu1 %vm6746_vm0, %v7932_v43  ;;  %v3241_v9 = vld [vmem:[#allocation3 + $0x7e] sm:$0xff]  ;;  %v8322_v22 = vpack.c.bf16 %v4308_v49, %v4307_v54 }
 0x305   : > { %6335 = vmatprep.mubr.msk.bf16.mxu0 %vm6746_vm0, %v7932_v43  ;;  %v3251_v23 = vpack.c.bf16 %v3241_v9, %v3240_v4  ;;  %v6664_v53 = vld [vmem:[%s8993_s8 + $0x148] sm:$0xff]  }
 0x306   : > { %v8218_v19 = vpop.f32.mrf.mxu0  ;;  %v4311_v4 = vld [vmem:[#allocation3 + $0x79] sm:$0xff] }
 0x307   : > { %v4086_v54 = vld [vmem:[#allocation3 + $0x19] sm:$0xff] }
 0x308   : > { %v6134_v14 = vpop.f32.mrf.mxu0 }
 0x309   : > { %v6668_v14 = vld [vmem:[%s8993_s8 + $0x208] sm:$0xff]  }
 0x30a   : > { %v8220_v41 = vpop.f32.mrf.mxu0 }
 0x30b   : > { %6180 = vmatmul.mubr.bf16.gmra.mxu1 %v3250_v7  ;;  %v4310_v7 = vld [vmem:[#allocation3 + $0x71] sm:$0xff] }
 0x30c   : > { %6336 = vmatmul.mubr.bf16.gmra.mxu0 %v3895_v21  ;;  %v6137_v48 = vpop.f32.mrf.mxu0  ;;  %6183 = vmatprep.mubr.msk.bf16.mxu1 %vm6746_vm0, %v7932_v43 }
 0x30d   : > { %6339 = vmatprep.mubr.msk.bf16.mxu0 %vm6746_vm0, %v7932_v43  ;;  %v4309_v48 = vld [vmem:[#allocation3 + $0x69] sm:$0xff] }
 0x30e   : > { %v8229_v45 = vpop.f32.mrf.mxu0  ;;  %v8343_v9 = vpack.c.bf16 %v4310_v7, %v4309_v48 }
 0x310   : > { %v6138_v30 = vpop.f32.mrf.mxu0 }
 0x311   : > { %v4312_v30 = vld [vmem:[#allocation3 + $0x81] sm:$0xff] }
 0x312   : > { %v8231_v5 = vpop.f32.mrf.mxu0 }
 0x313   : > { %6184 = vmatmul.mubr.bf16.gmra.mxu1 %v3251_v23  ;;  %v8352_v23 = vpack.c.bf16 %v4312_v30, %v4311_v4  ;;  %v6671_v4 = vld [vmem:[%s8993_s8 + $0x1f0] sm:$0xff]  }
 0x314   : > { %6340 = vmatmul.mubr.bf16.gmra.mxu0 %v3896_v31  ;;  %6187 = vmatprep.mubr.msk.bf16.mxu1 %vm6746_vm0, %v7932_v43  ;;  %v6209_v0 = vpop.f32.mrf.mxu0  ;;  %v4301_v31 = vld [vmem:[#allocation3 + $0x29] sm:$0xff] }
 0x315   : > { %6343 = vmatprep.mubr.msk.bf16.mxu0 %vm6746_vm0, %v7932_v43  ;;  %v8252_v40 = vpack.c.bf16 %v4302_v2, %v4301_v31  ;;  %v4313_v0 = vld [vmem:[#allocation3 + $0x89] sm:$0xff]  ;;  %v4318_v31 = vld [vmem:[#allocation3 + $0xb1] sm:$0xff] }
 0x316   : > { %v8240_v21 = vpop.f32.mrf.mxu0 }
 0x318   : > { %v6210_v6 = vpop.f32.mrf.mxu0 }
 0x31b   : > { %6188 = vmatmul.mubr.bf16.gmra.mxu1 %v3252_v24 }
 0x31c   : > { %6344 = vmatmul.mubr.bf16.gmra.mxu0 %v3897_v56  ;;  %6259 = vmatprep.mubr.msk.bf16.mxu1 %vm6746_vm0, %v7932_v43  ;;  %v4303_v56 = vld [vmem:[#allocation3 + $0x39] sm:$0xff] }
 0x31d   : > { %6415 = vmatprep.mubr.msk.bf16.mxu0 %vm6746_vm0, %v7932_v43  ;;  %v8275_v36 = vpack.c.bf16 %v4304_v16, %v4303_v56 }
 0x323   : > { %6260 = vmatmul.mubr.bf16.vlgmr.msra.gmra.mxu1 %v7923_v29  ;;  %v6661_v29 = vld [vmem:[%s8993_s8 + $0x230] sm:$0xff]  }
 0x324   : > { %6348 = vmatpush3.bf16.msra.mxu1 %v6654_v32  ;;  %6416 = vmatmul.mubr.bf16.vlgmr.msra.gmra.mxu0 %v8252_v40  ;;  %v4317_v32 = vld [vmem:[#allocation3 + $0xa9] sm:$0xff] }
 0x325   : > { %6263 = vmatprep.mubr.msk.bf16.mxu1 %vm6746_vm0, %v7932_v43  ;;  %6419 = vmatprep.mubr.msk.bf16.mxu0 %vm6746_vm0, %v7932_v43  ;;  %v4327_v56 = vpack.c.bf16 %v4318_v31, %v4317_v32 }
 0x326   : > { %6349 = vmatprep.subr.bf16.mxu1 %v7932_v43  ;;  %6504 = vmatpush3.bf16.msra.mxu0 %v6659_v20 }
 0x327   : > { %6505 = vmatprep.subr.bf16.mxu0 %v7932_v43 }
 0x328   : > { %6350 = vmatpush3.bf16.msra.mxu1 %v6655_v27  ;;  %v3673_v27 = vld [vmem:[#allocation3 + $0x9f] sm:$0xff] }
 0x329   : > { %6351 = vmatprep.subr.bf16.mxu1 %v7932_v43 }
 0x32a   : > { %6506 = vmatpush3.bf16.msra.mxu0 %v6661_v29 }
 0x32b   : > { %6264 = vmatmul.mubr.bf16.gmra.mxu1 %v7947_v61  ;;  %6507 = vmatprep.subr.bf16.mxu0 %v7932_v43  ;;  %v6663_v61 = vld [vmem:[%s8993_s8 + $0x220] sm:$0xff]  }
 0x32c   : > { %6420 = vmatmul.mubr.bf16.gmra.mxu0 %v8275_v36  ;;  %6267 = vmatprep.mubr.msk.bf16.mxu1 %vm6746_vm0, %v7932_v43 }
 0x32d   : > { %6423 = vmatprep.mubr.msk.bf16.mxu0 %vm6746_vm0, %v7932_v43  ;;  %6352 = vmatpush3.bf16.msra.mxu1 %v6656_v52 }
 0x32e   : > { %6353 = vmatprep.subr.bf16.mxu1 %v7932_v43  ;;  %6508 = vmatpush3.bf16.msra.mxu0 %v6662_v44 }
 0x32f   : > { %6509 = vmatprep.subr.bf16.mxu0 %v7932_v43 }
 0x331   : > { %6354 = vmatpush3.bf16.msra.mxu1 %v6657_v28 }
 0x332   : > { %6355 = vmatprep.subr.bf16.mxu1 %v7932_v43  ;;  %6510 = vmatpush3.bf16.msra.mxu0 %v6663_v61 }
 0x333   : > { %6268 = vmatmul.mubr.bf16.gmra.mxu1 %v7969_v47  ;;  %6511 = vmatprep.subr.bf16.mxu0 %v7932_v43  ;;  %v6666_v47 = vld [vmem:[%s8993_s8 + $0x210] sm:$0xff]  }
 0x334   : > { %6424 = vmatmul.mubr.bf16.gmra.mxu0 %v8298_v57  ;;  %6271 = vmatprep.mubr.msk.bf16.mxu1 %vm6746_vm0, %v7932_v43 }
 0x335   : > { %6427 = vmatprep.mubr.msk.bf16.mxu0 %vm6746_vm0, %v7932_v43  ;;  %6356 = vmatpush3.bf16.msra.mxu1 %v6658_v11 }
 0x336   : > { %6357 = vmatprep.subr.bf16.mxu1 %v7932_v43  ;;  %6512 = vmatpush3.bf16.msra.mxu0 %v6665_v1  ;;  %v4087_v1 = vld [vmem:[#allocation3 + $0x21] sm:$0xff] }
 0x337   : > { %6513 = vmatprep.subr.bf16.mxu0 %v7932_v43 }
 0x339   : > { %6358 = vmatpush3.bf16.msra.mxu1 %v6660_v33 }
 0x33a   : > { %6359 = vmatprep.subr.bf16.mxu1 %v7932_v43  ;;  %6514 = vmatpush3.bf16.msra.mxu0 %v6666_v47  ;;  %v4732_v47 = vld [vmem:[#allocation3 + $0x33] sm:$0xff] }
 0x33b   : > { %6272 = vmatmul.mubr.bf16.gmra.mxu1 %v7991_v42  ;;  %6515 = vmatprep.subr.bf16.mxu0 %v7932_v43  ;;  %v6669_v42 = vld [vmem:[%s8993_s8 + $0x200] sm:$0xff]  }
 0x33c   : > { %6428 = vmatmul.mubr.bf16.gmra.mxu0 %v8322_v22  ;;  %6275 = vmatprep.mubr.msk.bf16.mxu1 %vm6746_vm0, %v7932_v43 }
 0x33d   : > { %6431 = vmatprep.mubr.msk.bf16.mxu0 %vm6746_vm0, %v7932_v43  ;;  %6360 = vmatpush3.bf16.msra.mxu1 %v6664_v53  ;;  %v6670_v53 = vld [vmem:[%s8993_s8 + $0x1f8] sm:$0xff]  }
 0x33e   : > { %6361 = vmatprep.subr.bf16.mxu1 %v7932_v43  ;;  %6516 = vmatpush3.bf16.msra.mxu0 %v6668_v14 }
 0x33f   : > { %6517 = vmatprep.subr.bf16.mxu0 %v7932_v43 }
 0x341   : > { %6362 = vmatpush3.bf16.msra.mxu1 %v6667_v18  ;;  %v4104_v18 = vpack.c.bf16 %v4087_v1, %v4086_v54 }
 0x342   : > { %6518 = vmatpush3.bf16.msra.mxu0 %v6669_v42  ;;  %6451 = vmatprep.subr.bf16.mxu1 %v7932_v43  ;;  %v4731_v42 = vld [vmem:[#allocation3 + $0x2b] sm:$0xff] }
 0x343   : > { %6276 = vmatmul.mubr.bf16.gmra.mxu1 %v8013_v3  ;;  %v4314_v3 = vld [vmem:[#allocation3 + $0x91] sm:$0xff]  ;;  %v4749_v48 = vpack.c.bf16 %v4732_v47, %v4731_v42 }
 0x344   : > { %6432 = vmatmul.mubr.bf16.gmra.mxu0 %v8343_v9  ;;  %6279 = vmatprep.mubr.msk.bf16.mxu1 %vm6746_vm0, %v7932_v43  ;;  %v8360_v10 = vpack.c.bf16 %v4314_v3, %v4313_v0  ;;  %v8406_v0 = vld [vmem:[#allocation3] sm:$0xff] }
 0x345   : > { %6435 = vmatprep.mubr.msk.bf16.mxu0 %vm6746_vm0, %v7932_v43 }
 0x34b   : > { %6280 = vmatmul.mubr.bf16.gmra.mxu1 %v8035_v55  ;;  %v4315_v55 = vld [vmem:[#allocation3 + $0x99] sm:$0xff] }
 0x34c   : > { %6436 = vmatmul.mubr.bf16.gmra.mxu0 %v8352_v23  ;;  %6283 = vmatprep.mubr.msk.bf16.mxu1 %vm6746_vm0, %v7932_v43  ;;  %v8368_v6 = vpack.c.bf16 %v4316_v13, %v4315_v55 }
 0x34d   : > { %6439 = vmatprep.mubr.msk.bf16.mxu0 %vm6746_vm0, %v7932_v43 }
 0x353   : > { %6284 = vmatmul.mubr.bf16.gmra.mxu1 %v8056_v17 }
 0x354   : > { %6440 = vmatmul.mubr.bf16.gmra.mxu0 %v8360_v10  ;;  %6287 = vmatprep.mubr.msk.bf16.mxu1 %vm6746_vm0, %v7932_v43 }
 0x355   : > { %6443 = vmatprep.mubr.msk.bf16.mxu0 %vm6746_vm0, %v7932_v43 }
 0x35b   : > { %v8370_v24 = vpop.f32.mrf.mxu1  ;;  %6288 = vmatmul.mubr.bf16.gmra.mxu1 %v8077_v15  ;;  %v3672_v15 = vld [vmem:[#allocation3 + $0x97] sm:$0xff] }
 0x35c   : > { %v8373_v2 = vpop.f32.mrf.mxu0  ;;  %6444 = vmatmul.mubr.bf16.gmra.mxu0 %v8368_v6  ;;  %6291 = vmatprep.mubr.msk.bf16.mxu1 %vm6746_vm0, %v7932_v43  ;;  %v3682_v44 = vpack.c.bf16 %v3673_v27, %v3672_v15  ;;  %v6672_v27 = vld [vmem:[%s8993_s8 + $0x1e8] sm:$0xff]  }
 0x35d   : > { %v6071_v17 = vpop.f32.mrf.mxu1  ;;  %6447 = vmatprep.mubr.msk.bf16.mxu0 %vm6746_vm0, %v7932_v43 }
 0x35e   : > { %v6213_v20 = vpop.f32.mrf.mxu0  ;;  %v4734_v17 = vld [vmem:[#allocation3 + $0x43] sm:$0xff] }
 0x35f   : > { %v8380_v29 = vpop.f32.mrf.mxu1  ;;  %v4733_v20 = vld [vmem:[#allocation3 + $0x3b] sm:$0xff] }
 0x360   : > { %v8382_v16 = vpop.f32.mrf.mxu0 }
 0x361   : > { %v6072_v52 = vpop.f32.mrf.mxu1 }
 0x362   : > { %v6214_v28 = vpop.f32.mrf.mxu0 }
 0x363   : > { %v8384_v61 = vpop.f32.mrf.mxu1  ;;  %6292 = vmatmul.mubr.bf16.gmra.mxu1 %v3682_v44 }
 0x364   : > { %v8386_v39 = vpop.f32.mrf.mxu0  ;;  %6448 = vmatmul.mubr.bf16.gmra.mxu0 %v4327_v56  ;;  %6363 = vmatprep.mubr.msk.bf16.mxu1 %vm6746_vm0, %v7932_v43  ;;  %v4750_v56 = vpack.c.bf16 %v4734_v17, %v4733_v20 }
 0x365   : > { %v6075_v59 = vpop.f32.mrf.mxu1  ;;  %6519 = vmatprep.mubr.msk.bf16.mxu0 %vm6746_vm0, %v7932_v43 }
 0x366   : > { %v6217_v11 = vpop.f32.mrf.mxu0  ;;  %v6673_v59 = vld [vmem:[%s8993_s8 + $0x1e0] sm:$0xff]  }
 0x367   : > { %v8392_v33 = vpop.f32.mrf.mxu1 }
 0x368   : > { %v8394_v49 = vpop.f32.mrf.mxu0 }
 0x369   : > { %v6076_v14 = vpop.f32.mrf.mxu1 }
 0x36a   : > { %v6218_v7 = vpop.f32.mrf.mxu0  ;;  %v6674_v14 = vld [vmem:[%s8993_s8 + $0x1d8] sm:$0xff]  }
 0x36b   : > { %v8399_v30 = vpop.f32.mrf.mxu1  ;;  %6364 = vmatmul.mubr.bf16.vlgmr.msra.gmra.mxu1 %v4104_v18 }
 0x36c   : > { %v8401_v43 = vpop.f32.mrf.mxu0  ;;  %6452 = vmatpush3.bf16.msra.mxu1 %v6670_v53  ;;  %6520 = vmatmul.mubr.bf16.vlgmr.msra.gmra.mxu0 %v4749_v48  ;;  %v4735_v53 = vld [vmem:[#allocation3 + $0x4b] sm:$0xff] }
 0x36d   : > { %v6079_v3 = vpop.f32.mrf.mxu1  ;;  %6367 = vmatprep.mubr.msk.bf16.mxu1 %vm6746_vm0, %v8406_v0  ;;  %6523 = vmatprep.mubr.msk.bf16.mxu0 %vm6746_vm0, %v8406_v0 }
 0x36e   : > { %v6221_v55 = vpop.f32.mrf.mxu0  ;;  %6453 = vmatprep.subr.bf16.mxu1 %v8406_v0  ;;  %v6675_v3 = vld [vmem:[%s8993_s8 + $0x1d0] sm:$0xff]  }
 0x36f   : > { %v8413_v13 = vpop.f32.mrf.mxu1 }
 0x370   : > { %v8415_v32 = vpop.f32.mrf.mxu0  ;;  %6454 = vmatpush3.bf16.msra.mxu1 %v6671_v4 }
 0x371   : > { %v6080_v31 = vpop.f32.mrf.mxu1  ;;  %6455 = vmatprep.subr.bf16.mxu1 %v8406_v0 }
 0x372   : > { %v6222_v15 = vpop.f32.mrf.mxu0 }
 0x373   : > { %v8421_v52 = vpop.f32.mrf.mxu1  ;;  %6368 = vmatmul.mubr.bf16.gmra.mxu1 %v8252_v40  ;;  %v4736_v40 = vld [vmem:[#allocation3 + $0x53] sm:$0xff] }
 0x374   : > { %v8424_v44 = vpop.f32.mrf.mxu0  ;;  %6524 = vmatmul.mubr.bf16.gmra.mxu0 %v4750_v56  ;;  %6371 = vmatprep.mubr.msk.bf16.mxu1 %vm6746_vm0, %v8406_v0  ;;  %v4751_v42 = vpack.c.bf16 %v4736_v40, %v4735_v53  ;;  %v6676_v15 = vld [vmem:[%s8993_s8 + $0x1c8] sm:$0xff]  }
 0x375   : > { %v6083_v28 = vpop.f32.mrf.mxu1  ;;  %6527 = vmatprep.mubr.msk.bf16.mxu0 %vm6746_vm0, %v8406_v0  ;;  %6456 = vmatpush3.bf16.msra.mxu1 %v6672_v27  ;;  %v4737_v27 = vld [vmem:[#allocation3 + $0x5b] sm:$0xff] }
 0x376   : > { %v6225_v11 = vpop.f32.mrf.mxu0  ;;  %6457 = vmatprep.subr.bf16.mxu1 %v8406_v0 }
 0x377   : > { %v8434_v1 = vpop.f32.mrf.mxu1 }
 0x378   : > { %v8436_v47 = vpop.f32.mrf.mxu0 }
 0x379   : > { %v6084_v54 = vpop.f32.mrf.mxu1  ;;  %6458 = vmatpush3.bf16.msra.mxu1 %v6673_v59 }
 0x37a   : > { %v6226_v18 = vpop.f32.mrf.mxu0  ;;  %6459 = vmatprep.subr.bf16.mxu1 %v8406_v0  ;;  %v6677_v54 = vld [vmem:[%s8993_s8 + $0x1c0] sm:$0xff]  }
 0x37b   : > { %v8442_v7 = vpop.f32.mrf.mxu1  ;;  %6372 = vmatmul.mubr.bf16.gmra.mxu1 %v8275_v36  ;;  %v4738_v36 = vld [vmem:[#allocation3 + $0x63] sm:$0xff] }
 0x37c   : > { %v8445_v48 = vpop.f32.mrf.mxu0  ;;  %6528 = vmatmul.mubr.bf16.gmra.mxu0 %v4751_v42  ;;  %6375 = vmatprep.mubr.msk.bf16.mxu1 %vm6746_vm0, %v8406_v0  ;;  %v4752_v28 = vpack.c.bf16 %v4738_v36, %v4737_v27 }
 0x37d   : > { %v6087_v4 = vpop.f32.mrf.mxu1  ;;  %6531 = vmatprep.mubr.msk.bf16.mxu0 %vm6746_vm0, %v8406_v0  ;;  %6460 = vmatpush3.bf16.msra.mxu1 %v6674_v14 }
 0x37e   : > { %v6229_v55 = vpop.f32.mrf.mxu0  ;;  %6461 = vmatprep.subr.bf16.mxu1 %v8406_v0  ;;  %v4739_v4 = vld [vmem:[#allocation3 + $0x6b] sm:$0xff] }
 0x37f   : > { %v8455_v17 = vpop.f32.mrf.mxu1 }
 0x380   : > { %v8457_v31 = vpop.f32.mrf.mxu0 }
 0x381   : > { %v6088_v20 = vpop.f32.mrf.mxu1  ;;  %6462 = vmatpush3.bf16.msra.mxu1 %v6675_v3 }
 0x382   : > { %v6230_v56 = vpop.f32.mrf.mxu0  ;;  %6463 = vmatprep.subr.bf16.mxu1 %v8406_v0 }
 0x383   : > { %v8463_v59 = vpop.f32.mrf.mxu1  ;;  %6376 = vmatmul.mubr.bf16.gmra.mxu1 %v8298_v57  ;;  %v4740_v57 = vld [vmem:[#allocation3 + $0x73] sm:$0xff] }
 0x384   : > { %v8466_v11 = vpop.f32.mrf.mxu0  ;;  %6532 = vmatmul.mubr.bf16.gmra.mxu0 %v4752_v28  ;;  %6379 = vmatprep.mubr.msk.bf16.mxu1 %vm6746_vm0, %v8406_v0  ;;  %v4753_v55 = vpack.c.bf16 %v4740_v57, %v4739_v4  ;;  %v4742_v28 = vld [vmem:[#allocation3 + $0x83] sm:$0xff] }
 0x385   : > { %v6091_v40 = vpop.f32.mrf.mxu1  ;;  %6535 = vmatprep.mubr.msk.bf16.mxu0 %vm6746_vm0, %v8406_v0  ;;  %6464 = vmatpush3.bf16.msra.mxu1 %v6676_v15 }
 0x386   : > { %v6233_v53 = vpop.f32.mrf.mxu0  ;;  %6465 = vmatprep.subr.bf16.mxu1 %v8406_v0 }
 0x387   : > { %v8476_v14 = vpop.f32.mrf.mxu1  ;;  %v4741_v53 = vld [vmem:[#allocation3 + $0x7b] sm:$0xff] }
 0x388   : > { %v8478_v18 = vpop.f32.mrf.mxu0 }
 0x389   : > { %v6092_v42 = vpop.f32.mrf.mxu1  ;;  %6466 = vmatpush3.bf16.msra.mxu1 %v6677_v54 }
 0x38a   : > { %v6234_v3 = vpop.f32.mrf.mxu0 }
 0x38b   : > { %v8480_v36 = vpop.f32.mrf.mxu1  ;;  %6380 = vmatmul.mubr.bf16.gmra.mxu1 %v8322_v22  ;;  %v4754_v22 = vpack.c.bf16 %v4742_v28, %v4741_v53  ;;  %v4743_v53 = vld [vmem:[#allocation3 + $0x8b] sm:$0xff] }
 0x38c   : > { %v8483_v20 = vpop.f32.mrf.mxu0  ;;  %6536 = vmatmul.mubr.bf16.gmra.mxu0 %v4753_v55  ;;  %6383 = vmatprep.mubr.msk.bf16.mxu1 %vm6746_vm0, %v8406_v0 }
 0x38d   : > { %v6095_v27 = vpop.f32.mrf.mxu1  ;;  %6539 = vmatprep.mubr.msk.bf16.mxu0 %vm6746_vm0, %v8406_v0 }
 0x38e   : > { %v6237_v15 = vpop.f32.mrf.mxu0 }
 0x38f   : > { %v8489_v56 = vpop.f32.mrf.mxu1  ;;  %v4744_v15 = vld [vmem:[#allocation3 + $0x93] sm:$0xff] }
 0x390   : > { %v8491_v40 = vpop.f32.mrf.mxu0 }
 0x391   : > { %8999 = vst [vmem:[#allocation8_spill] sm:$0xff] %v8491_v40  ;;  %v6096_v54 = vpop.f32.mrf.mxu1 }
 0x392   : > { %v6238_v57 = vpop.f32.mrf.mxu0 }
 0x393   : > { %v8493_v42 = vpop.f32.mrf.mxu1  ;;  %6384 = vmatmul.mubr.bf16.gmra.mxu1 %v8343_v9  ;;  %v4755_v9 = vpack.c.bf16 %v4744_v15, %v4743_v53  ;;  %v4746_v15 = vld [vmem:[#allocation3 + $0xa3] sm:$0xff] }
 0x394   : > { %v8496_v4 = vpop.f32.mrf.mxu0  ;;  %6540 = vmatmul.mubr.bf16.gmra.mxu0 %v4754_v22  ;;  %6387 = vmatprep.mubr.msk.bf16.mxu1 %vm6746_vm0, %v8406_v0 }
 0x395   : > { %9000 = vst [vmem:[#allocation9_spill] sm:$0xff] %v8496_v4  ;;  %v6099_v3 = vpop.f32.mrf.mxu1  ;;  %6543 = vmatprep.mubr.msk.bf16.mxu0 %vm6746_vm0, %v8406_v0 }
 0x396   : > { %v6241_v55 = vpop.f32.mrf.mxu0 }
 0x397   : > { %v8502_v27 = vpop.f32.mrf.mxu1 }
 0x398   : > { %v8504_v54 = vpop.f32.mrf.mxu0 }
 0x399   : > { %9001 = vst [vmem:[#allocation10_spill] sm:$0xff] %v8504_v54  ;;  %v6100_v28 = vpop.f32.mrf.mxu1 }
 0x39a   : > { %v6242_v57 = vpop.f32.mrf.mxu0 }
 0x39b   : > { %v3352_v40 = vpop.f32.mrf.mxu1  ;;  %6388 = vmatmul.mubr.bf16.gmra.mxu1 %v8352_v23  ;;  %v4745_v57 = vld [vmem:[#allocation3 + $0x9b] sm:$0xff] }
 0x39c   : > { %v8508_v22 = vadd.f32 %v3352_v40, %v8064_v60  ;;  %v8510_v3 = vpop.f32.mrf.mxu0  ;;  %6544 = vmatmul.mubr.bf16.gmra.mxu0 %v4755_v9  ;;  %6391 = vmatprep.mubr.msk.bf16.mxu1 %vm6746_vm0, %v8406_v0  ;;  %v3164_v40 = vadd.f32 %v8081_v25, %v8370_v24  ;;  %v3167_v25 = vadd.f32 %v8088_v58, %v8380_v29 }
 0x39d   : > { %9002 = vst [vmem:[#allocation11_spill] sm:$0xff] %v8510_v3  ;;  %v6157_v55 = vpop.f32.mrf.mxu1  ;;  %6547 = vmatprep.mubr.msk.bf16.mxu0 %vm6746_vm0, %v8406_v0  ;;  %v4756_v3 = vpack.c.bf16 %v4746_v15, %v4745_v57  ;;  %v3175_v29 = vadd.f32 %v8108_v8, %v8392_v33  ;;  %v3183_v33 = vadd.f32 %v8135_v38, %v8413_v13 }
 0x39e   : > { %v6313_v28 = vpop.f32.mrf.mxu0  ;;  %v3191_v13 = vadd.f32 %v8162_v62, %v8434_v1  ;;  %v3199_v1 = vadd.f32 %v8189_v34, %v8455_v17  ;;  %v3207_v17 = vadd.f32 %v8207_v26, %v8476_v14  ;;  %v3215_v14 = vadd.f32 %v8218_v19, %v8489_v56 }
 0x39f   : > { %v3355_v54 = vpop.f32.mrf.mxu1  ;;  %v3223_v56 = vadd.f32 %v8229_v45, %v8502_v27 }
 0x3a0   : > { %v8517_v53 = vadd.f32 %v3355_v54, %v8074_v51  ;;  %v8519_v23 = vpop.f32.mrf.mxu0  ;;  %v4747_v54 = vld [vmem:[#allocation3 + $0xab] sm:$0xff] }
 0x3a1   : > { %9003 = vst [vmem:[#allocation12_spill] sm:$0xff] %v8519_v23  ;;  %v6158_v60 = vpop.f32.mrf.mxu1 }
 0x3a2   : > { %v6314_v9 = vpop.f32.mrf.mxu0  ;;  %v4748_v60 = vld [vmem:[#allocation3 + $0xb3] sm:$0xff] }
 0x3a3   : > { %v3360_v4 = vpop.f32.mrf.mxu1  ;;  %6392 = vmatmul.mubr.bf16.gmra.mxu1 %v8360_v10  ;;  %v4757_v15 = vpack.c.bf16 %v4748_v60, %v4747_v54  ;;  %v4517_v60 = vld [vmem:[#allocation3 + $0x32] sm:$0xff] }
 0x3a4   : > { %v8524_v55 = vadd.f32 %v3360_v4, %v3164_v40  ;;  %v8526_v28 = vpop.f32.mrf.mxu0  ;;  %6548 = vmatmul.mubr.bf16.gmra.mxu0 %v4756_v3  ;;  %6395 = vmatprep.mubr.msk.bf16.mxu1 %vm6746_vm0, %v8406_v0  ;;  %v3172_v40 = vadd.f32 %v8093_v35, %v8384_v61 }
 0x3a5   : > { %9004 = vst [vmem:[#allocation13_spill] sm:$0xff] %v8526_v28  ;;  %v6161_v51 = vpop.f32.mrf.mxu1  ;;  %6551 = vmatprep.mubr.msk.bf16.mxu0 %vm6746_vm0, %v8406_v0 }
 0x3a6   : > { %v6317_v24 = vpop.f32.mrf.mxu0 }
 0x3a7   : > { %v3363_v57 = vpop.f32.mrf.mxu1 }
 0x3a8   : > { %v8534_v10 = vadd.f32 %v3363_v57, %v3167_v25  ;;  %v8536_v4 = vpop.f32.mrf.mxu0 }
 0x3a9   : > { %v6162_v3 = vpop.f32.mrf.mxu1 }
 0x3aa   : > { %v6318_v9 = vpop.f32.mrf.mxu0  ;;  %v3180_v3 = vadd.f32 %v8119_v50, %v8399_v30  ;;  %v4518_v30 = vld [vmem:[#allocation3 + $0x3a] sm:$0xff] }
 0x3ab   : > { %v3368_v51 = vpop.f32.mrf.mxu1  ;;  %6396 = vmatmul.mubr.bf16.gmra.mxu1 %v8368_v6  ;;  %v4516_v6 = vld [vmem:[#allocation3 + $0x2a] sm:$0xff] }
 0x3ac   : > { %v8541_v28 = vadd.f32 %v3368_v51, %v3172_v40  ;;  %v8543_v23 = vpop.f32.mrf.mxu0  ;;  %6467 = vmatprep.mubr.msk.bf16.mxu1 %vm6746_vm0, %v8406_v0  ;;  %6552 = vmatmul.mubr.bf16.gmra.mxu0 %v4757_v15  ;;  %v4534_v57 = vpack.c.bf16 %v4517_v60, %v4516_v6 }
 0x3ad   : > { %v6165_v58 = vpop.f32.mrf.mxu1 }
 0x3ae   : > { %v6321_v54 = vpop.f32.mrf.mxu0 }
 0x3af   : > { %v3371_v25 = vpop.f32.mrf.mxu1 }
 0x3b0   : > { %v8549_v35 = vadd.f32 %v3371_v25, %v3175_v29  ;;  %v8551_v61 = vpop.f32.mrf.mxu0  ;;  %v4519_v29 = vld [vmem:[#allocation3 + $0x42] sm:$0xff] }
 0x3b1   : > { %v6166_v24 = vpop.f32.mrf.mxu1  ;;  %v4535_v6 = vpack.c.bf16 %v4519_v29, %v4518_v30 }
 0x3b2   : > { %v6322_v40 = vpop.f32.mrf.mxu0  ;;  %v3188_v24 = vadd.f32 %v8145_v37, %v8421_v52  ;;  %v4520_v52 = vld [vmem:[#allocation3 + $0x4a] sm:$0xff] }
 0x3b3   : > { %v3376_v9 = vpop.f32.mrf.mxu1  ;;  %6468 = vmatmul.mubr.bf16.vlgmr.msra.gmra.mxu1 %v4534_v57 }
 0x3b4   : > { %v8555_v15 = vadd.f32 %v3376_v9, %v3180_v3  ;;  %v8557_v51 = vpop.f32.mrf.mxu0  ;;  %6471 = vmatprep.mubr.msk.bf16.mxu1 %vm6746_vm0, %v8406_v0 }
 0x3b5   : > { %v6169_v8 = vpop.f32.mrf.mxu1 }
 0x3b6   : > { %v6325_v58 = vpop.f32.mrf.mxu0 }
 0x3b7   : > { %v3379_v54 = vpop.f32.mrf.mxu1 }
 0x3b8   : > { %v8563_v60 = vadd.f32 %v3379_v54, %v3183_v33  ;;  %v8565_v50 = vpop.f32.mrf.mxu0  ;;  %v4521_v33 = vld [vmem:[#allocation3 + $0x52] sm:$0xff] }
 0x3b9   : > { %v6170_v25 = vpop.f32.mrf.mxu1  ;;  %v4536_v30 = vpack.c.bf16 %v4521_v33, %v4520_v52 }
 0x3ba   : > { %v6326_v57 = vpop.f32.mrf.mxu0  ;;  %v3196_v25 = vadd.f32 %v8172_v46, %v8442_v7  ;;  %v4522_v7 = vld [vmem:[#allocation3 + $0x5a] sm:$0xff] }
 0x3bb   : > { %v3384_v3 = vpop.f32.mrf.mxu1  ;;  %6472 = vmatmul.mubr.bf16.gmra.mxu1 %v4535_v6 }
 0x3bc   : > { %v8569_v40 = vadd.f32 %v3384_v3, %v3188_v24  ;;  %v8571_v9 = vpop.f32.mrf.mxu0  ;;  %6475 = vmatprep.mubr.msk.bf16.mxu1 %vm6746_vm0, %v8406_v0 }
 0x3bd   : > { %v6173_v38 = vpop.f32.mrf.mxu1 }
 0x3be   : > { %v6329_v8 = vpop.f32.mrf.mxu0 }
 0x3bf   : > { %v3387_v58 = vpop.f32.mrf.mxu1 }
 0x3c0   : > { %v8577_v29 = vadd.f32 %v3387_v58, %v3191_v13  ;;  %v8579_v37 = vpop.f32.mrf.mxu0  ;;  %v4523_v13 = vld [vmem:[#allocation3 + $0x62] sm:$0xff] }
 0x3c1   : > { %v6174_v54 = vpop.f32.mrf.mxu1  ;;  %v4537_v52 = vpack.c.bf16 %v4523_v13, %v4522_v7 }
 0x3c2   : > { %v6330_v6 = vpop.f32.mrf.mxu0  ;;  %v3204_v54 = vadd.f32 %v8196_v63, %v8463_v59  ;;  %v4524_v59 = vld [vmem:[#allocation3 + $0x6a] sm:$0xff] }
 0x3c3   : > { %v3392_v24 = vpop.f32.mrf.mxu1  ;;  %6476 = vmatmul.mubr.bf16.gmra.mxu1 %v4536_v30 }
 0x3c4   : > { %v8583_v57 = vadd.f32 %v3392_v24, %v3196_v25  ;;  %v8585_v3 = vpop.f32.mrf.mxu0  ;;  %6479 = vmatprep.mubr.msk.bf16.mxu1 %vm6746_vm0, %v8406_v0 }
 0x3c5   : > { %v6177_v62 = vpop.f32.mrf.mxu1 }
 0x3c6   : > { %v6333_v38 = vpop.f32.mrf.mxu0 }
 0x3c7   : > { %v3395_v8 = vpop.f32.mrf.mxu1 }
 0x3c8   : > { %v8591_v33 = vadd.f32 %v3395_v8, %v3199_v1  ;;  %v8593_v46 = vpop.f32.mrf.mxu0  ;;  %v4525_v1 = vld [vmem:[#allocation3 + $0x72] sm:$0xff] }
 0x3c9   : > { %v6178_v58 = vpop.f32.mrf.mxu1  ;;  %v4538_v7 = vpack.c.bf16 %v4525_v1, %v4524_v59 }
 0x3ca   : > { %v6334_v30 = vpop.f32.mrf.mxu0  ;;  %v3212_v58 = vadd.f32 %v8209_v12, %v8480_v36  ;;  %v4526_v36 = vld [vmem:[#allocation3 + $0x7a] sm:$0xff] }
 0x3cb   : > { %v3400_v25 = vpop.f32.mrf.mxu1  ;;  %6480 = vmatmul.mubr.bf16.gmra.mxu1 %v4537_v52 }
 0x3cc   : > { %v8597_v6 = vadd.f32 %v3400_v25, %v3204_v54  ;;  %v8599_v24 = vpop.f32.mrf.mxu0  ;;  %6483 = vmatprep.mubr.msk.bf16.mxu1 %vm6746_vm0, %v8406_v0 }
 0x3cd   : > { %v6181_v34 = vpop.f32.mrf.mxu1 }
 0x3ce   : > { %v6337_v62 = vpop.f32.mrf.mxu0 }
 0x3cf   : > { %v3403_v38 = vpop.f32.mrf.mxu1 }
 0x3d0   : > { %v8605_v13 = vadd.f32 %v3403_v38, %v3207_v17  ;;  %v8607_v63 = vpop.f32.mrf.mxu0  ;;  %v4527_v17 = vld [vmem:[#allocation3 + $0x82] sm:$0xff] }
 0x3d1   : > { %v6182_v8 = vpop.f32.mrf.mxu1  ;;  %v4539_v59 = vpack.c.bf16 %v4527_v17, %v4526_v36 }
 0x3d2   : > { %v6338_v52 = vpop.f32.mrf.mxu0  ;;  %v3220_v8 = vadd.f32 %v8220_v41, %v8493_v42  ;;  %v4528_v42 = vld [vmem:[#allocation3 + $0x8a] sm:$0xff] }
 0x3d3   : > { %v3408_v54 = vpop.f32.mrf.mxu1  ;;  %6484 = vmatmul.mubr.bf16.gmra.mxu1 %v4538_v7 }
 0x3d4   : > { %v8611_v30 = vadd.f32 %v3408_v54, %v3212_v58  ;;  %v8613_v25 = vpop.f32.mrf.mxu0  ;;  %6487 = vmatprep.mubr.msk.bf16.mxu1 %vm6746_vm0, %v8406_v0 }
 0x3d5   : > { %v6185_v26 = vpop.f32.mrf.mxu1 }
 0x3d6   : > { %v6341_v34 = vpop.f32.mrf.mxu0 }
 0x3d7   : > { %v3411_v62 = vpop.f32.mrf.mxu1 }
 0x3d8   : > { %v8619_v1 = vadd.f32 %v3411_v62, %v3215_v14  ;;  %v8621_v12 = vpop.f32.mrf.mxu0  ;;  %v4529_v14 = vld [vmem:[#allocation3 + $0x92] sm:$0xff] }
 0x3d9   : > { %v6186_v38 = vpop.f32.mrf.mxu1  ;;  %v4540_v36 = vpack.c.bf16 %v4529_v14, %v4528_v42 }
 0x3da   : > { %v6342_v7 = vpop.f32.mrf.mxu0 }
 0x3db   : > { %v3416_v58 = vpop.f32.mrf.mxu1  ;;  %6488 = vmatmul.mubr.bf16.gmra.mxu1 %v4539_v59  ;;  %v3638_v59 = vadd.f32 %v8231_v5, %v8508_v22 }
 0x3dc   : > { %v8625_v52 = vadd.f32 %v3416_v58, %v3220_v8  ;;  %v8627_v54 = vpop.f32.mrf.mxu0  ;;  %6491 = vmatprep.mubr.msk.bf16.mxu1 %vm6746_vm0, %v8406_v0 }
 0x3dd   : > { %v6189_v19 = vpop.f32.mrf.mxu1 }
 0x3de   : > { %v6345_v26 = vpop.f32.mrf.mxu0  ;;  %v3639_v19 = vadd.f32 %v8240_v21, %v8517_v53  ;;  %v4532_v21 = vld [vmem:[#allocation3 + $0xaa] sm:$0xff]  ;;  %v4533_v53 = vld [vmem:[#allocation3 + $0xb2] sm:$0xff] }
 0x3df   : > { %v3419_v34 = vpop.f32.mrf.mxu1  ;;  %v4531_v26 = vld [vmem:[#allocation3 + $0xa2] sm:$0xff] }
 0x3e0   : > { %v8633_v17 = vadd.f32 %v3419_v34, %v3223_v56  ;;  %v8635_v41 = vpop.f32.mrf.mxu0  ;;  %v4530_v56 = vld [vmem:[#allocation3 + $0x9a] sm:$0xff] }
 0x3e1   : > { %v6190_v62 = vpop.f32.mrf.mxu1  ;;  %v4541_v42 = vpack.c.bf16 %v4531_v26, %v4530_v56  ;;  %v4542_v26 = vpack.c.bf16 %v4533_v53, %v4532_v21 }
 0x3e2   : > { %v6346_v38 = vpop.f32.mrf.mxu0 }
 0x3e3   : > { %v3782_v8 = vpop.f32.mrf.mxu1  ;;  %6492 = vmatmul.mubr.bf16.gmra.mxu1 %v4540_v36  ;;  %v3640_v36 = vadd.f32 %v8373_v2, %v8524_v55 }
 0x3e4   : > { %v8639_v7 = vadd.f32 %v3782_v8, %v3638_v59  ;;  %v8641_v58 = vpop.f32.mrf.mxu0  ;;  %6495 = vmatprep.mubr.msk.bf16.mxu1 %vm6746_vm0, %v8406_v0 }
 0x3e5   : > { %v6261_v45 = vpop.f32.mrf.mxu1 }
 0x3e6   : > { %v6417_v27 = vpop.f32.mrf.mxu0 }
 0x3e7   : > { %v3785_v14 = vpop.f32.mrf.mxu1 }
 0x3e8   : > { %v8647_v34 = vadd.f32 %v3785_v14, %v3639_v19  ;;  %v8649_v5 = vpop.f32.mrf.mxu0  ;;  %v3641_v19 = vadd.f32 %v8382_v16, %v8534_v10  ;;  %v3643_v16 = vadd.f32 %v8394_v49, %v8549_v35  ;;  %v3645_v49 = vadd.f32 %v8415_v32, %v8563_v60 }
 0x3e9   : > { %v6262_v22 = vpop.f32.mrf.mxu1  ;;  %v3647_v32 = vadd.f32 %v8436_v47, %v8577_v29  ;;  %v3649_v47 = vadd.f32 %v8457_v31, %v8591_v33  ;;  %v3651_v31 = vadd.f32 %v8478_v18, %v8605_v13 }
 0x3ea   : > { %v6418_v62 = vpop.f32.mrf.mxu0 }
 0x3eb   : > { %v3790_v38 = vpop.f32.mrf.mxu1  ;;  %6496 = vmatmul.mubr.bf16.gmra.mxu1 %v4541_v42  ;;  %v3642_v42 = vadd.f32 %v8386_v39, %v8541_v28  ;;  %v3644_v39 = vadd.f32 %v8401_v43, %v8555_v15  ;;  %v3646_v43 = vadd.f32 %v8424_v44, %v8569_v40  ;;  %v3648_v44 = vadd.f32 %v8445_v48, %v8583_v57 }
 0x3ec   : > { %v8653_v59 = vadd.f32 %v3790_v38, %v3640_v36  ;;  %v8655_v8 = vpop.f32.mrf.mxu0  ;;  %6499 = vmatprep.mubr.msk.bf16.mxu1 %vm6746_vm0, %v8406_v0  ;;  %v3650_v48 = vadd.f32 %v8466_v11, %v8597_v6  ;;  %v3652_v11 = vadd.f32 %v8483_v20, %v8611_v30 }
 0x3ed   : > { %v6265_v45 = vpop.f32.mrf.mxu1 }
 0x3ee   : > { %v6421_v27 = vpop.f32.mrf.mxu0 }
 0x3ef   : > { %v3793_v56 = vpop.f32.mrf.mxu1 }
 0x3f0   : > { %v8661_v14 = vadd.f32 %v3793_v56, %v3641_v19  ;;  %v8663_v2 = vpop.f32.mrf.mxu0 }
 0x3f1   : > { %v6266_v55 = vpop.f32.mrf.mxu1 }
 0x3f2   : > { %v6422_v22 = vpop.f32.mrf.mxu0 }
 0x3f3   : > { %v3798_v62 = vpop.f32.mrf.mxu1  ;;  %6500 = vmatmul.mubr.bf16.gmra.mxu1 %v4542_v26 }
 0x3f4   : > { %v8667_v0 = vadd.f32 %v3798_v62, %v3642_v42  ;;  %v8669_v36 = vpop.f32.mrf.mxu0 }
 0x3f5   : > { %v6269_v38 = vpop.f32.mrf.mxu1 }
 0x3f6   : > { %v6425_v45 = vpop.f32.mrf.mxu0 }
 0x3f7   : > { %v3801_v10 = vpop.f32.mrf.mxu1 }
 0x3f8   : > { %v8673_v21 = vadd.f32 %v3801_v10, %v3643_v16  ;;  %v8675_v53 = vpop.f32.mrf.mxu0 }
 0x3f9   : > { %v6270_v27 = vpop.f32.mrf.mxu1 }
 0x3fa   : > { %v6426_v19 = vpop.f32.mrf.mxu0 }
 0x3fb   : > { %v3806_v28 = vpop.f32.mrf.mxu1 }
 0x3fc   : > { %v8679_v56 = vadd.f32 %v3806_v28, %v3644_v39  ;;  %v8681_v26 = vpop.f32.mrf.mxu0 }
 0x3fd   : > { %v6273_v55 = vpop.f32.mrf.mxu1 }
 0x3fe   : > { %v6429_v22 = vpop.f32.mrf.mxu0 }
 0x3ff   : > { %v3809_v35 = vpop.f32.mrf.mxu1 }
 0x400   : > { %v8685_v42 = vadd.f32 %v3809_v35, %v3645_v49  ;;  %v8687_v62 = vpop.f32.mrf.mxu0 }
 0x401   : > { %v6274_v38 = vpop.f32.mrf.mxu1 }
 0x402   : > { %v6430_v45 = vpop.f32.mrf.mxu0 }
 0x403   : > { %v3814_v15 = vpop.f32.mrf.mxu1 }
 0x404   : > { %v8691_v16 = vadd.f32 %v3814_v15, %v3646_v43  ;;  %v8693_v10 = vpop.f32.mrf.mxu0 }
 0x405   : > { %v6277_v27 = vpop.f32.mrf.mxu1 }
 0x406   : > { %v6433_v19 = vpop.f32.mrf.mxu0 }
 0x407   : > { %v3817_v60 = vpop.f32.mrf.mxu1 }
 0x408   : > { %v8697_v39 = vadd.f32 %v3817_v60, %v3647_v32  ;;  %v8699_v28 = vpop.f32.mrf.mxu0 }
 0x409   : > { %v6278_v55 = vpop.f32.mrf.mxu1 }
 0x40a   : > { %v6434_v22 = vpop.f32.mrf.mxu0 }
 0x40b   : > { %v3822_v40 = vpop.f32.mrf.mxu1 }
 0x40c   : > { %v8703_v49 = vadd.f32 %v3822_v40, %v3648_v44  ;;  %v8705_v35 = vpop.f32.mrf.mxu0 }
 0x40d   : > { %v6281_v38 = vpop.f32.mrf.mxu1 }
 0x40e   : > { %v6437_v45 = vpop.f32.mrf.mxu0 }
 0x40f   : > { %v3825_v29 = vpop.f32.mrf.mxu1 }
 0x410   : > { %v8709_v43 = vadd.f32 %v3825_v29, %v3649_v47  ;;  %v8711_v15 = vpop.f32.mrf.mxu0 }
 0x411   : > { %v6282_v27 = vpop.f32.mrf.mxu1 }
 0x412   : > { %v6438_v19 = vpop.f32.mrf.mxu0 }
 0x413   : > { %v3830_v57 = vpop.f32.mrf.mxu1 }
 0x414   : > { %v8715_v32 = vadd.f32 %v3830_v57, %v3650_v48  ;;  %v8717_v60 = vpop.f32.mrf.mxu0  ;;  %v9005_v48 = vld [vmem:[#allocation8_spill] sm:$0xff] }
 0x415   : > { %v6285_v55 = vpop.f32.mrf.mxu1  ;;  %v3653_v18 = vadd.f32 %v9005_v48, %v8619_v1 }
 0x416   : > { %v6441_v22 = vpop.f32.mrf.mxu0 }
 0x417   : > { %v3833_v33 = vpop.f32.mrf.mxu1 }
 0x418   : > { %v8721_v44 = vadd.f32 %v3833_v33, %v3651_v31  ;;  %v8723_v40 = vpop.f32.mrf.mxu0  ;;  %v9006_v33 = vld [vmem:[#allocation9_spill] sm:$0xff] }
 0x419   : > { %v6286_v38 = vpop.f32.mrf.mxu1  ;;  %v3654_v20 = vadd.f32 %v9006_v33, %v8625_v52 }
 0x41a   : > { %v6442_v45 = vpop.f32.mrf.mxu0 }
 0x41b   : > { %v3838_v6 = vpop.f32.mrf.mxu1 }
 0x41c   : > { %v8727_v47 = vadd.f32 %v3838_v6, %v3652_v11  ;;  %v8729_v29 = vpop.f32.mrf.mxu0 }
 0x41d   : > { %v6289_v27 = vpop.f32.mrf.mxu1 }
 0x41e   : > { %v6445_v19 = vpop.f32.mrf.mxu0  ;;  %v9008_v27 = vld [vmem:[#allocation10_spill] sm:$0xff] }
 0x41f   : > { %v3841_v13 = vpop.f32.mrf.mxu1  ;;  %v3655_v1 = vadd.f32 %v9008_v27, %v8633_v17 }
 0x420   : > { %v8733_v57 = vadd.f32 %v3841_v13, %v3653_v18  ;;  %v8735_v55 = vpop.f32.mrf.mxu0 }
 0x421   : > { %v6290_v22 = vpop.f32.mrf.mxu1 }
 0x422   : > { %v6446_v31 = vpop.f32.mrf.mxu0 }
 0x423   : > { %v3846_v30 = vpop.f32.mrf.mxu1  ;;  %v9010_v31 = vld [vmem:[#allocation11_spill] sm:$0xff] }
 0x424   : > { %v8739_v38 = vadd.f32 %v3846_v30, %v3654_v20  ;;  %v8741_v45 = vpop.f32.mrf.mxu0  ;;  %v4068_v52 = vadd.f32 %v9010_v31, %v8639_v7 }
 0x425   : > { %9007 = vst [vmem:[#allocation8_spill] sm:$0xff] %v8741_v45  ;;  %v6293_v11 = vpop.f32.mrf.mxu1  ;;  %v9011_v45 = vld [vmem:[#allocation12_spill] sm:$0xff] }
 0x426   : > { %v6449_v6 = vpop.f32.mrf.mxu0  ;;  %v4069_v17 = vadd.f32 %v9011_v45, %v8647_v34  ;;  %v4071_v34 = vadd.f32 %v8536_v4, %v8661_v14  ;;  %v4073_v4 = vadd.f32 %v8551_v61, %v8673_v21  ;;  %v4075_v61 = vadd.f32 %v8565_v50, %v8685_v42 }
 0x427   : > { %v3849_v19 = vpop.f32.mrf.mxu1  ;;  %v4077_v50 = vadd.f32 %v8579_v37, %v8697_v39  ;;  %v4079_v37 = vadd.f32 %v8593_v46, %v8709_v43  ;;  %v4081_v46 = vadd.f32 %v8607_v63, %v8721_v44  ;;  %v4083_v63 = vadd.f32 %v8621_v12, %v8733_v57 }
 0x428   : > { %v8745_v48 = vadd.f32 %v3849_v19, %v3655_v1  ;;  %v8747_v18 = vpop.f32.mrf.mxu0 }
 0x429   : > { %9009 = vst [vmem:[#allocation9_spill] sm:$0xff] %v8747_v18  ;;  %v6294_v13 = vpop.f32.mrf.mxu1  ;;  %v9012_v18 = vld [vmem:[#allocation13_spill] sm:$0xff] }
 0x42a   : > { %v6450_v22 = vpop.f32.mrf.mxu0  ;;  %v4070_v7 = vadd.f32 %v9012_v18, %v8653_v59  ;;  %v4072_v59 = vadd.f32 %v8543_v23, %v8667_v0  ;;  %v4074_v23 = vadd.f32 %v8557_v51, %v8679_v56  ;;  %v4076_v51 = vadd.f32 %v8571_v9, %v8691_v16 }
 0x42b   : > { %v4212_v33 = vpop.f32.mrf.mxu1  ;;  %v4078_v9 = vadd.f32 %v8585_v3, %v8703_v49  ;;  %v4080_v3 = vadd.f32 %v8599_v24, %v8715_v32  ;;  %v4082_v24 = vadd.f32 %v8613_v25, %v8727_v47  ;;  %v4084_v25 = vadd.f32 %v8627_v54, %v8739_v38 }
 0x42c   : > { %v8751_v20 = vadd.f32 %v4212_v33, %v4068_v52  ;;  %v8753_v30 = vpop.f32.mrf.mxu0  ;;  %v4085_v12 = vadd.f32 %v8635_v41, %v8745_v48 }
 0x42d   : > { %v6365_v11 = vpop.f32.mrf.mxu1 }
 0x42e   : > { %v6521_v6 = vpop.f32.mrf.mxu0  ;;  %v4498_v54 = vadd.f32 %v8641_v58, %v8751_v20 }
 0x42f   : > { %v4215_v27 = vpop.f32.mrf.mxu1 }
 0x430   : > { %v8757_v1 = vadd.f32 %v4215_v27, %v4069_v17  ;;  %v8759_v19 = vpop.f32.mrf.mxu0 }
 0x431   : > { %v6366_v13 = vpop.f32.mrf.mxu1 }
 0x432   : > { %v6522_v22 = vpop.f32.mrf.mxu0  ;;  %v4499_v41 = vadd.f32 %v8649_v5, %v8757_v1 }
 0x433   : > { %v4220_v31 = vpop.f32.mrf.mxu1 }
 0x434   : > { %v8763_v52 = vadd.f32 %v4220_v31, %v4070_v7  ;;  %v8765_v33 = vpop.f32.mrf.mxu0 }
 0x435   : > { %v6369_v11 = vpop.f32.mrf.mxu1 }
 0x436   : > { %v6525_v6 = vpop.f32.mrf.mxu0  ;;  %v4500_v20 = vadd.f32 %v8655_v8, %v8763_v52 }
 0x437   : > { %v4223_v45 = vpop.f32.mrf.mxu1 }
 0x438   : > { %v8769_v17 = vadd.f32 %v4223_v45, %v4071_v34  ;;  %v8771_v27 = vpop.f32.mrf.mxu0 }
 0x439   : > { %v6370_v13 = vpop.f32.mrf.mxu1 }
 0x43a   : > { %v6526_v22 = vpop.f32.mrf.mxu0  ;;  %v4501_v1 = vadd.f32 %v8663_v2, %v8769_v17 }
 0x43b   : > { %v4228_v18 = vpop.f32.mrf.mxu1 }
 0x43c   : > { %v8775_v7 = vadd.f32 %v4228_v18, %v4072_v59  ;;  %v8777_v31 = vpop.f32.mrf.mxu0 }
 0x43d   : > { %v6373_v11 = vpop.f32.mrf.mxu1 }
 0x43e   : > { %v6529_v6 = vpop.f32.mrf.mxu0  ;;  %v4502_v8 = vadd.f32 %v8669_v36, %v8775_v7 }
 0x43f   : > { %v4231_v14 = vpop.f32.mrf.mxu1 }
 0x440   : > { %v8781_v34 = vadd.f32 %v4231_v14, %v4073_v4  ;;  %v8783_v45 = vpop.f32.mrf.mxu0 }
 0x441   : > { %v6374_v13 = vpop.f32.mrf.mxu1 }
 0x442   : > { %v6530_v22 = vpop.f32.mrf.mxu0  ;;  %v4503_v2 = vadd.f32 %v8675_v53, %v8781_v34 }
 0x443   : > { %v4236_v0 = vpop.f32.mrf.mxu1 }
 0x444   : > { %v8787_v59 = vadd.f32 %v4236_v0, %v4074_v23  ;;  %v8789_v18 = vpop.f32.mrf.mxu0 }
 0x445   : > { %v6377_v11 = vpop.f32.mrf.mxu1 }
 0x446   : > { %v6533_v6 = vpop.f32.mrf.mxu0  ;;  %v4504_v36 = vadd.f32 %v8681_v26, %v8787_v59 }
 0x447   : > { %v4239_v21 = vpop.f32.mrf.mxu1 }
 0x448   : > { %v8793_v4 = vadd.f32 %v4239_v21, %v4075_v61  ;;  %v8795_v14 = vpop.f32.mrf.mxu0 }
 0x449   : > { %v6378_v13 = vpop.f32.mrf.mxu1 }
 0x44a   : > { %v6534_v22 = vpop.f32.mrf.mxu0  ;;  %v4505_v53 = vadd.f32 %v8687_v62, %v8793_v4 }
 0x44b   : > { %v4244_v56 = vpop.f32.mrf.mxu1 }
 0x44c   : > { %v8799_v23 = vadd.f32 %v4244_v56, %v4076_v51  ;;  %v8801_v0 = vpop.f32.mrf.mxu0 }
 0x44d   : > { %v6381_v11 = vpop.f32.mrf.mxu1 }
 0x44e   : > { %v6537_v6 = vpop.f32.mrf.mxu0  ;;  %v4506_v26 = vadd.f32 %v8693_v10, %v8799_v23 }
 0x44f   : > { %v4247_v42 = vpop.f32.mrf.mxu1 }
 0x450   : > { %v8805_v61 = vadd.f32 %v4247_v42, %v4077_v50  ;;  %v8807_v21 = vpop.f32.mrf.mxu0 }
 0x451   : > { %v6382_v13 = vpop.f32.mrf.mxu1 }
 0x452   : > { %v6538_v22 = vpop.f32.mrf.mxu0  ;;  %v4507_v62 = vadd.f32 %v8699_v28, %v8805_v61 }
 0x453   : > { %v4252_v16 = vpop.f32.mrf.mxu1 }
 0x454   : > { %v8811_v51 = vadd.f32 %v4252_v16, %v4078_v9  ;;  %v8813_v56 = vpop.f32.mrf.mxu0 }
 0x455   : > { %v6385_v11 = vpop.f32.mrf.mxu1 }
 0x456   : > { %v6541_v6 = vpop.f32.mrf.mxu0  ;;  %v4508_v10 = vadd.f32 %v8705_v35, %v8811_v51 }
 0x457   : > { %v4255_v39 = vpop.f32.mrf.mxu1 }
 0x458   : > { %v8817_v50 = vadd.f32 %v4255_v39, %v4079_v37  ;;  %v8819_v42 = vpop.f32.mrf.mxu0 }
 0x459   : > { %v6386_v13 = vpop.f32.mrf.mxu1 }
 0x45a   : > { %v6542_v22 = vpop.f32.mrf.mxu0  ;;  %v4509_v28 = vadd.f32 %v8711_v15, %v8817_v50 }
 0x45b   : > { %v4260_v49 = vpop.f32.mrf.mxu1 }
 0x45c   : > { %v8823_v9 = vadd.f32 %v4260_v49, %v4080_v3  ;;  %v8825_v16 = vpop.f32.mrf.mxu0 }
 0x45d   : > { %v6389_v11 = vpop.f32.mrf.mxu1 }
 0x45e   : > { %v6545_v6 = vpop.f32.mrf.mxu0  ;;  %v4510_v35 = vadd.f32 %v8717_v60, %v8823_v9 }
 0x45f   : > { %v4263_v43 = vpop.f32.mrf.mxu1 }
 0x460   : > { %v8829_v37 = vadd.f32 %v4263_v43, %v4081_v46  ;;  %v8831_v39 = vpop.f32.mrf.mxu0 }
 0x461   : > { %v6390_v13 = vpop.f32.mrf.mxu1 }
 0x462   : > { %v6546_v22 = vpop.f32.mrf.mxu0  ;;  %v4511_v15 = vadd.f32 %v8723_v40, %v8829_v37 }
 0x463   : > { %v4268_v32 = vpop.f32.mrf.mxu1 }
 0x464   : > { %v8835_v3 = vadd.f32 %v4268_v32, %v4082_v24  ;;  %v8837_v49 = vpop.f32.mrf.mxu0 }
 0x465   : > { %v6393_v11 = vpop.f32.mrf.mxu1 }
 0x466   : > { %v6549_v6 = vpop.f32.mrf.mxu0  ;;  %v4512_v60 = vadd.f32 %v8729_v29, %v8835_v3  ;;  %v9013_v29 = vld [vmem:[#allocation8_spill] sm:$0xff] }
 0x467   : > { %v4271_v44 = vpop.f32.mrf.mxu1 }
 0x468   : > { %v8841_v46 = vadd.f32 %v4271_v44, %v4083_v63  ;;  %v8843_v43 = vpop.f32.mrf.mxu0 }
 0x469   : > { %v6394_v13 = vpop.f32.mrf.mxu1 }
 0x46a   : > { %v6550_v22 = vpop.f32.mrf.mxu0  ;;  %v4513_v40 = vadd.f32 %v8735_v55, %v8841_v46  ;;  %v9014_v55 = vld [vmem:[#allocation9_spill] sm:$0xff] }
 0x46b   : > { %v4276_v47 = vpop.f32.mrf.mxu1 }
 0x46c   : > { %v8847_v24 = vadd.f32 %v4276_v47, %v4084_v25  ;;  %v8849_v32 = vpop.f32.mrf.mxu0 }
 0x46d   : > { %v6397_v11 = vpop.f32.mrf.mxu1 }
 0x46e   : > { %v6553_v57 = vpop.f32.mrf.mxu0  ;;  %v4514_v3 = vadd.f32 %v9013_v29, %v8847_v24 }
 0x46f   : > { %v4279_v6 = vpop.f32.mrf.mxu1 }
 0x470   : > { %v8854_v63 = vadd.f32 %v4279_v6, %v4085_v12  ;;  %v8856_v44 = vpop.f32.mrf.mxu0 }
 0x471   : > { %v6398_v13 = vpop.f32.mrf.mxu1 }
 0x472   : > { %v6554_v38 = vpop.f32.mrf.mxu0  ;;  %v4515_v46 = vadd.f32 %v9014_v55, %v8854_v63 }
 0x473   : > { %v4642_v22 = vpop.f32.mrf.mxu1 }
 0x474   : > { %v4713_v25 = vadd.f32 %v4642_v22, %v4498_v54 }
 0x475   : > { %v6469_v47 = vpop.f32.mrf.mxu1 }
 0x476   : > { %v4928_v11 = vadd.f32 %v8753_v30, %v4713_v25 }
 0x477   : > { %v4645_v48 = vpop.f32.mrf.mxu1 }
 0x478   : > { %4946 = vst [vmem:[%s8865_s18] sm:$0xff] %v4928_v11  ;;  %v4714_v12 = vadd.f32 %v4645_v48, %v4499_v41 }
 0x479   : > { %v6470_v57 = vpop.f32.mrf.mxu1 }
 0x47a   : > { %v4929_v58 = vadd.f32 %v8759_v19, %v4714_v12 }
 0x47b   : > { %v4650_v6 = vpop.f32.mrf.mxu1 }
 0x47c   : > { %4947 = vst [vmem:[%s8865_s18 + $0x8] sm:$0xff] %v4929_v58  ;;  %v4715_v30 = vadd.f32 %v4650_v6, %v4500_v20 }
 0x47d   : > { %v6473_v13 = vpop.f32.mrf.mxu1 }
 0x47e   : > { %v4930_v5 = vadd.f32 %v8765_v33, %v4715_v30 }
 0x47f   : > { %v4653_v54 = vpop.f32.mrf.mxu1 }
 0x480   : > { %4948 = vst [vmem:[%s8865_s18 + $0x10] sm:$0xff] %v4930_v5  ;;  %v4716_v38 = vadd.f32 %v4653_v54, %v4501_v1 }
 0x481   : > { %v6474_v22 = vpop.f32.mrf.mxu1 }
 0x482   : > { %v4931_v19 = vadd.f32 %v8771_v27, %v4716_v38 }
 0x483   : > { %v4658_v52 = vpop.f32.mrf.mxu1 }
 0x484   : > { %4949 = vst [vmem:[%s8865_s18 + $0x18] sm:$0xff] %v4931_v19  ;;  %v4717_v25 = vadd.f32 %v4658_v52, %v4502_v8 }
 0x485   : > { %v6477_v47 = vpop.f32.mrf.mxu1 }
 0x486   : > { %v4932_v33 = vadd.f32 %v8777_v31, %v4717_v25 }
 0x487   : > { %v4661_v17 = vpop.f32.mrf.mxu1 }
 0x488   : > { %4950 = vst [vmem:[%s8865_s18 + $0x20] sm:$0xff] %v4932_v33  ;;  %v4718_v11 = vadd.f32 %v4661_v17, %v4503_v2 }
 0x489   : > { %v6478_v41 = vpop.f32.mrf.mxu1 }
 0x48a   : > { %v4933_v27 = vadd.f32 %v8783_v45, %v4718_v11 }
 0x48b   : > { %v4666_v7 = vpop.f32.mrf.mxu1 }
 0x48c   : > { %4951 = vst [vmem:[%s8865_s18 + $0x28] sm:$0xff] %v4933_v27  ;;  %v4719_v48 = vadd.f32 %v4666_v7, %v4504_v36 }
 0x48d   : > { %v6481_v12 = vpop.f32.mrf.mxu1 }
 0x48e   : > { %v4934_v31 = vadd.f32 %v8789_v18, %v4719_v48 }
 0x48f   : > { %v4669_v34 = vpop.f32.mrf.mxu1 }
 0x490   : > { %4952 = vst [vmem:[%s8865_s18 + $0x30] sm:$0xff] %v4934_v31  ;;  %v4720_v57 = vadd.f32 %v4669_v34, %v4505_v53 }
 0x491   : > { %v6482_v58 = vpop.f32.mrf.mxu1 }
 0x492   : > { %v4935_v45 = vadd.f32 %v8795_v14, %v4720_v57 }
 0x493   : > { %v4674_v59 = vpop.f32.mrf.mxu1 }
 0x494   : > { %4953 = vst [vmem:[%s8865_s18 + $0x38] sm:$0xff] %v4935_v45  ;;  %v4721_v20 = vadd.f32 %v4674_v59, %v4506_v26 }
 0x495   : > { %v6485_v6 = vpop.f32.mrf.mxu1 }
 0x496   : > { %v4936_v18 = vadd.f32 %v8801_v0, %v4721_v20 }
 0x497   : > { %v4677_v4 = vpop.f32.mrf.mxu1 }
 0x498   : > { %4954 = vst [vmem:[%s8865_s18 + $0x40] sm:$0xff] %v4936_v18  ;;  %v4722_v30 = vadd.f32 %v4677_v4, %v4507_v62 }
 0x499   : > { %v6486_v13 = vpop.f32.mrf.mxu1 }
 0x49a   : > { %v4937_v14 = vadd.f32 %v8807_v21, %v4722_v30 }
 0x49b   : > { %v4682_v23 = vpop.f32.mrf.mxu1 }
 0x49c   : > { %4955 = vst [vmem:[%s8865_s18 + $0x48] sm:$0xff] %v4937_v14  ;;  %v4723_v5 = vadd.f32 %v4682_v23, %v4508_v10 }
 0x49d   : > { %v6489_v1 = vpop.f32.mrf.mxu1 }
 0x49e   : > { %v4938_v0 = vadd.f32 %v8813_v56, %v4723_v5 }
 0x49f   : > { %v4685_v61 = vpop.f32.mrf.mxu1 }
 0x4a0   : > { %4956 = vst [vmem:[%s8865_s18 + $0x50] sm:$0xff] %v4938_v0  ;;  %v4724_v54 = vadd.f32 %v4685_v61, %v4509_v28 }
 0x4a1   : > { %v6490_v38 = vpop.f32.mrf.mxu1 }
 0x4a2   : > { %v4939_v21 = vadd.f32 %v8819_v42, %v4724_v54 }
 0x4a3   : > { %v4690_v51 = vpop.f32.mrf.mxu1 }
 0x4a4   : > { %4957 = vst [vmem:[%s8865_s18 + $0x58] sm:$0xff] %v4939_v21  ;;  %v4725_v22 = vadd.f32 %v4690_v51, %v4510_v35 }
 0x4a5   : > { %v6493_v19 = vpop.f32.mrf.mxu1 }
 0x4a6   : > { %v4940_v56 = vadd.f32 %v8825_v16, %v4725_v22 }
 0x4a7   : > { %v4693_v50 = vpop.f32.mrf.mxu1 }
 0x4a8   : > { %4958 = vst [vmem:[%s8865_s18 + $0x60] sm:$0xff] %v4940_v56  ;;  %v4726_v8 = vadd.f32 %v4693_v50, %v4511_v15 }
 0x4a9   : > { %v6494_v52 = vpop.f32.mrf.mxu1 }
 0x4aa   : > { %v4941_v42 = vadd.f32 %v8831_v39, %v4726_v8 }
 0x4ab   : > { %v4698_v9 = vpop.f32.mrf.mxu1 }
 0x4ac   : > { %4959 = vst [vmem:[%s8865_s18 + $0x68] sm:$0xff] %v4941_v42  ;;  %v4727_v25 = vadd.f32 %v4698_v9, %v4512_v60 }
 0x4ad   : > { %v6497_v47 = vpop.f32.mrf.mxu1 }
 0x4ae   : > { %v4942_v16 = vadd.f32 %v8837_v49, %v4727_v25 }
 0x4af   : > { %v4701_v37 = vpop.f32.mrf.mxu1 }
 0x4b0   : > { %4960 = vst [vmem:[%s8865_s18 + $0x70] sm:$0xff] %v4942_v16  ;;  %v4728_v33 = vadd.f32 %v4701_v37, %v4513_v40 }
 0x4b1   : > { %v6498_v2 = vpop.f32.mrf.mxu1 }
 0x4b2   : > { %v4943_v39 = vadd.f32 %v8843_v43, %v4728_v33 }
 0x4b3   : > { %v4706_v17 = vpop.f32.mrf.mxu1 }
 0x4b4   : > { %4961 = vst [vmem:[%s8865_s18 + $0x78] sm:$0xff] %v4943_v39  ;;  %v4729_v11 = vadd.f32 %v4706_v17, %v4514_v3 }
 0x4b5   : > { %v6501_v41 = vpop.f32.mrf.mxu1 }
 0x4b6   : > { %v4944_v49 = vadd.f32 %v8849_v32, %v4729_v11 }
 0x4b7   : > { %v4709_v27 = vpop.f32.mrf.mxu1 }
 0x4b8   : > { %4962 = vst [vmem:[%s8865_s18 + $0x80] sm:$0xff] %v4944_v49  ;;  %v4730_v43 = vadd.f32 %v4709_v27, %v4515_v46 }
 0x4b9   : > { %v6502_v36 = vpop.f32.mrf.mxu1 }
 0x4ba   : > { %v4945_v24 = vadd.f32 %v8856_v44, %v4730_v43 }
 0x4bc   : > { %4963 = vst [vmem:[%s8865_s18 + $0x88] sm:$0xff] %v4945_v24 }
 0x4bd   : > { %6695 = shalt.err (!%p6692_p3)
}
 0x4be   : > { %s6696_s12 = scalar_lea.hbm %s8940_s26, 2304  ;;  %s6700_s20 = scalar_lea.hbm %s8995_s10, 4608 }
 0x4bf   : > { %p6697_p4 = scmp.ne.s32.totalorder %s8940_s26, %s6696_s12  ;;  %p6701_p9 = scmp.lt.s32.totalorder %s8940_s26, %s8995_s10 }
 0x4c0   : > { %p6702_p10 = scmp.lt.s32.totalorder %s6700_s20, %s6696_s12 }
 0x4c1   : > { %p6698_p7 = pnand %p6697_p4, %p6843_p5 }
 0x4c2   : > { %p6703_p11 = por %p6702_p10, %p6701_p9 }
 0x4c3   : > { %p6699_p8 = pneg %p6698_p7 }
 0x4c5   : > { %p6704_p12 = pnand %p6703_p11, %p6699_p8 }
 0x4c7   : > { %6707 = shalt.err (!%p6704_p12)
}
 0x4c8   : > { %s6748_s27 = smov 128   ;;  %s6749_s28 = smov 8  }
 0x4c9   : > { %6560 = dma.vmem_to_hbm [thread:$0]  (%p6843_p5), %s8934_s21, 2304, %s8940_s26, %s8945_s17, %s6748_s27, %s6748_s27, %s6749_s28  }
 0x4ca PF: > { %p6566_p13 = scmp.ge.s32.totalorder %s6742_s16, 2  ;;  %s4993_s30 = sand.u32 1, %s6730_s13  }
 0x4cb   : > { %s4994_s11 = scalar_lea.sflag [#allocation5], %s4993_s30 }
 0x4cc   : > { %p6563_p0 = pnand %p6566_p13, %p6847_p6 }
 0x4ce   : > { %p6564_p1 = pneg %p6563_p0 }
 0x4d0   : > { %6725 = dma.done.wait (%p6564_p1), %s4994_s11, 2304  }
 0x4d1   : > { %6727 = vsyncadd (%p6564_p1), %s4994_s11, 4294964992  ;;  %s9015_s12 = sld [smem:[#allocation7_spill]]  ;;  %p20_p2 = scmp.ge.s32.totalorder %s6830_s19, 4  }
 0x4d2   : > { %s9016_s13 = smov %s6734_s14  ;;  %s9017_s14 = smov %s6738_s15 }
 0x4d3   : > { %s9019_s16 = smov %s6830_s19  ;;  %22 = sbr.rel (!%p20_p2) target bundleno = 3 (0x3), region = 238 }
 0x4d7   : > { %s9018_s15 = smov %s9015_s12 }
 0x4d8   :  { %4999 = vsyncpa [#allocation5], 1 }
 0x4d9   :  { %5001 = vsyncpa [#allocation5 + $0x1], 1 }

</bundles_post_ra>
